<compile_context>
chip_gen: v7x
topology: tpu7x:2x2x1
jax: 0.10.0
libtpu: 0.0.40
codegen_flags: <defaults>
</compile_context>

<pallas_src>
import jax
import jax.numpy as jnp
import numpy as np
from jax.experimental import pallas as pl
from jax.experimental.pallas import tpu as pltpu


def _make_kernel(*, nb, H, W, Hp, Wp, H_out, W_out, K, pad,
                 c_in, c_mid, c_out, has_expand, shortcut):
    """Build the per-grid-step kernel.  All shapes/flags are static (closed over)."""

    def kernel(x_ref, scale_ref, shift_ref, w1_ref, b1_ref, wd_ref, w2_ref, b2_ref,
               out_ref, zpad_ref):
        # Zero the padded depthwise-input scratch; only the interior is overwritten
        # below, so the border stays zero (== zero-padding the depthwise input).
        if pad > 0:
            zpad_ref[...] = jnp.zeros_like(zpad_ref)

        x = x_ref[...].astype(jnp.float32)                     # (nb, c_in, H, W)

        # Fused BatchNorm (eval) + ReLU.  Channels sit on a leading axis, so the
        # per-channel affine parameters are SMEM scalars splatted onto vregs.
        y = [jnp.maximum(x[:, c] * scale_ref[c] + shift_ref[c], 0.0)
             for c in range(c_in)]                             # c_in x (nb, H, W)

        # 1x1 expansion conv (pointwise, bias) as scalar-weight FMAs, written into
        # the zero-padded scratch interior.  For expansion == 1 the expand conv is
        # skipped entirely (w1/b1 are ignored).
        for d in range(c_mid):
            if has_expand:
                z_d = y[0] * w1_ref[0, d] + b1_ref[d]
                for c in range(1, c_in):
                    z_d = z_d + y[c] * w1_ref[c, d]
            else:
                z_d = y[d]
            zpad_ref[d, :, pl.ds(pad, H), pl.ds(pad, W)] = z_d

        # Depthwise KxK conv (stride 1, dilation 1, no bias) fused with the 1x1
        # projection: accumulate each mid-channel's depthwise result once, then
        # scatter it into all output channels with scalar weights (VPU only).
        out_acc = [None] * c_out
        for d in range(c_mid):
            a_d = None
            for kh in range(K):
                for kw in range(K):
                    tap = zpad_ref[d, :, pl.ds(kh, H_out), pl.ds(kw, W_out)]
                    tap = tap * wd_ref[kh * K + kw, d]
                    a_d = tap if a_d is None else a_d + tap
            for e in range(c_out):
                t = a_d * w2_ref[d, e]
                out_acc[e] = t if out_acc[e] is None else out_acc[e] + t

        outs = []
        for e in range(c_out):
            o_e = out_acc[e] + b2_ref[e]
            if shortcut:
                o_e = o_e + x[:, e]        # residual adds the raw (pre-BN) input
            outs.append(o_e)

        # Single contiguous block store (one store instead of c_out partial ones).
        out_ref[...] = jnp.stack(outs, axis=1).astype(out_ref.dtype)

    return kernel


def inverted_res_block_mobile(x_nchw, params, *, kernel_size, stride=1, padding=0,
                              dilation=1, expansion=1, eps=1e-5, batch_block=None):
    """Pallas implementation of InvertedResBlockMobile.forward (eval-mode BN).

    params = (gamma, beta, mean, var, w1, b1, wd, w2, b2) with
      gamma/beta/mean/var : (1, C_in)
      w1 : (C_in, C_mid), b1 : (1, C_mid)      (ignored when expansion == 1)
      wd : (K*K, C_mid)                        (depthwise weights, row-major taps)
      w2 : (C_mid, C_out), b2 : (1, C_out)
    Input/output are NCHW, matching the PyTorch module.
    """
    assert stride == 1 and dilation == 1, "only stride=1, dilation=1 supported"

    gamma, beta, mean, var, w1, b1, wd, w2, b2 = params
    N, c_in, H, W = x_nchw.shape
    has_expand = expansion > 1
    c_mid = w1.shape[1] if has_expand else c_in
    c_out = w2.shape[1]
    K = kernel_size
    pad = padding
    Hp, Wp = H + 2 * pad, W + 2 * pad
    H_out, W_out = Hp - (K - 1), Wp - (K - 1)
    shortcut = (stride == 1 and c_in == c_out)
    if shortcut:
        assert (H_out, W_out) == (H, W), "caller must ensure same input/output size"
    assert wd.shape == (K * K, c_mid) and w2.shape[0] == c_mid

    # Pre-fuse BatchNorm (eval mode) into one scale/shift pair (tiny wrapper op).
    scale = (gamma[0] * jax.lax.rsqrt(var[0] + eps)).astype(jnp.float32)
    shift = (beta[0] - mean[0] * scale).astype(jnp.float32)

    # Fold the whole batch into one block when small; stripe otherwise.
    nb = N if batch_block is None else min(batch_block, N)
    assert N % nb == 0, "batch_block must divide N"
    grid = (N // nb,)

    kernel = _make_kernel(nb=nb, H=H, W=W, Hp=Hp, Wp=Wp, H_out=H_out, W_out=W_out,
                          K=K, pad=pad, c_in=c_in, c_mid=c_mid, c_out=c_out,
                          has_expand=has_expand, shortcut=shortcut)

    smem_spec = pl.BlockSpec(memory_space=pltpu.MemorySpace.SMEM)

    out = pl.pallas_call(
        kernel,
        out_shape=jax.ShapeDtypeStruct((N, c_out, H_out, W_out), jnp.float32),
        grid=grid,
        in_specs=[pl.BlockSpec((nb, c_in, H, W), lambda n: (n, 0, 0, 0))]
                 + [smem_spec] * 7,
        out_specs=pl.BlockSpec((nb, c_out, H_out, W_out), lambda n: (n, 0, 0, 0)),
        scratch_shapes=[pltpu.VMEM((c_mid, nb, Hp, Wp), jnp.float32)],
        compiler_params=pltpu.CompilerParams(dimension_semantics=("parallel",)),
    )(x_nchw.astype(jnp.float32),
      scale, shift,
      w1.astype(jnp.float32), b1.reshape(-1).astype(jnp.float32),
      wd.astype(jnp.float32),
      w2.astype(jnp.float32), b2.reshape(-1).astype(jnp.float32))

    return out


def reference_nchw(x_nchw, params, *, kernel_size, padding, eps=1e-5):
    """Pure-JAX reference of the same forward pass (for correctness check)."""
    gamma, beta, mean, var, w1, b1, wd, w2, b2 = params
    x = jnp.transpose(x_nchw, (0, 2, 3, 1)).astype(jnp.float32)
    y = jnp.maximum((x - mean[0]) * jax.lax.rsqrt(var[0] + eps) * gamma[0] + beta[0],
                    0.0)
    z = jnp.einsum('nhwc,cd->nhwd', y, w1) + b1[0]
    K, pad = kernel_size, padding
    zp = jnp.pad(z, ((0, 0), (pad, pad), (pad, pad), (0, 0)))
    N, Hp, Wp, c_mid = zp.shape
    H_out, W_out = Hp - (K - 1), Wp - (K - 1)
    acc = jnp.zeros((N, H_out, W_out, c_mid), jnp.float32)
    for kh in range(K):
        for kw in range(K):
            acc = acc + zp[:, kh:kh + H_out, kw:kw + W_out, :] * wd[kh * K + kw]
    out = jnp.einsum('nhwc,cd->nhwd', acc, w2) + b2[0]
    if w1.shape[0] == w2.shape[1]:  # shortcut (Cin == Cout, stride 1)
        out = out + x
    return jnp.transpose(out, (0, 3, 1, 2))


if __name__ == "__main__":
    # Small config consistent with the module: in=out=4 channels, 3x3 depthwise,
    # stride 1, padding 1, expansion 2 -> residual shortcut active.
    N, C_in, H, W = 2, 4, 16, 16
    C_out, K, stride, pad, expansion = 4, 3, 1, 1, 2
    C_mid = C_in * expansion

    key = jax.random.PRNGKey(0)
    keys = jax.random.split(key, 10)
    x = jax.random.normal(keys[0], (N, C_in, H, W), jnp.float32)

    # Deterministic synthetic parameters (BN affine + running stats, conv weights).
    gamma = jax.random.uniform(keys[1], (1, C_in), jnp.float32, 0.5, 1.5)
    beta = 0.1 * jax.random.normal(keys[2], (1, C_in), jnp.float32)
    mean = 0.1 * jax.random.normal(keys[3], (1, C_in), jnp.float32)
    var = jax.random.uniform(keys[4], (1, C_in), jnp.float32, 0.5, 1.5)
    w1 = 0.3 * jax.random.normal(keys[5], (C_in, C_mid), jnp.float32)   # 1x1 expand
    b1 = 0.1 * jax.random.normal(keys[6], (1, C_mid), jnp.float32)
    wd = 0.3 * jax.random.normal(keys[7], (K * K, C_mid), jnp.float32)  # depthwise
    w2 = 0.3 * jax.random.normal(keys[8], (C_mid, C_out), jnp.float32)  # 1x1 project
    b2 = 0.1 * jax.random.normal(keys[9], (1, C_out), jnp.float32)
    params = (gamma, beta, mean, var, w1, b1, wd, w2, b2)

    out = inverted_res_block_mobile(x, params, kernel_size=K, stride=stride,
                                    padding=pad, dilation=1, expansion=expansion)
    out = jax.block_until_ready(out)

    ref = reference_nchw(x, params, kernel_size=K, padding=pad)
    np.testing.assert_allclose(np.asarray(out), np.asarray(ref), rtol=1e-4, atol=1e-4)
    print("KERNEL_OK")
</pallas_src>

<mosaic_0001>
module attributes {stable_mosaic.version = 11 : i64} {
  func.func @kernel(%arg0: i32, %arg1: memref<2x4x16x16xf32, #tpu.memory_space<vmem>>, %arg2: memref<4xf32, #tpu.memory_space<smem>>, %arg3: memref<4xf32, #tpu.memory_space<smem>>, %arg4: memref<4x8xf32, #tpu.memory_space<smem>>, %arg5: memref<8xf32, #tpu.memory_space<smem>>, %arg6: memref<9x8xf32, #tpu.memory_space<smem>>, %arg7: memref<8x4xf32, #tpu.memory_space<smem>>, %arg8: memref<4xf32, #tpu.memory_space<smem>>, %arg9: memref<2x4x16x16xf32, #tpu.memory_space<vmem>>, %arg10: memref<8x2x18x18xf32, #tpu.memory_space<vmem>>) attributes {dimension_semantics = [#tpu.dimension_semantics<parallel>], iteration_bounds = array<i64: 1>, scalar_prefetch = 0 : i64, scratch_operands = 1 : i64, tpu.core_type = #tpu.core_type<tc>, window_params = [{transform_indices = @transform_0, window_bounds = array<i64: 2, 4, 16, 16>}, {transform_indices = @transform_1, window_bounds = array<i64: 4>}, {transform_indices = @transform_2, window_bounds = array<i64: 4>}, {transform_indices = @transform_3, window_bounds = array<i64: 4, 8>}, {transform_indices = @transform_4, window_bounds = array<i64: 8>}, {transform_indices = @transform_5, window_bounds = array<i64: 9, 8>}, {transform_indices = @transform_6, window_bounds = array<i64: 8, 4>}, {transform_indices = @transform_7, window_bounds = array<i64: 4>}, {transform_indices = @transform_8, window_bounds = array<i64: 2, 4, 16, 16>}]} {
    %cst = arith.constant 0.000000e+00 : f32
    %0 = vector.broadcast %cst : f32 to vector<8x2x18x18xf32>
    %c0 = arith.constant 0 : index
    %c0_0 = arith.constant 0 : index
    %c0_1 = arith.constant 0 : index
    %c0_2 = arith.constant 0 : index
    %1 = vector.load %arg10[%c0, %c0_0, %c0_1, %c0_2] : memref<8x2x18x18xf32, #tpu.memory_space<vmem>>, vector<8x2x18x18xf32>
    tpu.vector_store %arg10[%c0, %c0_0, %c0_1, %c0_2], %0 {strides = array<i32>} : memref<8x2x18x18xf32, #tpu.memory_space<vmem>>, vector<8x2x18x18xf32>,
    %c0_3 = arith.constant 0 : index
    %c0_4 = arith.constant 0 : index
    %c0_5 = arith.constant 0 : index
    %c0_6 = arith.constant 0 : index
    %2 = vector.load %arg1[%c0_3, %c0_4, %c0_5, %c0_6] : memref<2x4x16x16xf32, #tpu.memory_space<vmem>>, vector<2x4x16x16xf32>
    %3 = vector.extract_strided_slice %2 {offsets = [0, 0, 0, 0], sizes = [2, 1, 16, 16], strides = [1, 1, 1, 1]} : vector<2x4x16x16xf32> to vector<2x1x16x16xf32>
    %4 = vector.shape_cast %3 : vector<2x1x16x16xf32> to vector<2x16x16xf32>
    %c0_7 = arith.constant 0 : index
    %5 = memref.load %arg2[%c0_7] : memref<4xf32, #tpu.memory_space<smem>>
    %6 = vector.broadcast %5 : f32 to vector<2x16x16xf32>
    %7 = arith.mulf %4, %6 : vector<2x16x16xf32>
    %c0_8 = arith.constant 0 : index
    %8 = memref.load %arg3[%c0_8] : memref<4xf32, #tpu.memory_space<smem>>
    %9 = vector.broadcast %8 : f32 to vector<2x16x16xf32>
    %10 = arith.addf %7, %9 : vector<2x16x16xf32>
    %cst_9 = arith.constant 0.000000e+00 : f32
    %11 = vector.broadcast %cst_9 : f32 to vector<2x16x16xf32>
    %12 = arith.maximumf %10, %11 : vector<2x16x16xf32>
    %13 = vector.extract_strided_slice %2 {offsets = [0, 1, 0, 0], sizes = [2, 1, 16, 16], strides = [1, 1, 1, 1]} : vector<2x4x16x16xf32> to vector<2x1x16x16xf32>
    %14 = vector.shape_cast %13 : vector<2x1x16x16xf32> to vector<2x16x16xf32>
    %c1 = arith.constant 1 : index
    %15 = memref.load %arg2[%c1] : memref<4xf32, #tpu.memory_space<smem>>
    %16 = vector.broadcast %15 : f32 to vector<2x16x16xf32>
    %17 = arith.mulf %14, %16 : vector<2x16x16xf32>
    %c1_10 = arith.constant 1 : index
    %18 = memref.load %arg3[%c1_10] : memref<4xf32, #tpu.memory_space<smem>>
    %19 = vector.broadcast %18 : f32 to vector<2x16x16xf32>
    %20 = arith.addf %17, %19 : vector<2x16x16xf32>
    %cst_11 = arith.constant 0.000000e+00 : f32
    %21 = vector.broadcast %cst_11 : f32 to vector<2x16x16xf32>
    %22 = arith.maximumf %20, %21 : vector<2x16x16xf32>
    %23 = vector.extract_strided_slice %2 {offsets = [0, 2, 0, 0], sizes = [2, 1, 16, 16], strides = [1, 1, 1, 1]} : vector<2x4x16x16xf32> to vector<2x1x16x16xf32>
    %24 = vector.shape_cast %23 : vector<2x1x16x16xf32> to vector<2x16x16xf32>
    %c2 = arith.constant 2 : index
    %25 = memref.load %arg2[%c2] : memref<4xf32, #tpu.memory_space<smem>>
    %26 = vector.broadcast %25 : f32 to vector<2x16x16xf32>
    %27 = arith.mulf %24, %26 : vector<2x16x16xf32>
    %c2_12 = arith.constant 2 : index
    %28 = memref.load %arg3[%c2_12] : memref<4xf32, #tpu.memory_space<smem>>
    %29 = vector.broadcast %28 : f32 to vector<2x16x16xf32>
    %30 = arith.addf %27, %29 : vector<2x16x16xf32>
    %cst_13 = arith.constant 0.000000e+00 : f32
    %31 = vector.broadcast %cst_13 : f32 to vector<2x16x16xf32>
    %32 = arith.maximumf %30, %31 : vector<2x16x16xf32>
    %33 = vector.extract_strided_slice %2 {offsets = [0, 3, 0, 0], sizes = [2, 1, 16, 16], strides = [1, 1, 1, 1]} : vector<2x4x16x16xf32> to vector<2x1x16x16xf32>
    %34 = vector.shape_cast %33 : vector<2x1x16x16xf32> to vector<2x16x16xf32>
    %c3 = arith.constant 3 : index
    %35 = memref.load %arg2[%c3] : memref<4xf32, #tpu.memory_space<smem>>
    %36 = vector.broadcast %35 : f32 to vector<2x16x16xf32>
    %37 = arith.mulf %34, %36 : vector<2x16x16xf32>
    %c3_14 = arith.constant 3 : index
    %38 = memref.load %arg3[%c3_14] : memref<4xf32, #tpu.memory_space<smem>>
    %39 = vector.broadcast %38 : f32 to vector<2x16x16xf32>
    %40 = arith.addf %37, %39 : vector<2x16x16xf32>
    %cst_15 = arith.constant 0.000000e+00 : f32
    %41 = vector.broadcast %cst_15 : f32 to vector<2x16x16xf32>
    %42 = arith.maximumf %40, %41 : vector<2x16x16xf32>
    %c0_16 = arith.constant 0 : index
    %c0_17 = arith.constant 0 : index
    %43 = memref.load %arg4[%c0_16, %c0_17] : memref<4x8xf32, #tpu.memory_space<smem>>
    %44 = vector.broadcast %43 : f32 to vector<2x16x16xf32>
    %45 = arith.mulf %12, %44 : vector<2x16x16xf32>
    %c0_18 = arith.constant 0 : index
    %46 = memref.load %arg5[%c0_18] : memref<8xf32, #tpu.memory_space<smem>>
    %47 = vector.broadcast %46 : f32 to vector<2x16x16xf32>
    %48 = arith.addf %45, %47 : vector<2x16x16xf32>
    %c1_19 = arith.constant 1 : index
    %c0_20 = arith.constant 0 : index
    %49 = memref.load %arg4[%c1_19, %c0_20] : memref<4x8xf32, #tpu.memory_space<smem>>
    %50 = vector.broadcast %49 : f32 to vector<2x16x16xf32>
    %51 = arith.mulf %22, %50 : vector<2x16x16xf32>
    %52 = arith.addf %48, %51 : vector<2x16x16xf32>
    %c2_21 = arith.constant 2 : index
    %c0_22 = arith.constant 0 : index
    %53 = memref.load %arg4[%c2_21, %c0_22] : memref<4x8xf32, #tpu.memory_space<smem>>
    %54 = vector.broadcast %53 : f32 to vector<2x16x16xf32>
    %55 = arith.mulf %32, %54 : vector<2x16x16xf32>
    %56 = arith.addf %52, %55 : vector<2x16x16xf32>
    %c3_23 = arith.constant 3 : index
    %c0_24 = arith.constant 0 : index
    %57 = memref.load %arg4[%c3_23, %c0_24] : memref<4x8xf32, #tpu.memory_space<smem>>
    %58 = vector.broadcast %57 : f32 to vector<2x16x16xf32>
    %59 = arith.mulf %42, %58 : vector<2x16x16xf32>
    %60 = arith.addf %56, %59 : vector<2x16x16xf32>
    %c0_25 = arith.constant 0 : index
    %c0_26 = arith.constant 0 : index
    %c1_27 = arith.constant 1 : index
    %c1_28 = arith.constant 1 : index
    %61 = vector.load %arg10[%c0_25, %c0_26, %c1_27, %c1_28] : memref<8x2x18x18xf32, #tpu.memory_space<vmem>>, vector<1x2x16x16xf32>
    %62 = vector.shape_cast %61 : vector<1x2x16x16xf32> to vector<2x16x16xf32>
    %63 = vector.shape_cast %60 : vector<2x16x16xf32> to vector<1x2x16x16xf32>
    tpu.vector_store %arg10[%c0_25, %c0_26, %c1_27, %c1_28], %63 {strides = array<i32>} : memref<8x2x18x18xf32, #tpu.memory_space<vmem>>, vector<1x2x16x16xf32>,
    %c0_29 = arith.constant 0 : index
    %c1_30 = arith.constant 1 : index
    %64 = memref.load %arg4[%c0_29, %c1_30] : memref<4x8xf32, #tpu.memory_space<smem>>
    %65 = vector.broadcast %64 : f32 to vector<2x16x16xf32>
    %66 = arith.mulf %12, %65 : vector<2x16x16xf32>
    %c1_31 = arith.constant 1 : index
    %67 = memref.load %arg5[%c1_31] : memref<8xf32, #tpu.memory_space<smem>>
    %68 = vector.broadcast %67 : f32 to vector<2x16x16xf32>
    %69 = arith.addf %66, %68 : vector<2x16x16xf32>
    %c1_32 = arith.constant 1 : index
    %c1_33 = arith.constant 1 : index
    %70 = memref.load %arg4[%c1_32, %c1_33] : memref<4x8xf32, #tpu.memory_space<smem>>
    %71 = vector.broadcast %70 : f32 to vector<2x16x16xf32>
    %72 = arith.mulf %22, %71 : vector<2x16x16xf32>
    %73 = arith.addf %69, %72 : vector<2x16x16xf32>
    %c2_34 = arith.constant 2 : index
    %c1_35 = arith.constant 1 : index
    %74 = memref.load %arg4[%c2_34, %c1_35] : memref<4x8xf32, #tpu.memory_space<smem>>
    %75 = vector.broadcast %74 : f32 to vector<2x16x16xf32>
    %76 = arith.mulf %32, %75 : vector<2x16x16xf32>
    %77 = arith.addf %73, %76 : vector<2x16x16xf32>
    %c3_36 = arith.constant 3 : index
    %c1_37 = arith.constant 1 : index
    %78 = memref.load %arg4[%c3_36, %c1_37] : memref<4x8xf32, #tpu.memory_space<smem>>
    %79 = vector.broadcast %78 : f32 to vector<2x16x16xf32>
    %80 = arith.mulf %42, %79 : vector<2x16x16xf32>
    %81 = arith.addf %77, %80 : vector<2x16x16xf32>
    %c1_38 = arith.constant 1 : index
    %c0_39 = arith.constant 0 : index
    %c1_40 = arith.constant 1 : index
    %c1_41 = arith.constant 1 : index
    %82 = vector.load %arg10[%c1_38, %c0_39, %c1_40, %c1_41] : memref<8x2x18x18xf32, #tpu.memory_space<vmem>>, vector<1x2x16x16xf32>
    %83 = vector.shape_cast %82 : vector<1x2x16x16xf32> to vector<2x16x16xf32>
    %84 = vector.shape_cast %81 : vector<2x16x16xf32> to vector<1x2x16x16xf32>
    tpu.vector_store %arg10[%c1_38, %c0_39, %c1_40, %c1_41], %84 {strides = array<i32>} : memref<8x2x18x18xf32, #tpu.memory_space<vmem>>, vector<1x2x16x16xf32>,
    %c0_42 = arith.constant 0 : index
    %c2_43 = arith.constant 2 : index
    %85 = memref.load %arg4[%c0_42, %c2_43] : memref<4x8xf32, #tpu.memory_space<smem>>
    %86 = vector.broadcast %85 : f32 to vector<2x16x16xf32>
    %87 = arith.mulf %12, %86 : vector<2x16x16xf32>
    %c2_44 = arith.constant 2 : index
    %88 = memref.load %arg5[%c2_44] : memref<8xf32, #tpu.memory_space<smem>>
    %89 = vector.broadcast %88 : f32 to vector<2x16x16xf32>
    %90 = arith.addf %87, %89 : vector<2x16x16xf32>
    %c1_45 = arith.constant 1 : index
    %c2_46 = arith.constant 2 : index
    %91 = memref.load %arg4[%c1_45, %c2_46] : memref<4x8xf32, #tpu.memory_space<smem>>
    %92 = vector.broadcast %91 : f32 to vector<2x16x16xf32>
    %93 = arith.mulf %22, %92 : vector<2x16x16xf32>
    %94 = arith.addf %90, %93 : vector<2x16x16xf32>
    %c2_47 = arith.constant 2 : index
    %c2_48 = arith.constant 2 : index
    %95 = memref.load %arg4[%c2_47, %c2_48] : memref<4x8xf32, #tpu.memory_space<smem>>
    %96 = vector.broadcast %95 : f32 to vector<2x16x16xf32>
    %97 = arith.mulf %32, %96 : vector<2x16x16xf32>
    %98 = arith.addf %94, %97 : vector<2x16x16xf32>
    %c3_49 = arith.constant 3 : index
    %c2_50 = arith.constant 2 : index
    %99 = memref.load %arg4[%c3_49, %c2_50] : memref<4x8xf32, #tpu.memory_space<smem>>
    %100 = vector.broadcast %99 : f32 to vector<2x16x16xf32>
    %101 = arith.mulf %42, %100 : vector<2x16x16xf32>
    %102 = arith.addf %98, %101 : vector<2x16x16xf32>
    %c2_51 = arith.constant 2 : index
    %c0_52 = arith.constant 0 : index
    %c1_53 = arith.constant 1 : index
    %c1_54 = arith.constant 1 : index
    %103 = vector.load %arg10[%c2_51, %c0_52, %c1_53, %c1_54] : memref<8x2x18x18xf32, #tpu.memory_space<vmem>>, vector<1x2x16x16xf32>
    %104 = vector.shape_cast %103 : vector<1x2x16x16xf32> to vector<2x16x16xf32>
    %105 = vector.shape_cast %102 : vector<2x16x16xf32> to vector<1x2x16x16xf32>
    tpu.vector_store %arg10[%c2_51, %c0_52, %c1_53, %c1_54], %105 {strides = array<i32>} : memref<8x2x18x18xf32, #tpu.memory_space<vmem>>, vector<1x2x16x16xf32>,
    %c0_55 = arith.constant 0 : index
    %c3_56 = arith.constant 3 : index
    %106 = memref.load %arg4[%c0_55, %c3_56] : memref<4x8xf32, #tpu.memory_space<smem>>
    %107 = vector.broadcast %106 : f32 to vector<2x16x16xf32>
    %108 = arith.mulf %12, %107 : vector<2x16x16xf32>
    %c3_57 = arith.constant 3 : index
    %109 = memref.load %arg5[%c3_57] : memref<8xf32, #tpu.memory_space<smem>>
    %110 = vector.broadcast %109 : f32 to vector<2x16x16xf32>
    %111 = arith.addf %108, %110 : vector<2x16x16xf32>
    %c1_58 = arith.constant 1 : index
    %c3_59 = arith.constant 3 : index
    %112 = memref.load %arg4[%c1_58, %c3_59] : memref<4x8xf32, #tpu.memory_space<smem>>
    %113 = vector.broadcast %112 : f32 to vector<2x16x16xf32>
    %114 = arith.mulf %22, %113 : vector<2x16x16xf32>
    %115 = arith.addf %111, %114 : vector<2x16x16xf32>
    %c2_60 = arith.constant 2 : index
    %c3_61 = arith.constant 3 : index
    %116 = memref.load %arg4[%c2_60, %c3_61] : memref<4x8xf32, #tpu.memory_space<smem>>
    %117 = vector.broadcast %116 : f32 to vector<2x16x16xf32>
    %118 = arith.mulf %32, %117 : vector<2x16x16xf32>
    %119 = arith.addf %115, %118 : vector<2x16x16xf32>
    %c3_62 = arith.constant 3 : index
    %c3_63 = arith.constant 3 : index
    %120 = memref.load %arg4[%c3_62, %c3_63] : memref<4x8xf32, #tpu.memory_space<smem>>
    %121 = vector.broadcast %120 : f32 to vector<2x16x16xf32>
    %122 = arith.mulf %42, %121 : vector<2x16x16xf32>
    %123 = arith.addf %119, %122 : vector<2x16x16xf32>
    %c3_64 = arith.constant 3 : index
    %c0_65 = arith.constant 0 : index
    %c1_66 = arith.constant 1 : index
    %c1_67 = arith.constant 1 : index
    %124 = vector.load %arg10[%c3_64, %c0_65, %c1_66, %c1_67] : memref<8x2x18x18xf32, #tpu.memory_space<vmem>>, vector<1x2x16x16xf32>
    %125 = vector.shape_cast %124 : vector<1x2x16x16xf32> to vector<2x16x16xf32>
    %126 = vector.shape_cast %123 : vector<2x16x16xf32> to vector<1x2x16x16xf32>
    tpu.vector_store %arg10[%c3_64, %c0_65, %c1_66, %c1_67], %126 {strides = array<i32>} : memref<8x2x18x18xf32, #tpu.memory_space<vmem>>, vector<1x2x16x16xf32>,
    %c0_68 = arith.constant 0 : index
    %c4 = arith.constant 4 : index
    %127 = memref.load %arg4[%c0_68, %c4] : memref<4x8xf32, #tpu.memory_space<smem>>
    %128 = vector.broadcast %127 : f32 to vector<2x16x16xf32>
    %129 = arith.mulf %12, %128 : vector<2x16x16xf32>
    %c4_69 = arith.constant 4 : index
    %130 = memref.load %arg5[%c4_69] : memref<8xf32, #tpu.memory_space<smem>>
    %131 = vector.broadcast %130 : f32 to vector<2x16x16xf32>
    %132 = arith.addf %129, %131 : vector<2x16x16xf32>
    %c1_70 = arith.constant 1 : index
    %c4_71 = arith.constant 4 : index
    %133 = memref.load %arg4[%c1_70, %c4_71] : memref<4x8xf32, #tpu.memory_space<smem>>
    %134 = vector.broadcast %133 : f32 to vector<2x16x16xf32>
    %135 = arith.mulf %22, %134 : vector<2x16x16xf32>
    %136 = arith.addf %132, %135 : vector<2x16x16xf32>
    %c2_72 = arith.constant 2 : index
    %c4_73 = arith.constant 4 : index
    %137 = memref.load %arg4[%c2_72, %c4_73] : memref<4x8xf32, #tpu.memory_space<smem>>
    %138 = vector.broadcast %137 : f32 to vector<2x16x16xf32>
    %139 = arith.mulf %32, %138 : vector<2x16x16xf32>
    %140 = arith.addf %136, %139 : vector<2x16x16xf32>
    %c3_74 = arith.constant 3 : index
    %c4_75 = arith.constant 4 : index
    %141 = memref.load %arg4[%c3_74, %c4_75] : memref<4x8xf32, #tpu.memory_space<smem>>
    %142 = vector.broadcast %141 : f32 to vector<2x16x16xf32>
    %143 = arith.mulf %42, %142 : vector<2x16x16xf32>
    %144 = arith.addf %140, %143 : vector<2x16x16xf32>
    %c4_76 = arith.constant 4 : index
    %c0_77 = arith.constant 0 : index
    %c1_78 = arith.constant 1 : index
    %c1_79 = arith.constant 1 : index
    %145 = vector.load %arg10[%c4_76, %c0_77, %c1_78, %c1_79] : memref<8x2x18x18xf32, #tpu.memory_space<vmem>>, vector<1x2x16x16xf32>
    %146 = vector.shape_cast %145 : vector<1x2x16x16xf32> to vector<2x16x16xf32>
    %147 = vector.shape_cast %144 : vector<2x16x16xf32> to vector<1x2x16x16xf32>
    tpu.vector_store %arg10[%c4_76, %c0_77, %c1_78, %c1_79], %147 {strides = array<i32>} : memref<8x2x18x18xf32, #tpu.memory_space<vmem>>, vector<1x2x16x16xf32>,
    %c0_80 = arith.constant 0 : index
    %c5 = arith.constant 5 : index
    %148 = memref.load %arg4[%c0_80, %c5] : memref<4x8xf32, #tpu.memory_space<smem>>
    %149 = vector.broadcast %148 : f32 to vector<2x16x16xf32>
    %150 = arith.mulf %12, %149 : vector<2x16x16xf32>
    %c5_81 = arith.constant 5 : index
    %151 = memref.load %arg5[%c5_81] : memref<8xf32, #tpu.memory_space<smem>>
    %152 = vector.broadcast %151 : f32 to vector<2x16x16xf32>
    %153 = arith.addf %150, %152 : vector<2x16x16xf32>
    %c1_82 = arith.constant 1 : index
    %c5_83 = arith.constant 5 : index
    %154 = memref.load %arg4[%c1_82, %c5_83] : memref<4x8xf32, #tpu.memory_space<smem>>
    %155 = vector.broadcast %154 : f32 to vector<2x16x16xf32>
    %156 = arith.mulf %22, %155 : vector<2x16x16xf32>
    %157 = arith.addf %153, %156 : vector<2x16x16xf32>
    %c2_84 = arith.constant 2 : index
    %c5_85 = arith.constant 5 : index
    %158 = memref.load %arg4[%c2_84, %c5_85] : memref<4x8xf32, #tpu.memory_space<smem>>
    %159 = vector.broadcast %158 : f32 to vector<2x16x16xf32>
    %160 = arith.mulf %32, %159 : vector<2x16x16xf32>
    %161 = arith.addf %157, %160 : vector<2x16x16xf32>
    %c3_86 = arith.constant 3 : index
    %c5_87 = arith.constant 5 : index
    %162 = memref.load %arg4[%c3_86, %c5_87] : memref<4x8xf32, #tpu.memory_space<smem>>
    %163 = vector.broadcast %162 : f32 to vector<2x16x16xf32>
    %164 = arith.mulf %42, %163 : vector<2x16x16xf32>
    %165 = arith.addf %161, %164 : vector<2x16x16xf32>
    %c5_88 = arith.constant 5 : index
    %c0_89 = arith.constant 0 : index
    %c1_90 = arith.constant 1 : index
    %c1_91 = arith.constant 1 : index
    %166 = vector.load %arg10[%c5_88, %c0_89, %c1_90, %c1_91] : memref<8x2x18x18xf32, #tpu.memory_space<vmem>>, vector<1x2x16x16xf32>
    %167 = vector.shape_cast %166 : vector<1x2x16x16xf32> to vector<2x16x16xf32>
    %168 = vector.shape_cast %165 : vector<2x16x16xf32> to vector<1x2x16x16xf32>
    tpu.vector_store %arg10[%c5_88, %c0_89, %c1_90, %c1_91], %168 {strides = array<i32>} : memref<8x2x18x18xf32, #tpu.memory_space<vmem>>, vector<1x2x16x16xf32>,
    %c0_92 = arith.constant 0 : index
    %c6 = arith.constant 6 : index
    %169 = memref.load %arg4[%c0_92, %c6] : memref<4x8xf32, #tpu.memory_space<smem>>
    %170 = vector.broadcast %169 : f32 to vector<2x16x16xf32>
    %171 = arith.mulf %12, %170 : vector<2x16x16xf32>
    %c6_93 = arith.constant 6 : index
    %172 = memref.load %arg5[%c6_93] : memref<8xf32, #tpu.memory_space<smem>>
    %173 = vector.broadcast %172 : f32 to vector<2x16x16xf32>
    %174 = arith.addf %171, %173 : vector<2x16x16xf32>
    %c1_94 = arith.constant 1 : index
    %c6_95 = arith.constant 6 : index
    %175 = memref.load %arg4[%c1_94, %c6_95] : memref<4x8xf32, #tpu.memory_space<smem>>
    %176 = vector.broadcast %175 : f32 to vector<2x16x16xf32>
    %177 = arith.mulf %22, %176 : vector<2x16x16xf32>
    %178 = arith.addf %174, %177 : vector<2x16x16xf32>
    %c2_96 = arith.constant 2 : index
    %c6_97 = arith.constant 6 : index
    %179 = memref.load %arg4[%c2_96, %c6_97] : memref<4x8xf32, #tpu.memory_space<smem>>
    %180 = vector.broadcast %179 : f32 to vector<2x16x16xf32>
    %181 = arith.mulf %32, %180 : vector<2x16x16xf32>
    %182 = arith.addf %178, %181 : vector<2x16x16xf32>
    %c3_98 = arith.constant 3 : index
    %c6_99 = arith.constant 6 : index
    %183 = memref.load %arg4[%c3_98, %c6_99] : memref<4x8xf32, #tpu.memory_space<smem>>
    %184 = vector.broadcast %183 : f32 to vector<2x16x16xf32>
    %185 = arith.mulf %42, %184 : vector<2x16x16xf32>
    %186 = arith.addf %182, %185 : vector<2x16x16xf32>
    %c6_100 = arith.constant 6 : index
    %c0_101 = arith.constant 0 : index
    %c1_102 = arith.constant 1 : index
    %c1_103 = arith.constant 1 : index
    %187 = vector.load %arg10[%c6_100, %c0_101, %c1_102, %c1_103] : memref<8x2x18x18xf32, #tpu.memory_space<vmem>>, vector<1x2x16x16xf32>
    %188 = vector.shape_cast %187 : vector<1x2x16x16xf32> to vector<2x16x16xf32>
    %189 = vector.shape_cast %186 : vector<2x16x16xf32> to vector<1x2x16x16xf32>
    tpu.vector_store %arg10[%c6_100, %c0_101, %c1_102, %c1_103], %189 {strides = array<i32>} : memref<8x2x18x18xf32, #tpu.memory_space<vmem>>, vector<1x2x16x16xf32>,
    %c0_104 = arith.constant 0 : index
    %c7 = arith.constant 7 : index
    %190 = memref.load %arg4[%c0_104, %c7] : memref<4x8xf32, #tpu.memory_space<smem>>
    %191 = vector.broadcast %190 : f32 to vector<2x16x16xf32>
    %192 = arith.mulf %12, %191 : vector<2x16x16xf32>
    %c7_105 = arith.constant 7 : index
    %193 = memref.load %arg5[%c7_105] : memref<8xf32, #tpu.memory_space<smem>>
    %194 = vector.broadcast %193 : f32 to vector<2x16x16xf32>
    %195 = arith.addf %192, %194 : vector<2x16x16xf32>
    %c1_106 = arith.constant 1 : index
    %c7_107 = arith.constant 7 : index
    %196 = memref.load %arg4[%c1_106, %c7_107] : memref<4x8xf32, #tpu.memory_space<smem>>
    %197 = vector.broadcast %196 : f32 to vector<2x16x16xf32>
    %198 = arith.mulf %22, %197 : vector<2x16x16xf32>
    %199 = arith.addf %195, %198 : vector<2x16x16xf32>
    %c2_108 = arith.constant 2 : index
    %c7_109 = arith.constant 7 : index
    %200 = memref.load %arg4[%c2_108, %c7_109] : memref<4x8xf32, #tpu.memory_space<smem>>
    %201 = vector.broadcast %200 : f32 to vector<2x16x16xf32>
    %202 = arith.mulf %32, %201 : vector<2x16x16xf32>
    %203 = arith.addf %199, %202 : vector<2x16x16xf32>
    %c3_110 = arith.constant 3 : index
    %c7_111 = arith.constant 7 : index
    %204 = memref.load %arg4[%c3_110, %c7_111] : memref<4x8xf32, #tpu.memory_space<smem>>
    %205 = vector.broadcast %204 : f32 to vector<2x16x16xf32>
    %206 = arith.mulf %42, %205 : vector<2x16x16xf32>
    %207 = arith.addf %203, %206 : vector<2x16x16xf32>
    %c7_112 = arith.constant 7 : index
    %c0_113 = arith.constant 0 : index
    %c1_114 = arith.constant 1 : index
    %c1_115 = arith.constant 1 : index
    %208 = vector.load %arg10[%c7_112, %c0_113, %c1_114, %c1_115] : memref<8x2x18x18xf32, #tpu.memory_space<vmem>>, vector<1x2x16x16xf32>
    %209 = vector.shape_cast %208 : vector<1x2x16x16xf32> to vector<2x16x16xf32>
    %210 = vector.shape_cast %207 : vector<2x16x16xf32> to vector<1x2x16x16xf32>
    tpu.vector_store %arg10[%c7_112, %c0_113, %c1_114, %c1_115], %210 {strides = array<i32>} : memref<8x2x18x18xf32, #tpu.memory_space<vmem>>, vector<1x2x16x16xf32>,
    %c0_116 = arith.constant 0 : index
    %c0_117 = arith.constant 0 : index
    %c0_118 = arith.constant 0 : index
    %c0_119 = arith.constant 0 : index
    %211 = vector.load %arg10[%c0_116, %c0_117, %c0_118, %c0_119] : memref<8x2x18x18xf32, #tpu.memory_space<vmem>>, vector<1x2x16x16xf32>
    %212 = vector.shape_cast %211 : vector<1x2x16x16xf32> to vector<2x16x16xf32>
    %c0_120 = arith.constant 0 : index
    %c0_121 = arith.constant 0 : index
    %213 = memref.load %arg6[%c0_120, %c0_121] : memref<9x8xf32, #tpu.memory_space<smem>>
    %214 = vector.broadcast %213 : f32 to vector<2x16x16xf32>
    %215 = arith.mulf %212, %214 : vector<2x16x16xf32>
    %c0_122 = arith.constant 0 : index
    %c0_123 = arith.constant 0 : index
    %c0_124 = arith.constant 0 : index
    %c1_125 = arith.constant 1 : index
    %216 = vector.load %arg10[%c0_122, %c0_123, %c0_124, %c1_125] : memref<8x2x18x18xf32, #tpu.memory_space<vmem>>, vector<1x2x16x16xf32>
    %217 = vector.shape_cast %216 : vector<1x2x16x16xf32> to vector<2x16x16xf32>
    %c1_126 = arith.constant 1 : index
    %c0_127 = arith.constant 0 : index
    %218 = memref.load %arg6[%c1_126, %c0_127] : memref<9x8xf32, #tpu.memory_space<smem>>
    %219 = vector.broadcast %218 : f32 to vector<2x16x16xf32>
    %220 = arith.mulf %217, %219 : vector<2x16x16xf32>
    %221 = arith.addf %215, %220 : vector<2x16x16xf32>
    %c0_128 = arith.constant 0 : index
    %c0_129 = arith.constant 0 : index
    %c0_130 = arith.constant 0 : index
    %c2_131 = arith.constant 2 : index
    %222 = vector.load %arg10[%c0_128, %c0_129, %c0_130, %c2_131] : memref<8x2x18x18xf32, #tpu.memory_space<vmem>>, vector<1x2x16x16xf32>
    %223 = vector.shape_cast %222 : vector<1x2x16x16xf32> to vector<2x16x16xf32>
    %c2_132 = arith.constant 2 : index
    %c0_133 = arith.constant 0 : index
    %224 = memref.load %arg6[%c2_132, %c0_133] : memref<9x8xf32, #tpu.memory_space<smem>>
    %225 = vector.broadcast %224 : f32 to vector<2x16x16xf32>
    %226 = arith.mulf %223, %225 : vector<2x16x16xf32>
    %227 = arith.addf %221, %226 : vector<2x16x16xf32>
    %c0_134 = arith.constant 0 : index
    %c0_135 = arith.constant 0 : index
    %c1_136 = arith.constant 1 : index
    %c0_137 = arith.constant 0 : index
    %228 = vector.load %arg10[%c0_134, %c0_135, %c1_136, %c0_137] : memref<8x2x18x18xf32, #tpu.memory_space<vmem>>, vector<1x2x16x16xf32>
    %229 = vector.shape_cast %228 : vector<1x2x16x16xf32> to vector<2x16x16xf32>
    %c3_138 = arith.constant 3 : index
    %c0_139 = arith.constant 0 : index
    %230 = memref.load %arg6[%c3_138, %c0_139] : memref<9x8xf32, #tpu.memory_space<smem>>
    %231 = vector.broadcast %230 : f32 to vector<2x16x16xf32>
    %232 = arith.mulf %229, %231 : vector<2x16x16xf32>
    %233 = arith.addf %227, %232 : vector<2x16x16xf32>
    %c0_140 = arith.constant 0 : index
    %c0_141 = arith.constant 0 : index
    %c1_142 = arith.constant 1 : index
    %c1_143 = arith.constant 1 : index
    %234 = vector.load %arg10[%c0_140, %c0_141, %c1_142, %c1_143] : memref<8x2x18x18xf32, #tpu.memory_space<vmem>>, vector<1x2x16x16xf32>
    %235 = vector.shape_cast %234 : vector<1x2x16x16xf32> to vector<2x16x16xf32>
    %c4_144 = arith.constant 4 : index
    %c0_145 = arith.constant 0 : index
    %236 = memref.load %arg6[%c4_144, %c0_145] : memref<9x8xf32, #tpu.memory_space<smem>>
    %237 = vector.broadcast %236 : f32 to vector<2x16x16xf32>
    %238 = arith.mulf %235, %237 : vector<2x16x16xf32>
    %239 = arith.addf %233, %238 : vector<2x16x16xf32>
    %c0_146 = arith.constant 0 : index
    %c0_147 = arith.constant 0 : index
    %c1_148 = arith.constant 1 : index
    %c2_149 = arith.constant 2 : index
    %240 = vector.load %arg10[%c0_146, %c0_147, %c1_148, %c2_149] : memref<8x2x18x18xf32, #tpu.memory_space<vmem>>, vector<1x2x16x16xf32>
    %241 = vector.shape_cast %240 : vector<1x2x16x16xf32> to vector<2x16x16xf32>
    %c5_150 = arith.constant 5 : index
    %c0_151 = arith.constant 0 : index
    %242 = memref.load %arg6[%c5_150, %c0_151] : memref<9x8xf32, #tpu.memory_space<smem>>
    %243 = vector.broadcast %242 : f32 to vector<2x16x16xf32>
    %244 = arith.mulf %241, %243 : vector<2x16x16xf32>
    %245 = arith.addf %239, %244 : vector<2x16x16xf32>
    %c0_152 = arith.constant 0 : index
    %c0_153 = arith.constant 0 : index
    %c2_154 = arith.constant 2 : index
    %c0_155 = arith.constant 0 : index
    %246 = vector.load %arg10[%c0_152, %c0_153, %c2_154, %c0_155] : memref<8x2x18x18xf32, #tpu.memory_space<vmem>>, vector<1x2x16x16xf32>
    %247 = vector.shape_cast %246 : vector<1x2x16x16xf32> to vector<2x16x16xf32>
    %c6_156 = arith.constant 6 : index
    %c0_157 = arith.constant 0 : index
    %248 = memref.load %arg6[%c6_156, %c0_157] : memref<9x8xf32, #tpu.memory_space<smem>>
    %249 = vector.broadcast %248 : f32 to vector<2x16x16xf32>
    %250 = arith.mulf %247, %249 : vector<2x16x16xf32>
    %251 = arith.addf %245, %250 : vector<2x16x16xf32>
    %c0_158 = arith.constant 0 : index
    %c0_159 = arith.constant 0 : index
    %c2_160 = arith.constant 2 : index
    %c1_161 = arith.constant 1 : index
    %252 = vector.load %arg10[%c0_158, %c0_159, %c2_160, %c1_161] : memref<8x2x18x18xf32, #tpu.memory_space<vmem>>, vector<1x2x16x16xf32>
    %253 = vector.shape_cast %252 : vector<1x2x16x16xf32> to vector<2x16x16xf32>
    %c7_162 = arith.constant 7 : index
    %c0_163 = arith.constant 0 : index
    %254 = memref.load %arg6[%c7_162, %c0_163] : memref<9x8xf32, #tpu.memory_space<smem>>
    %255 = vector.broadcast %254 : f32 to vector<2x16x16xf32>
    %256 = arith.mulf %253, %255 : vector<2x16x16xf32>
    %257 = arith.addf %251, %256 : vector<2x16x16xf32>
    %c0_164 = arith.constant 0 : index
    %c0_165 = arith.constant 0 : index
    %c2_166 = arith.constant 2 : index
    %c2_167 = arith.constant 2 : index
    %258 = vector.load %arg10[%c0_164, %c0_165, %c2_166, %c2_167] : memref<8x2x18x18xf32, #tpu.memory_space<vmem>>, vector<1x2x16x16xf32>
    %259 = vector.shape_cast %258 : vector<1x2x16x16xf32> to vector<2x16x16xf32>
    %c8 = arith.constant 8 : index
    %c0_168 = arith.constant 0 : index
    %260 = memref.load %arg6[%c8, %c0_168] : memref<9x8xf32, #tpu.memory_space<smem>>
    %261 = vector.broadcast %260 : f32 to vector<2x16x16xf32>
    %262 = arith.mulf %259, %261 : vector<2x16x16xf32>
    %263 = arith.addf %257, %262 : vector<2x16x16xf32>
    %c0_169 = arith.constant 0 : index
    %c0_170 = arith.constant 0 : index
    %264 = memref.load %arg7[%c0_169, %c0_170] : memref<8x4xf32, #tpu.memory_space<smem>>
    %265 = vector.broadcast %264 : f32 to vector<2x16x16xf32>
    %266 = arith.mulf %263, %265 : vector<2x16x16xf32>
    %c0_171 = arith.constant 0 : index
    %c1_172 = arith.constant 1 : index
    %267 = memref.load %arg7[%c0_171, %c1_172] : memref<8x4xf32, #tpu.memory_space<smem>>
    %268 = vector.broadcast %267 : f32 to vector<2x16x16xf32>
    %269 = arith.mulf %263, %268 : vector<2x16x16xf32>
    %c0_173 = arith.constant 0 : index
    %c2_174 = arith.constant 2 : index
    %270 = memref.load %arg7[%c0_173, %c2_174] : memref<8x4xf32, #tpu.memory_space<smem>>
    %271 = vector.broadcast %270 : f32 to vector<2x16x16xf32>
    %272 = arith.mulf %263, %271 : vector<2x16x16xf32>
    %c0_175 = arith.constant 0 : index
    %c3_176 = arith.constant 3 : index
    %273 = memref.load %arg7[%c0_175, %c3_176] : memref<8x4xf32, #tpu.memory_space<smem>>
    %274 = vector.broadcast %273 : f32 to vector<2x16x16xf32>
    %275 = arith.mulf %263, %274 : vector<2x16x16xf32>
    %c1_177 = arith.constant 1 : index
    %c0_178 = arith.constant 0 : index
    %c0_179 = arith.constant 0 : index
    %c0_180 = arith.constant 0 : index
    %276 = vector.load %arg10[%c1_177, %c0_178, %c0_179, %c0_180] : memref<8x2x18x18xf32, #tpu.memory_space<vmem>>, vector<1x2x16x16xf32>
    %277 = vector.shape_cast %276 : vector<1x2x16x16xf32> to vector<2x16x16xf32>
    %c0_181 = arith.constant 0 : index
    %c1_182 = arith.constant 1 : index
    %278 = memref.load %arg6[%c0_181, %c1_182] : memref<9x8xf32, #tpu.memory_space<smem>>
    %279 = vector.broadcast %278 : f32 to vector<2x16x16xf32>
    %280 = arith.mulf %277, %279 : vector<2x16x16xf32>
    %c1_183 = arith.constant 1 : index
    %c0_184 = arith.constant 0 : index
    %c0_185 = arith.constant 0 : index
    %c1_186 = arith.constant 1 : index
    %281 = vector.load %arg10[%c1_183, %c0_184, %c0_185, %c1_186] : memref<8x2x18x18xf32, #tpu.memory_space<vmem>>, vector<1x2x16x16xf32>
    %282 = vector.shape_cast %281 : vector<1x2x16x16xf32> to vector<2x16x16xf32>
    %c1_187 = arith.constant 1 : index
    %c1_188 = arith.constant 1 : index
    %283 = memref.load %arg6[%c1_187, %c1_188] : memref<9x8xf32, #tpu.memory_space<smem>>
    %284 = vector.broadcast %283 : f32 to vector<2x16x16xf32>
    %285 = arith.mulf %282, %284 : vector<2x16x16xf32>
    %286 = arith.addf %280, %285 : vector<2x16x16xf32>
    %c1_189 = arith.constant 1 : index
    %c0_190 = arith.constant 0 : index
    %c0_191 = arith.constant 0 : index
    %c2_192 = arith.constant 2 : index
    %287 = vector.load %arg10[%c1_189, %c0_190, %c0_191, %c2_192] : memref<8x2x18x18xf32, #tpu.memory_space<vmem>>, vector<1x2x16x16xf32>
    %288 = vector.shape_cast %287 : vector<1x2x16x16xf32> to vector<2x16x16xf32>
    %c2_193 = arith.constant 2 : index
    %c1_194 = arith.constant 1 : index
    %289 = memref.load %arg6[%c2_193, %c1_194] : memref<9x8xf32, #tpu.memory_space<smem>>
    %290 = vector.broadcast %289 : f32 to vector<2x16x16xf32>
    %291 = arith.mulf %288, %290 : vector<2x16x16xf32>
    %292 = arith.addf %286, %291 : vector<2x16x16xf32>
    %c1_195 = arith.constant 1 : index
    %c0_196 = arith.constant 0 : index
    %c1_197 = arith.constant 1 : index
    %c0_198 = arith.constant 0 : index
    %293 = vector.load %arg10[%c1_195, %c0_196, %c1_197, %c0_198] : memref<8x2x18x18xf32, #tpu.memory_space<vmem>>, vector<1x2x16x16xf32>
    %294 = vector.shape_cast %293 : vector<1x2x16x16xf32> to vector<2x16x16xf32>
    %c3_199 = arith.constant 3 : index
    %c1_200 = arith.constant 1 : index
    %295 = memref.load %arg6[%c3_199, %c1_200] : memref<9x8xf32, #tpu.memory_space<smem>>
    %296 = vector.broadcast %295 : f32 to vector<2x16x16xf32>
    %297 = arith.mulf %294, %296 : vector<2x16x16xf32>
    %298 = arith.addf %292, %297 : vector<2x16x16xf32>
    %c1_201 = arith.constant 1 : index
    %c0_202 = arith.constant 0 : index
    %c1_203 = arith.constant 1 : index
    %c1_204 = arith.constant 1 : index
    %299 = vector.load %arg10[%c1_201, %c0_202, %c1_203, %c1_204] : memref<8x2x18x18xf32, #tpu.memory_space<vmem>>, vector<1x2x16x16xf32>
    %300 = vector.shape_cast %299 : vector<1x2x16x16xf32> to vector<2x16x16xf32>
    %c4_205 = arith.constant 4 : index
    %c1_206 = arith.constant 1 : index
    %301 = memref.load %arg6[%c4_205, %c1_206] : memref<9x8xf32, #tpu.memory_space<smem>>
    %302 = vector.broadcast %301 : f32 to vector<2x16x16xf32>
    %303 = arith.mulf %300, %302 : vector<2x16x16xf32>
    %304 = arith.addf %298, %303 : vector<2x16x16xf32>
    %c1_207 = arith.constant 1 : index
    %c0_208 = arith.constant 0 : index
    %c1_209 = arith.constant 1 : index
    %c2_210 = arith.constant 2 : index
    %305 = vector.load %arg10[%c1_207, %c0_208, %c1_209, %c2_210] : memref<8x2x18x18xf32, #tpu.memory_space<vmem>>, vector<1x2x16x16xf32>
    %306 = vector.shape_cast %305 : vector<1x2x16x16xf32> to vector<2x16x16xf32>
    %c5_211 = arith.constant 5 : index
    %c1_212 = arith.constant 1 : index
    %307 = memref.load %arg6[%c5_211, %c1_212] : memref<9x8xf32, #tpu.memory_space<smem>>
    %308 = vector.broadcast %307 : f32 to vector<2x16x16xf32>
    %309 = arith.mulf %306, %308 : vector<2x16x16xf32>
    %310 = arith.addf %304, %309 : vector<2x16x16xf32>
    %c1_213 = arith.constant 1 : index
    %c0_214 = arith.constant 0 : index
    %c2_215 = arith.constant 2 : index
    %c0_216 = arith.constant 0 : index
    %311 = vector.load %arg10[%c1_213, %c0_214, %c2_215, %c0_216] : memref<8x2x18x18xf32, #tpu.memory_space<vmem>>, vector<1x2x16x16xf32>
    %312 = vector.shape_cast %311 : vector<1x2x16x16xf32> to vector<2x16x16xf32>
    %c6_217 = arith.constant 6 : index
    %c1_218 = arith.constant 1 : index
    %313 = memref.load %arg6[%c6_217, %c1_218] : memref<9x8xf32, #tpu.memory_space<smem>>
    %314 = vector.broadcast %313 : f32 to vector<2x16x16xf32>
    %315 = arith.mulf %312, %314 : vector<2x16x16xf32>
    %316 = arith.addf %310, %315 : vector<2x16x16xf32>
    %c1_219 = arith.constant 1 : index
    %c0_220 = arith.constant 0 : index
    %c2_221 = arith.constant 2 : index
    %c1_222 = arith.constant 1 : index
    %317 = vector.load %arg10[%c1_219, %c0_220, %c2_221, %c1_222] : memref<8x2x18x18xf32, #tpu.memory_space<vmem>>, vector<1x2x16x16xf32>
    %318 = vector.shape_cast %317 : vector<1x2x16x16xf32> to vector<2x16x16xf32>
    %c7_223 = arith.constant 7 : index
    %c1_224 = arith.constant 1 : index
    %319 = memref.load %arg6[%c7_223, %c1_224] : memref<9x8xf32, #tpu.memory_space<smem>>
    %320 = vector.broadcast %319 : f32 to vector<2x16x16xf32>
    %321 = arith.mulf %318, %320 : vector<2x16x16xf32>
    %322 = arith.addf %316, %321 : vector<2x16x16xf32>
    %c1_225 = arith.constant 1 : index
    %c0_226 = arith.constant 0 : index
    %c2_227 = arith.constant 2 : index
    %c2_228 = arith.constant 2 : index
    %323 = vector.load %arg10[%c1_225, %c0_226, %c2_227, %c2_228] : memref<8x2x18x18xf32, #tpu.memory_space<vmem>>, vector<1x2x16x16xf32>
    %324 = vector.shape_cast %323 : vector<1x2x16x16xf32> to vector<2x16x16xf32>
    %c8_229 = arith.constant 8 : index
    %c1_230 = arith.constant 1 : index
    %325 = memref.load %arg6[%c8_229, %c1_230] : memref<9x8xf32, #tpu.memory_space<smem>>
    %326 = vector.broadcast %325 : f32 to vector<2x16x16xf32>
    %327 = arith.mulf %324, %326 : vector<2x16x16xf32>
    %328 = arith.addf %322, %327 : vector<2x16x16xf32>
    %c1_231 = arith.constant 1 : index
    %c0_232 = arith.constant 0 : index
    %329 = memref.load %arg7[%c1_231, %c0_232] : memref<8x4xf32, #tpu.memory_space<smem>>
    %330 = vector.broadcast %329 : f32 to vector<2x16x16xf32>
    %331 = arith.mulf %328, %330 : vector<2x16x16xf32>
    %332 = arith.addf %266, %331 : vector<2x16x16xf32>
    %c1_233 = arith.constant 1 : index
    %c1_234 = arith.constant 1 : index
    %333 = memref.load %arg7[%c1_233, %c1_234] : memref<8x4xf32, #tpu.memory_space<smem>>
    %334 = vector.broadcast %333 : f32 to vector<2x16x16xf32>
    %335 = arith.mulf %328, %334 : vector<2x16x16xf32>
    %336 = arith.addf %269, %335 : vector<2x16x16xf32>
    %c1_235 = arith.constant 1 : index
    %c2_236 = arith.constant 2 : index
    %337 = memref.load %arg7[%c1_235, %c2_236] : memref<8x4xf32, #tpu.memory_space<smem>>
    %338 = vector.broadcast %337 : f32 to vector<2x16x16xf32>
    %339 = arith.mulf %328, %338 : vector<2x16x16xf32>
    %340 = arith.addf %272, %339 : vector<2x16x16xf32>
    %c1_237 = arith.constant 1 : index
    %c3_238 = arith.constant 3 : index
    %341 = memref.load %arg7[%c1_237, %c3_238] : memref<8x4xf32, #tpu.memory_space<smem>>
    %342 = vector.broadcast %341 : f32 to vector<2x16x16xf32>
    %343 = arith.mulf %328, %342 : vector<2x16x16xf32>
    %344 = arith.addf %275, %343 : vector<2x16x16xf32>
    %c2_239 = arith.constant 2 : index
    %c0_240 = arith.constant 0 : index
    %c0_241 = arith.constant 0 : index
    %c0_242 = arith.constant 0 : index
    %345 = vector.load %arg10[%c2_239, %c0_240, %c0_241, %c0_242] : memref<8x2x18x18xf32, #tpu.memory_space<vmem>>, vector<1x2x16x16xf32>
    %346 = vector.shape_cast %345 : vector<1x2x16x16xf32> to vector<2x16x16xf32>
    %c0_243 = arith.constant 0 : index
    %c2_244 = arith.constant 2 : index
    %347 = memref.load %arg6[%c0_243, %c2_244] : memref<9x8xf32, #tpu.memory_space<smem>>
    %348 = vector.broadcast %347 : f32 to vector<2x16x16xf32>
    %349 = arith.mulf %346, %348 : vector<2x16x16xf32>
    %c2_245 = arith.constant 2 : index
    %c0_246 = arith.constant 0 : index
    %c0_247 = arith.constant 0 : index
    %c1_248 = arith.constant 1 : index
    %350 = vector.load %arg10[%c2_245, %c0_246, %c0_247, %c1_248] : memref<8x2x18x18xf32, #tpu.memory_space<vmem>>, vector<1x2x16x16xf32>
    %351 = vector.shape_cast %350 : vector<1x2x16x16xf32> to vector<2x16x16xf32>
    %c1_249 = arith.constant 1 : index
    %c2_250 = arith.constant 2 : index
    %352 = memref.load %arg6[%c1_249, %c2_250] : memref<9x8xf32, #tpu.memory_space<smem>>
    %353 = vector.broadcast %352 : f32 to vector<2x16x16xf32>
    %354 = arith.mulf %351, %353 : vector<2x16x16xf32>
    %355 = arith.addf %349, %354 : vector<2x16x16xf32>
    %c2_251 = arith.constant 2 : index
    %c0_252 = arith.constant 0 : index
    %c0_253 = arith.constant 0 : index
    %c2_254 = arith.constant 2 : index
    %356 = vector.load %arg10[%c2_251, %c0_252, %c0_253, %c2_254] : memref<8x2x18x18xf32, #tpu.memory_space<vmem>>, vector<1x2x16x16xf32>
    %357 = vector.shape_cast %356 : vector<1x2x16x16xf32> to vector<2x16x16xf32>
    %c2_255 = arith.constant 2 : index
    %c2_256 = arith.constant 2 : index
    %358 = memref.load %arg6[%c2_255, %c2_256] : memref<9x8xf32, #tpu.memory_space<smem>>
    %359 = vector.broadcast %358 : f32 to vector<2x16x16xf32>
    %360 = arith.mulf %357, %359 : vector<2x16x16xf32>
    %361 = arith.addf %355, %360 : vector<2x16x16xf32>
    %c2_257 = arith.constant 2 : index
    %c0_258 = arith.constant 0 : index
    %c1_259 = arith.constant 1 : index
    %c0_260 = arith.constant 0 : index
    %362 = vector.load %arg10[%c2_257, %c0_258, %c1_259, %c0_260] : memref<8x2x18x18xf32, #tpu.memory_space<vmem>>, vector<1x2x16x16xf32>
    %363 = vector.shape_cast %362 : vector<1x2x16x16xf32> to vector<2x16x16xf32>
    %c3_261 = arith.constant 3 : index
    %c2_262 = arith.constant 2 : index
    %364 = memref.load %arg6[%c3_261, %c2_262] : memref<9x8xf32, #tpu.memory_space<smem>>
    %365 = vector.broadcast %364 : f32 to vector<2x16x16xf32>
    %366 = arith.mulf %363, %365 : vector<2x16x16xf32>
    %367 = arith.addf %361, %366 : vector<2x16x16xf32>
    %c2_263 = arith.constant 2 : index
    %c0_264 = arith.constant 0 : index
    %c1_265 = arith.constant 1 : index
    %c1_266 = arith.constant 1 : index
    %368 = vector.load %arg10[%c2_263, %c0_264, %c1_265, %c1_266] : memref<8x2x18x18xf32, #tpu.memory_space<vmem>>, vector<1x2x16x16xf32>
    %369 = vector.shape_cast %368 : vector<1x2x16x16xf32> to vector<2x16x16xf32>
    %c4_267 = arith.constant 4 : index
    %c2_268 = arith.constant 2 : index
    %370 = memref.load %arg6[%c4_267, %c2_268] : memref<9x8xf32, #tpu.memory_space<smem>>
    %371 = vector.broadcast %370 : f32 to vector<2x16x16xf32>
    %372 = arith.mulf %369, %371 : vector<2x16x16xf32>
    %373 = arith.addf %367, %372 : vector<2x16x16xf32>
    %c2_269 = arith.constant 2 : index
    %c0_270 = arith.constant 0 : index
    %c1_271 = arith.constant 1 : index
    %c2_272 = arith.constant 2 : index
    %374 = vector.load %arg10[%c2_269, %c0_270, %c1_271, %c2_272] : memref<8x2x18x18xf32, #tpu.memory_space<vmem>>, vector<1x2x16x16xf32>
    %375 = vector.shape_cast %374 : vector<1x2x16x16xf32> to vector<2x16x16xf32>
    %c5_273 = arith.constant 5 : index
    %c2_274 = arith.constant 2 : index
    %376 = memref.load %arg6[%c5_273, %c2_274] : memref<9x8xf32, #tpu.memory_space<smem>>
    %377 = vector.broadcast %376 : f32 to vector<2x16x16xf32>
    %378 = arith.mulf %375, %377 : vector<2x16x16xf32>
    %379 = arith.addf %373, %378 : vector<2x16x16xf32>
    %c2_275 = arith.constant 2 : index
    %c0_276 = arith.constant 0 : index
    %c2_277 = arith.constant 2 : index
    %c0_278 = arith.constant 0 : index
    %380 = vector.load %arg10[%c2_275, %c0_276, %c2_277, %c0_278] : memref<8x2x18x18xf32, #tpu.memory_space<vmem>>, vector<1x2x16x16xf32>
    %381 = vector.shape_cast %380 : vector<1x2x16x16xf32> to vector<2x16x16xf32>
    %c6_279 = arith.constant 6 : index
    %c2_280 = arith.constant 2 : index
    %382 = memref.load %arg6[%c6_279, %c2_280] : memref<9x8xf32, #tpu.memory_space<smem>>
    %383 = vector.broadcast %382 : f32 to vector<2x16x16xf32>
    %384 = arith.mulf %381, %383 : vector<2x16x16xf32>
    %385 = arith.addf %379, %384 : vector<2x16x16xf32>
    %c2_281 = arith.constant 2 : index
    %c0_282 = arith.constant 0 : index
    %c2_283 = arith.constant 2 : index
    %c1_284 = arith.constant 1 : index
    %386 = vector.load %arg10[%c2_281, %c0_282, %c2_283, %c1_284] : memref<8x2x18x18xf32, #tpu.memory_space<vmem>>, vector<1x2x16x16xf32>
    %387 = vector.shape_cast %386 : vector<1x2x16x16xf32> to vector<2x16x16xf32>
    %c7_285 = arith.constant 7 : index
    %c2_286 = arith.constant 2 : index
    %388 = memref.load %arg6[%c7_285, %c2_286] : memref<9x8xf32, #tpu.memory_space<smem>>
    %389 = vector.broadcast %388 : f32 to vector<2x16x16xf32>
    %390 = arith.mulf %387, %389 : vector<2x16x16xf32>
    %391 = arith.addf %385, %390 : vector<2x16x16xf32>
    %c2_287 = arith.constant 2 : index
    %c0_288 = arith.constant 0 : index
    %c2_289 = arith.constant 2 : index
    %c2_290 = arith.constant 2 : index
    %392 = vector.load %arg10[%c2_287, %c0_288, %c2_289, %c2_290] : memref<8x2x18x18xf32, #tpu.memory_space<vmem>>, vector<1x2x16x16xf32>
    %393 = vector.shape_cast %392 : vector<1x2x16x16xf32> to vector<2x16x16xf32>
    %c8_291 = arith.constant 8 : index
    %c2_292 = arith.constant 2 : index
    %394 = memref.load %arg6[%c8_291, %c2_292] : memref<9x8xf32, #tpu.memory_space<smem>>
    %395 = vector.broadcast %394 : f32 to vector<2x16x16xf32>
    %396 = arith.mulf %393, %395 : vector<2x16x16xf32>
    %397 = arith.addf %391, %396 : vector<2x16x16xf32>
    %c2_293 = arith.constant 2 : index
    %c0_294 = arith.constant 0 : index
    %398 = memref.load %arg7[%c2_293, %c0_294] : memref<8x4xf32, #tpu.memory_space<smem>>
    %399 = vector.broadcast %398 : f32 to vector<2x16x16xf32>
    %400 = arith.mulf %397, %399 : vector<2x16x16xf32>
    %401 = arith.addf %332, %400 : vector<2x16x16xf32>
    %c2_295 = arith.constant 2 : index
    %c1_296 = arith.constant 1 : index
    %402 = memref.load %arg7[%c2_295, %c1_296] : memref<8x4xf32, #tpu.memory_space<smem>>
    %403 = vector.broadcast %402 : f32 to vector<2x16x16xf32>
    %404 = arith.mulf %397, %403 : vector<2x16x16xf32>
    %405 = arith.addf %336, %404 : vector<2x16x16xf32>
    %c2_297 = arith.constant 2 : index
    %c2_298 = arith.constant 2 : index
    %406 = memref.load %arg7[%c2_297, %c2_298] : memref<8x4xf32, #tpu.memory_space<smem>>
    %407 = vector.broadcast %406 : f32 to vector<2x16x16xf32>
    %408 = arith.mulf %397, %407 : vector<2x16x16xf32>
    %409 = arith.addf %340, %408 : vector<2x16x16xf32>
    %c2_299 = arith.constant 2 : index
    %c3_300 = arith.constant 3 : index
    %410 = memref.load %arg7[%c2_299, %c3_300] : memref<8x4xf32, #tpu.memory_space<smem>>
    %411 = vector.broadcast %410 : f32 to vector<2x16x16xf32>
    %412 = arith.mulf %397, %411 : vector<2x16x16xf32>
    %413 = arith.addf %344, %412 : vector<2x16x16xf32>
    %c3_301 = arith.constant 3 : index
    %c0_302 = arith.constant 0 : index
    %c0_303 = arith.constant 0 : index
    %c0_304 = arith.constant 0 : index
    %414 = vector.load %arg10[%c3_301, %c0_302, %c0_303, %c0_304] : memref<8x2x18x18xf32, #tpu.memory_space<vmem>>, vector<1x2x16x16xf32>
    %415 = vector.shape_cast %414 : vector<1x2x16x16xf32> to vector<2x16x16xf32>
    %c0_305 = arith.constant 0 : index
    %c3_306 = arith.constant 3 : index
    %416 = memref.load %arg6[%c0_305, %c3_306] : memref<9x8xf32, #tpu.memory_space<smem>>
    %417 = vector.broadcast %416 : f32 to vector<2x16x16xf32>
    %418 = arith.mulf %415, %417 : vector<2x16x16xf32>
    %c3_307 = arith.constant 3 : index
    %c0_308 = arith.constant 0 : index
    %c0_309 = arith.constant 0 : index
    %c1_310 = arith.constant 1 : index
    %419 = vector.load %arg10[%c3_307, %c0_308, %c0_309, %c1_310] : memref<8x2x18x18xf32, #tpu.memory_space<vmem>>, vector<1x2x16x16xf32>
    %420 = vector.shape_cast %419 : vector<1x2x16x16xf32> to vector<2x16x16xf32>
    %c1_311 = arith.constant 1 : index
    %c3_312 = arith.constant 3 : index
    %421 = memref.load %arg6[%c1_311, %c3_312] : memref<9x8xf32, #tpu.memory_space<smem>>
    %422 = vector.broadcast %421 : f32 to vector<2x16x16xf32>
    %423 = arith.mulf %420, %422 : vector<2x16x16xf32>
    %424 = arith.addf %418, %423 : vector<2x16x16xf32>
    %c3_313 = arith.constant 3 : index
    %c0_314 = arith.constant 0 : index
    %c0_315 = arith.constant 0 : index
    %c2_316 = arith.constant 2 : index
    %425 = vector.load %arg10[%c3_313, %c0_314, %c0_315, %c2_316] : memref<8x2x18x18xf32, #tpu.memory_space<vmem>>, vector<1x2x16x16xf32>
    %426 = vector.shape_cast %425 : vector<1x2x16x16xf32> to vector<2x16x16xf32>
    %c2_317 = arith.constant 2 : index
    %c3_318 = arith.constant 3 : index
    %427 = memref.load %arg6[%c2_317, %c3_318] : memref<9x8xf32, #tpu.memory_space<smem>>
    %428 = vector.broadcast %427 : f32 to vector<2x16x16xf32>
    %429 = arith.mulf %426, %428 : vector<2x16x16xf32>
    %430 = arith.addf %424, %429 : vector<2x16x16xf32>
    %c3_319 = arith.constant 3 : index
    %c0_320 = arith.constant 0 : index
    %c1_321 = arith.constant 1 : index
    %c0_322 = arith.constant 0 : index
    %431 = vector.load %arg10[%c3_319, %c0_320, %c1_321, %c0_322] : memref<8x2x18x18xf32, #tpu.memory_space<vmem>>, vector<1x2x16x16xf32>
    %432 = vector.shape_cast %431 : vector<1x2x16x16xf32> to vector<2x16x16xf32>
    %c3_323 = arith.constant 3 : index
    %c3_324 = arith.constant 3 : index
    %433 = memref.load %arg6[%c3_323, %c3_324] : memref<9x8xf32, #tpu.memory_space<smem>>
    %434 = vector.broadcast %433 : f32 to vector<2x16x16xf32>
    %435 = arith.mulf %432, %434 : vector<2x16x16xf32>
    %436 = arith.addf %430, %435 : vector<2x16x16xf32>
    %c3_325 = arith.constant 3 : index
    %c0_326 = arith.constant 0 : index
    %c1_327 = arith.constant 1 : index
    %c1_328 = arith.constant 1 : index
    %437 = vector.load %arg10[%c3_325, %c0_326, %c1_327, %c1_328] : memref<8x2x18x18xf32, #tpu.memory_space<vmem>>, vector<1x2x16x16xf32>
    %438 = vector.shape_cast %437 : vector<1x2x16x16xf32> to vector<2x16x16xf32>
    %c4_329 = arith.constant 4 : index
    %c3_330 = arith.constant 3 : index
    %439 = memref.load %arg6[%c4_329, %c3_330] : memref<9x8xf32, #tpu.memory_space<smem>>
    %440 = vector.broadcast %439 : f32 to vector<2x16x16xf32>
    %441 = arith.mulf %438, %440 : vector<2x16x16xf32>
    %442 = arith.addf %436, %441 : vector<2x16x16xf32>
    %c3_331 = arith.constant 3 : index
    %c0_332 = arith.constant 0 : index
    %c1_333 = arith.constant 1 : index
    %c2_334 = arith.constant 2 : index
    %443 = vector.load %arg10[%c3_331, %c0_332, %c1_333, %c2_334] : memref<8x2x18x18xf32, #tpu.memory_space<vmem>>, vector<1x2x16x16xf32>
    %444 = vector.shape_cast %443 : vector<1x2x16x16xf32> to vector<2x16x16xf32>
    %c5_335 = arith.constant 5 : index
    %c3_336 = arith.constant 3 : index
    %445 = memref.load %arg6[%c5_335, %c3_336] : memref<9x8xf32, #tpu.memory_space<smem>>
    %446 = vector.broadcast %445 : f32 to vector<2x16x16xf32>
    %447 = arith.mulf %444, %446 : vector<2x16x16xf32>
    %448 = arith.addf %442, %447 : vector<2x16x16xf32>
    %c3_337 = arith.constant 3 : index
    %c0_338 = arith.constant 0 : index
    %c2_339 = arith.constant 2 : index
    %c0_340 = arith.constant 0 : index
    %449 = vector.load %arg10[%c3_337, %c0_338, %c2_339, %c0_340] : memref<8x2x18x18xf32, #tpu.memory_space<vmem>>, vector<1x2x16x16xf32>
    %450 = vector.shape_cast %449 : vector<1x2x16x16xf32> to vector<2x16x16xf32>
    %c6_341 = arith.constant 6 : index
    %c3_342 = arith.constant 3 : index
    %451 = memref.load %arg6[%c6_341, %c3_342] : memref<9x8xf32, #tpu.memory_space<smem>>
    %452 = vector.broadcast %451 : f32 to vector<2x16x16xf32>
    %453 = arith.mulf %450, %452 : vector<2x16x16xf32>
    %454 = arith.addf %448, %453 : vector<2x16x16xf32>
    %c3_343 = arith.constant 3 : index
    %c0_344 = arith.constant 0 : index
    %c2_345 = arith.constant 2 : index
    %c1_346 = arith.constant 1 : index
    %455 = vector.load %arg10[%c3_343, %c0_344, %c2_345, %c1_346] : memref<8x2x18x18xf32, #tpu.memory_space<vmem>>, vector<1x2x16x16xf32>
    %456 = vector.shape_cast %455 : vector<1x2x16x16xf32> to vector<2x16x16xf32>
    %c7_347 = arith.constant 7 : index
    %c3_348 = arith.constant 3 : index
    %457 = memref.load %arg6[%c7_347, %c3_348] : memref<9x8xf32, #tpu.memory_space<smem>>
    %458 = vector.broadcast %457 : f32 to vector<2x16x16xf32>
    %459 = arith.mulf %456, %458 : vector<2x16x16xf32>
    %460 = arith.addf %454, %459 : vector<2x16x16xf32>
    %c3_349 = arith.constant 3 : index
    %c0_350 = arith.constant 0 : index
    %c2_351 = arith.constant 2 : index
    %c2_352 = arith.constant 2 : index
    %461 = vector.load %arg10[%c3_349, %c0_350, %c2_351, %c2_352] : memref<8x2x18x18xf32, #tpu.memory_space<vmem>>, vector<1x2x16x16xf32>
    %462 = vector.shape_cast %461 : vector<1x2x16x16xf32> to vector<2x16x16xf32>
    %c8_353 = arith.constant 8 : index
    %c3_354 = arith.constant 3 : index
    %463 = memref.load %arg6[%c8_353, %c3_354] : memref<9x8xf32, #tpu.memory_space<smem>>
    %464 = vector.broadcast %463 : f32 to vector<2x16x16xf32>
    %465 = arith.mulf %462, %464 : vector<2x16x16xf32>
    %466 = arith.addf %460, %465 : vector<2x16x16xf32>
    %c3_355 = arith.constant 3 : index
    %c0_356 = arith.constant 0 : index
    %467 = memref.load %arg7[%c3_355, %c0_356] : memref<8x4xf32, #tpu.memory_space<smem>>
    %468 = vector.broadcast %467 : f32 to vector<2x16x16xf32>
    %469 = arith.mulf %466, %468 : vector<2x16x16xf32>
    %470 = arith.addf %401, %469 : vector<2x16x16xf32>
    %c3_357 = arith.constant 3 : index
    %c1_358 = arith.constant 1 : index
    %471 = memref.load %arg7[%c3_357, %c1_358] : memref<8x4xf32, #tpu.memory_space<smem>>
    %472 = vector.broadcast %471 : f32 to vector<2x16x16xf32>
    %473 = arith.mulf %466, %472 : vector<2x16x16xf32>
    %474 = arith.addf %405, %473 : vector<2x16x16xf32>
    %c3_359 = arith.constant 3 : index
    %c2_360 = arith.constant 2 : index
    %475 = memref.load %arg7[%c3_359, %c2_360] : memref<8x4xf32, #tpu.memory_space<smem>>
    %476 = vector.broadcast %475 : f32 to vector<2x16x16xf32>
    %477 = arith.mulf %466, %476 : vector<2x16x16xf32>
    %478 = arith.addf %409, %477 : vector<2x16x16xf32>
    %c3_361 = arith.constant 3 : index
    %c3_362 = arith.constant 3 : index
    %479 = memref.load %arg7[%c3_361, %c3_362] : memref<8x4xf32, #tpu.memory_space<smem>>
    %480 = vector.broadcast %479 : f32 to vector<2x16x16xf32>
    %481 = arith.mulf %466, %480 : vector<2x16x16xf32>
    %482 = arith.addf %413, %481 : vector<2x16x16xf32>
    %c4_363 = arith.constant 4 : index
    %c0_364 = arith.constant 0 : index
    %c0_365 = arith.constant 0 : index
    %c0_366 = arith.constant 0 : index
    %483 = vector.load %arg10[%c4_363, %c0_364, %c0_365, %c0_366] : memref<8x2x18x18xf32, #tpu.memory_space<vmem>>, vector<1x2x16x16xf32>
    %484 = vector.shape_cast %483 : vector<1x2x16x16xf32> to vector<2x16x16xf32>
    %c0_367 = arith.constant 0 : index
    %c4_368 = arith.constant 4 : index
    %485 = memref.load %arg6[%c0_367, %c4_368] : memref<9x8xf32, #tpu.memory_space<smem>>
    %486 = vector.broadcast %485 : f32 to vector<2x16x16xf32>
    %487 = arith.mulf %484, %486 : vector<2x16x16xf32>
    %c4_369 = arith.constant 4 : index
    %c0_370 = arith.constant 0 : index
    %c0_371 = arith.constant 0 : index
    %c1_372 = arith.constant 1 : index
    %488 = vector.load %arg10[%c4_369, %c0_370, %c0_371, %c1_372] : memref<8x2x18x18xf32, #tpu.memory_space<vmem>>, vector<1x2x16x16xf32>
    %489 = vector.shape_cast %488 : vector<1x2x16x16xf32> to vector<2x16x16xf32>
    %c1_373 = arith.constant 1 : index
    %c4_374 = arith.constant 4 : index
    %490 = memref.load %arg6[%c1_373, %c4_374] : memref<9x8xf32, #tpu.memory_space<smem>>
    %491 = vector.broadcast %490 : f32 to vector<2x16x16xf32>
    %492 = arith.mulf %489, %491 : vector<2x16x16xf32>
    %493 = arith.addf %487, %492 : vector<2x16x16xf32>
    %c4_375 = arith.constant 4 : index
    %c0_376 = arith.constant 0 : index
    %c0_377 = arith.constant 0 : index
    %c2_378 = arith.constant 2 : index
    %494 = vector.load %arg10[%c4_375, %c0_376, %c0_377, %c2_378] : memref<8x2x18x18xf32, #tpu.memory_space<vmem>>, vector<1x2x16x16xf32>
    %495 = vector.shape_cast %494 : vector<1x2x16x16xf32> to vector<2x16x16xf32>
    %c2_379 = arith.constant 2 : index
    %c4_380 = arith.constant 4 : index
    %496 = memref.load %arg6[%c2_379, %c4_380] : memref<9x8xf32, #tpu.memory_space<smem>>
    %497 = vector.broadcast %496 : f32 to vector<2x16x16xf32>
    %498 = arith.mulf %495, %497 : vector<2x16x16xf32>
    %499 = arith.addf %493, %498 : vector<2x16x16xf32>
    %c4_381 = arith.constant 4 : index
    %c0_382 = arith.constant 0 : index
    %c1_383 = arith.constant 1 : index
    %c0_384 = arith.constant 0 : index
    %500 = vector.load %arg10[%c4_381, %c0_382, %c1_383, %c0_384] : memref<8x2x18x18xf32, #tpu.memory_space<vmem>>, vector<1x2x16x16xf32>
    %501 = vector.shape_cast %500 : vector<1x2x16x16xf32> to vector<2x16x16xf32>
    %c3_385 = arith.constant 3 : index
    %c4_386 = arith.constant 4 : index
    %502 = memref.load %arg6[%c3_385, %c4_386] : memref<9x8xf32, #tpu.memory_space<smem>>
    %503 = vector.broadcast %502 : f32 to vector<2x16x16xf32>
    %504 = arith.mulf %501, %503 : vector<2x16x16xf32>
    %505 = arith.addf %499, %504 : vector<2x16x16xf32>
    %c4_387 = arith.constant 4 : index
    %c0_388 = arith.constant 0 : index
    %c1_389 = arith.constant 1 : index
    %c1_390 = arith.constant 1 : index
    %506 = vector.load %arg10[%c4_387, %c0_388, %c1_389, %c1_390] : memref<8x2x18x18xf32, #tpu.memory_space<vmem>>, vector<1x2x16x16xf32>
    %507 = vector.shape_cast %506 : vector<1x2x16x16xf32> to vector<2x16x16xf32>
    %c4_391 = arith.constant 4 : index
    %c4_392 = arith.constant 4 : index
    %508 = memref.load %arg6[%c4_391, %c4_392] : memref<9x8xf32, #tpu.memory_space<smem>>
    %509 = vector.broadcast %508 : f32 to vector<2x16x16xf32>
    %510 = arith.mulf %507, %509 : vector<2x16x16xf32>
    %511 = arith.addf %505, %510 : vector<2x16x16xf32>
    %c4_393 = arith.constant 4 : index
    %c0_394 = arith.constant 0 : index
    %c1_395 = arith.constant 1 : index
    %c2_396 = arith.constant 2 : index
    %512 = vector.load %arg10[%c4_393, %c0_394, %c1_395, %c2_396] : memref<8x2x18x18xf32, #tpu.memory_space<vmem>>, vector<1x2x16x16xf32>
    %513 = vector.shape_cast %512 : vector<1x2x16x16xf32> to vector<2x16x16xf32>
    %c5_397 = arith.constant 5 : index
    %c4_398 = arith.constant 4 : index
    %514 = memref.load %arg6[%c5_397, %c4_398] : memref<9x8xf32, #tpu.memory_space<smem>>
    %515 = vector.broadcast %514 : f32 to vector<2x16x16xf32>
    %516 = arith.mulf %513, %515 : vector<2x16x16xf32>
    %517 = arith.addf %511, %516 : vector<2x16x16xf32>
    %c4_399 = arith.constant 4 : index
    %c0_400 = arith.constant 0 : index
    %c2_401 = arith.constant 2 : index
    %c0_402 = arith.constant 0 : index
    %518 = vector.load %arg10[%c4_399, %c0_400, %c2_401, %c0_402] : memref<8x2x18x18xf32, #tpu.memory_space<vmem>>, vector<1x2x16x16xf32>
    %519 = vector.shape_cast %518 : vector<1x2x16x16xf32> to vector<2x16x16xf32>
    %c6_403 = arith.constant 6 : index
    %c4_404 = arith.constant 4 : index
    %520 = memref.load %arg6[%c6_403, %c4_404] : memref<9x8xf32, #tpu.memory_space<smem>>
    %521 = vector.broadcast %520 : f32 to vector<2x16x16xf32>
    %522 = arith.mulf %519, %521 : vector<2x16x16xf32>
    %523 = arith.addf %517, %522 : vector<2x16x16xf32>
    %c4_405 = arith.constant 4 : index
    %c0_406 = arith.constant 0 : index
    %c2_407 = arith.constant 2 : index
    %c1_408 = arith.constant 1 : index
    %524 = vector.load %arg10[%c4_405, %c0_406, %c2_407, %c1_408] : memref<8x2x18x18xf32, #tpu.memory_space<vmem>>, vector<1x2x16x16xf32>
    %525 = vector.shape_cast %524 : vector<1x2x16x16xf32> to vector<2x16x16xf32>
    %c7_409 = arith.constant 7 : index
    %c4_410 = arith.constant 4 : index
    %526 = memref.load %arg6[%c7_409, %c4_410] : memref<9x8xf32, #tpu.memory_space<smem>>
    %527 = vector.broadcast %526 : f32 to vector<2x16x16xf32>
    %528 = arith.mulf %525, %527 : vector<2x16x16xf32>
    %529 = arith.addf %523, %528 : vector<2x16x16xf32>
    %c4_411 = arith.constant 4 : index
    %c0_412 = arith.constant 0 : index
    %c2_413 = arith.constant 2 : index
    %c2_414 = arith.constant 2 : index
    %530 = vector.load %arg10[%c4_411, %c0_412, %c2_413, %c2_414] : memref<8x2x18x18xf32, #tpu.memory_space<vmem>>, vector<1x2x16x16xf32>
    %531 = vector.shape_cast %530 : vector<1x2x16x16xf32> to vector<2x16x16xf32>
    %c8_415 = arith.constant 8 : index
    %c4_416 = arith.constant 4 : index
    %532 = memref.load %arg6[%c8_415, %c4_416] : memref<9x8xf32, #tpu.memory_space<smem>>
    %533 = vector.broadcast %532 : f32 to vector<2x16x16xf32>
    %534 = arith.mulf %531, %533 : vector<2x16x16xf32>
    %535 = arith.addf %529, %534 : vector<2x16x16xf32>
    %c4_417 = arith.constant 4 : index
    %c0_418 = arith.constant 0 : index
    %536 = memref.load %arg7[%c4_417, %c0_418] : memref<8x4xf32, #tpu.memory_space<smem>>
    %537 = vector.broadcast %536 : f32 to vector<2x16x16xf32>
    %538 = arith.mulf %535, %537 : vector<2x16x16xf32>
    %539 = arith.addf %470, %538 : vector<2x16x16xf32>
    %c4_419 = arith.constant 4 : index
    %c1_420 = arith.constant 1 : index
    %540 = memref.load %arg7[%c4_419, %c1_420] : memref<8x4xf32, #tpu.memory_space<smem>>
    %541 = vector.broadcast %540 : f32 to vector<2x16x16xf32>
    %542 = arith.mulf %535, %541 : vector<2x16x16xf32>
    %543 = arith.addf %474, %542 : vector<2x16x16xf32>
    %c4_421 = arith.constant 4 : index
    %c2_422 = arith.constant 2 : index
    %544 = memref.load %arg7[%c4_421, %c2_422] : memref<8x4xf32, #tpu.memory_space<smem>>
    %545 = vector.broadcast %544 : f32 to vector<2x16x16xf32>
    %546 = arith.mulf %535, %545 : vector<2x16x16xf32>
    %547 = arith.addf %478, %546 : vector<2x16x16xf32>
    %c4_423 = arith.constant 4 : index
    %c3_424 = arith.constant 3 : index
    %548 = memref.load %arg7[%c4_423, %c3_424] : memref<8x4xf32, #tpu.memory_space<smem>>
    %549 = vector.broadcast %548 : f32 to vector<2x16x16xf32>
    %550 = arith.mulf %535, %549 : vector<2x16x16xf32>
    %551 = arith.addf %482, %550 : vector<2x16x16xf32>
    %c5_425 = arith.constant 5 : index
    %c0_426 = arith.constant 0 : index
    %c0_427 = arith.constant 0 : index
    %c0_428 = arith.constant 0 : index
    %552 = vector.load %arg10[%c5_425, %c0_426, %c0_427, %c0_428] : memref<8x2x18x18xf32, #tpu.memory_space<vmem>>, vector<1x2x16x16xf32>
    %553 = vector.shape_cast %552 : vector<1x2x16x16xf32> to vector<2x16x16xf32>
    %c0_429 = arith.constant 0 : index
    %c5_430 = arith.constant 5 : index
    %554 = memref.load %arg6[%c0_429, %c5_430] : memref<9x8xf32, #tpu.memory_space<smem>>
    %555 = vector.broadcast %554 : f32 to vector<2x16x16xf32>
    %556 = arith.mulf %553, %555 : vector<2x16x16xf32>
    %c5_431 = arith.constant 5 : index
    %c0_432 = arith.constant 0 : index
    %c0_433 = arith.constant 0 : index
    %c1_434 = arith.constant 1 : index
    %557 = vector.load %arg10[%c5_431, %c0_432, %c0_433, %c1_434] : memref<8x2x18x18xf32, #tpu.memory_space<vmem>>, vector<1x2x16x16xf32>
    %558 = vector.shape_cast %557 : vector<1x2x16x16xf32> to vector<2x16x16xf32>
    %c1_435 = arith.constant 1 : index
    %c5_436 = arith.constant 5 : index
    %559 = memref.load %arg6[%c1_435, %c5_436] : memref<9x8xf32, #tpu.memory_space<smem>>
    %560 = vector.broadcast %559 : f32 to vector<2x16x16xf32>
    %561 = arith.mulf %558, %560 : vector<2x16x16xf32>
    %562 = arith.addf %556, %561 : vector<2x16x16xf32>
    %c5_437 = arith.constant 5 : index
    %c0_438 = arith.constant 0 : index
    %c0_439 = arith.constant 0 : index
    %c2_440 = arith.constant 2 : index
    %563 = vector.load %arg10[%c5_437, %c0_438, %c0_439, %c2_440] : memref<8x2x18x18xf32, #tpu.memory_space<vmem>>, vector<1x2x16x16xf32>
    %564 = vector.shape_cast %563 : vector<1x2x16x16xf32> to vector<2x16x16xf32>
    %c2_441 = arith.constant 2 : index
    %c5_442 = arith.constant 5 : index
    %565 = memref.load %arg6[%c2_441, %c5_442] : memref<9x8xf32, #tpu.memory_space<smem>>
    %566 = vector.broadcast %565 : f32 to vector<2x16x16xf32>
    %567 = arith.mulf %564, %566 : vector<2x16x16xf32>
    %568 = arith.addf %562, %567 : vector<2x16x16xf32>
    %c5_443 = arith.constant 5 : index
    %c0_444 = arith.constant 0 : index
    %c1_445 = arith.constant 1 : index
    %c0_446 = arith.constant 0 : index
    %569 = vector.load %arg10[%c5_443, %c0_444, %c1_445, %c0_446] : memref<8x2x18x18xf32, #tpu.memory_space<vmem>>, vector<1x2x16x16xf32>
    %570 = vector.shape_cast %569 : vector<1x2x16x16xf32> to vector<2x16x16xf32>
    %c3_447 = arith.constant 3 : index
    %c5_448 = arith.constant 5 : index
    %571 = memref.load %arg6[%c3_447, %c5_448] : memref<9x8xf32, #tpu.memory_space<smem>>
    %572 = vector.broadcast %571 : f32 to vector<2x16x16xf32>
    %573 = arith.mulf %570, %572 : vector<2x16x16xf32>
    %574 = arith.addf %568, %573 : vector<2x16x16xf32>
    %c5_449 = arith.constant 5 : index
    %c0_450 = arith.constant 0 : index
    %c1_451 = arith.constant 1 : index
    %c1_452 = arith.constant 1 : index
    %575 = vector.load %arg10[%c5_449, %c0_450, %c1_451, %c1_452] : memref<8x2x18x18xf32, #tpu.memory_space<vmem>>, vector<1x2x16x16xf32>
    %576 = vector.shape_cast %575 : vector<1x2x16x16xf32> to vector<2x16x16xf32>
    %c4_453 = arith.constant 4 : index
    %c5_454 = arith.constant 5 : index
    %577 = memref.load %arg6[%c4_453, %c5_454] : memref<9x8xf32, #tpu.memory_space<smem>>
    %578 = vector.broadcast %577 : f32 to vector<2x16x16xf32>
    %579 = arith.mulf %576, %578 : vector<2x16x16xf32>
    %580 = arith.addf %574, %579 : vector<2x16x16xf32>
    %c5_455 = arith.constant 5 : index
    %c0_456 = arith.constant 0 : index
    %c1_457 = arith.constant 1 : index
    %c2_458 = arith.constant 2 : index
    %581 = vector.load %arg10[%c5_455, %c0_456, %c1_457, %c2_458] : memref<8x2x18x18xf32, #tpu.memory_space<vmem>>, vector<1x2x16x16xf32>
    %582 = vector.shape_cast %581 : vector<1x2x16x16xf32> to vector<2x16x16xf32>
    %c5_459 = arith.constant 5 : index
    %c5_460 = arith.constant 5 : index
    %583 = memref.load %arg6[%c5_459, %c5_460] : memref<9x8xf32, #tpu.memory_space<smem>>
    %584 = vector.broadcast %583 : f32 to vector<2x16x16xf32>
    %585 = arith.mulf %582, %584 : vector<2x16x16xf32>
    %586 = arith.addf %580, %585 : vector<2x16x16xf32>
    %c5_461 = arith.constant 5 : index
    %c0_462 = arith.constant 0 : index
    %c2_463 = arith.constant 2 : index
    %c0_464 = arith.constant 0 : index
    %587 = vector.load %arg10[%c5_461, %c0_462, %c2_463, %c0_464] : memref<8x2x18x18xf32, #tpu.memory_space<vmem>>, vector<1x2x16x16xf32>
    %588 = vector.shape_cast %587 : vector<1x2x16x16xf32> to vector<2x16x16xf32>
    %c6_465 = arith.constant 6 : index
    %c5_466 = arith.constant 5 : index
    %589 = memref.load %arg6[%c6_465, %c5_466] : memref<9x8xf32, #tpu.memory_space<smem>>
    %590 = vector.broadcast %589 : f32 to vector<2x16x16xf32>
    %591 = arith.mulf %588, %590 : vector<2x16x16xf32>
    %592 = arith.addf %586, %591 : vector<2x16x16xf32>
    %c5_467 = arith.constant 5 : index
    %c0_468 = arith.constant 0 : index
    %c2_469 = arith.constant 2 : index
    %c1_470 = arith.constant 1 : index
    %593 = vector.load %arg10[%c5_467, %c0_468, %c2_469, %c1_470] : memref<8x2x18x18xf32, #tpu.memory_space<vmem>>, vector<1x2x16x16xf32>
    %594 = vector.shape_cast %593 : vector<1x2x16x16xf32> to vector<2x16x16xf32>
    %c7_471 = arith.constant 7 : index
    %c5_472 = arith.constant 5 : index
    %595 = memref.load %arg6[%c7_471, %c5_472] : memref<9x8xf32, #tpu.memory_space<smem>>
    %596 = vector.broadcast %595 : f32 to vector<2x16x16xf32>
    %597 = arith.mulf %594, %596 : vector<2x16x16xf32>
    %598 = arith.addf %592, %597 : vector<2x16x16xf32>
    %c5_473 = arith.constant 5 : index
    %c0_474 = arith.constant 0 : index
    %c2_475 = arith.constant 2 : index
    %c2_476 = arith.constant 2 : index
    %599 = vector.load %arg10[%c5_473, %c0_474, %c2_475, %c2_476] : memref<8x2x18x18xf32, #tpu.memory_space<vmem>>, vector<1x2x16x16xf32>
    %600 = vector.shape_cast %599 : vector<1x2x16x16xf32> to vector<2x16x16xf32>
    %c8_477 = arith.constant 8 : index
    %c5_478 = arith.constant 5 : index
    %601 = memref.load %arg6[%c8_477, %c5_478] : memref<9x8xf32, #tpu.memory_space<smem>>
    %602 = vector.broadcast %601 : f32 to vector<2x16x16xf32>
    %603 = arith.mulf %600, %602 : vector<2x16x16xf32>
    %604 = arith.addf %598, %603 : vector<2x16x16xf32>
    %c5_479 = arith.constant 5 : index
    %c0_480 = arith.constant 0 : index
    %605 = memref.load %arg7[%c5_479, %c0_480] : memref<8x4xf32, #tpu.memory_space<smem>>
    %606 = vector.broadcast %605 : f32 to vector<2x16x16xf32>
    %607 = arith.mulf %604, %606 : vector<2x16x16xf32>
    %608 = arith.addf %539, %607 : vector<2x16x16xf32>
    %c5_481 = arith.constant 5 : index
    %c1_482 = arith.constant 1 : index
    %609 = memref.load %arg7[%c5_481, %c1_482] : memref<8x4xf32, #tpu.memory_space<smem>>
    %610 = vector.broadcast %609 : f32 to vector<2x16x16xf32>
    %611 = arith.mulf %604, %610 : vector<2x16x16xf32>
    %612 = arith.addf %543, %611 : vector<2x16x16xf32>
    %c5_483 = arith.constant 5 : index
    %c2_484 = arith.constant 2 : index
    %613 = memref.load %arg7[%c5_483, %c2_484] : memref<8x4xf32, #tpu.memory_space<smem>>
    %614 = vector.broadcast %613 : f32 to vector<2x16x16xf32>
    %615 = arith.mulf %604, %614 : vector<2x16x16xf32>
    %616 = arith.addf %547, %615 : vector<2x16x16xf32>
    %c5_485 = arith.constant 5 : index
    %c3_486 = arith.constant 3 : index
    %617 = memref.load %arg7[%c5_485, %c3_486] : memref<8x4xf32, #tpu.memory_space<smem>>
    %618 = vector.broadcast %617 : f32 to vector<2x16x16xf32>
    %619 = arith.mulf %604, %618 : vector<2x16x16xf32>
    %620 = arith.addf %551, %619 : vector<2x16x16xf32>
    %c6_487 = arith.constant 6 : index
    %c0_488 = arith.constant 0 : index
    %c0_489 = arith.constant 0 : index
    %c0_490 = arith.constant 0 : index
    %621 = vector.load %arg10[%c6_487, %c0_488, %c0_489, %c0_490] : memref<8x2x18x18xf32, #tpu.memory_space<vmem>>, vector<1x2x16x16xf32>
    %622 = vector.shape_cast %621 : vector<1x2x16x16xf32> to vector<2x16x16xf32>
    %c0_491 = arith.constant 0 : index
    %c6_492 = arith.constant 6 : index
    %623 = memref.load %arg6[%c0_491, %c6_492] : memref<9x8xf32, #tpu.memory_space<smem>>
    %624 = vector.broadcast %623 : f32 to vector<2x16x16xf32>
    %625 = arith.mulf %622, %624 : vector<2x16x16xf32>
    %c6_493 = arith.constant 6 : index
    %c0_494 = arith.constant 0 : index
    %c0_495 = arith.constant 0 : index
    %c1_496 = arith.constant 1 : index
    %626 = vector.load %arg10[%c6_493, %c0_494, %c0_495, %c1_496] : memref<8x2x18x18xf32, #tpu.memory_space<vmem>>, vector<1x2x16x16xf32>
    %627 = vector.shape_cast %626 : vector<1x2x16x16xf32> to vector<2x16x16xf32>
    %c1_497 = arith.constant 1 : index
    %c6_498 = arith.constant 6 : index
    %628 = memref.load %arg6[%c1_497, %c6_498] : memref<9x8xf32, #tpu.memory_space<smem>>
    %629 = vector.broadcast %628 : f32 to vector<2x16x16xf32>
    %630 = arith.mulf %627, %629 : vector<2x16x16xf32>
    %631 = arith.addf %625, %630 : vector<2x16x16xf32>
    %c6_499 = arith.constant 6 : index
    %c0_500 = arith.constant 0 : index
    %c0_501 = arith.constant 0 : index
    %c2_502 = arith.constant 2 : index
    %632 = vector.load %arg10[%c6_499, %c0_500, %c0_501, %c2_502] : memref<8x2x18x18xf32, #tpu.memory_space<vmem>>, vector<1x2x16x16xf32>
    %633 = vector.shape_cast %632 : vector<1x2x16x16xf32> to vector<2x16x16xf32>
    %c2_503 = arith.constant 2 : index
    %c6_504 = arith.constant 6 : index
    %634 = memref.load %arg6[%c2_503, %c6_504] : memref<9x8xf32, #tpu.memory_space<smem>>
    %635 = vector.broadcast %634 : f32 to vector<2x16x16xf32>
    %636 = arith.mulf %633, %635 : vector<2x16x16xf32>
    %637 = arith.addf %631, %636 : vector<2x16x16xf32>
    %c6_505 = arith.constant 6 : index
    %c0_506 = arith.constant 0 : index
    %c1_507 = arith.constant 1 : index
    %c0_508 = arith.constant 0 : index
    %638 = vector.load %arg10[%c6_505, %c0_506, %c1_507, %c0_508] : memref<8x2x18x18xf32, #tpu.memory_space<vmem>>, vector<1x2x16x16xf32>
    %639 = vector.shape_cast %638 : vector<1x2x16x16xf32> to vector<2x16x16xf32>
    %c3_509 = arith.constant 3 : index
    %c6_510 = arith.constant 6 : index
    %640 = memref.load %arg6[%c3_509, %c6_510] : memref<9x8xf32, #tpu.memory_space<smem>>
    %641 = vector.broadcast %640 : f32 to vector<2x16x16xf32>
    %642 = arith.mulf %639, %641 : vector<2x16x16xf32>
    %643 = arith.addf %637, %642 : vector<2x16x16xf32>
    %c6_511 = arith.constant 6 : index
    %c0_512 = arith.constant 0 : index
    %c1_513 = arith.constant 1 : index
    %c1_514 = arith.constant 1 : index
    %644 = vector.load %arg10[%c6_511, %c0_512, %c1_513, %c1_514] : memref<8x2x18x18xf32, #tpu.memory_space<vmem>>, vector<1x2x16x16xf32>
    %645 = vector.shape_cast %644 : vector<1x2x16x16xf32> to vector<2x16x16xf32>
    %c4_515 = arith.constant 4 : index
    %c6_516 = arith.constant 6 : index
    %646 = memref.load %arg6[%c4_515, %c6_516] : memref<9x8xf32, #tpu.memory_space<smem>>
    %647 = vector.broadcast %646 : f32 to vector<2x16x16xf32>
    %648 = arith.mulf %645, %647 : vector<2x16x16xf32>
    %649 = arith.addf %643, %648 : vector<2x16x16xf32>
    %c6_517 = arith.constant 6 : index
    %c0_518 = arith.constant 0 : index
    %c1_519 = arith.constant 1 : index
    %c2_520 = arith.constant 2 : index
    %650 = vector.load %arg10[%c6_517, %c0_518, %c1_519, %c2_520] : memref<8x2x18x18xf32, #tpu.memory_space<vmem>>, vector<1x2x16x16xf32>
    %651 = vector.shape_cast %650 : vector<1x2x16x16xf32> to vector<2x16x16xf32>
    %c5_521 = arith.constant 5 : index
    %c6_522 = arith.constant 6 : index
    %652 = memref.load %arg6[%c5_521, %c6_522] : memref<9x8xf32, #tpu.memory_space<smem>>
    %653 = vector.broadcast %652 : f32 to vector<2x16x16xf32>
    %654 = arith.mulf %651, %653 : vector<2x16x16xf32>
    %655 = arith.addf %649, %654 : vector<2x16x16xf32>
    %c6_523 = arith.constant 6 : index
    %c0_524 = arith.constant 0 : index
    %c2_525 = arith.constant 2 : index
    %c0_526 = arith.constant 0 : index
    %656 = vector.load %arg10[%c6_523, %c0_524, %c2_525, %c0_526] : memref<8x2x18x18xf32, #tpu.memory_space<vmem>>, vector<1x2x16x16xf32>
    %657 = vector.shape_cast %656 : vector<1x2x16x16xf32> to vector<2x16x16xf32>
    %c6_527 = arith.constant 6 : index
    %c6_528 = arith.constant 6 : index
    %658 = memref.load %arg6[%c6_527, %c6_528] : memref<9x8xf32, #tpu.memory_space<smem>>
    %659 = vector.broadcast %658 : f32 to vector<2x16x16xf32>
    %660 = arith.mulf %657, %659 : vector<2x16x16xf32>
    %661 = arith.addf %655, %660 : vector<2x16x16xf32>
    %c6_529 = arith.constant 6 : index
    %c0_530 = arith.constant 0 : index
    %c2_531 = arith.constant 2 : index
    %c1_532 = arith.constant 1 : index
    %662 = vector.load %arg10[%c6_529, %c0_530, %c2_531, %c1_532] : memref<8x2x18x18xf32, #tpu.memory_space<vmem>>, vector<1x2x16x16xf32>
    %663 = vector.shape_cast %662 : vector<1x2x16x16xf32> to vector<2x16x16xf32>
    %c7_533 = arith.constant 7 : index
    %c6_534 = arith.constant 6 : index
    %664 = memref.load %arg6[%c7_533, %c6_534] : memref<9x8xf32, #tpu.memory_space<smem>>
    %665 = vector.broadcast %664 : f32 to vector<2x16x16xf32>
    %666 = arith.mulf %663, %665 : vector<2x16x16xf32>
    %667 = arith.addf %661, %666 : vector<2x16x16xf32>
    %c6_535 = arith.constant 6 : index
    %c0_536 = arith.constant 0 : index
    %c2_537 = arith.constant 2 : index
    %c2_538 = arith.constant 2 : index
    %668 = vector.load %arg10[%c6_535, %c0_536, %c2_537, %c2_538] : memref<8x2x18x18xf32, #tpu.memory_space<vmem>>, vector<1x2x16x16xf32>
    %669 = vector.shape_cast %668 : vector<1x2x16x16xf32> to vector<2x16x16xf32>
    %c8_539 = arith.constant 8 : index
    %c6_540 = arith.constant 6 : index
    %670 = memref.load %arg6[%c8_539, %c6_540] : memref<9x8xf32, #tpu.memory_space<smem>>
    %671 = vector.broadcast %670 : f32 to vector<2x16x16xf32>
    %672 = arith.mulf %669, %671 : vector<2x16x16xf32>
    %673 = arith.addf %667, %672 : vector<2x16x16xf32>
    %c6_541 = arith.constant 6 : index
    %c0_542 = arith.constant 0 : index
    %674 = memref.load %arg7[%c6_541, %c0_542] : memref<8x4xf32, #tpu.memory_space<smem>>
    %675 = vector.broadcast %674 : f32 to vector<2x16x16xf32>
    %676 = arith.mulf %673, %675 : vector<2x16x16xf32>
    %677 = arith.addf %608, %676 : vector<2x16x16xf32>
    %c6_543 = arith.constant 6 : index
    %c1_544 = arith.constant 1 : index
    %678 = memref.load %arg7[%c6_543, %c1_544] : memref<8x4xf32, #tpu.memory_space<smem>>
    %679 = vector.broadcast %678 : f32 to vector<2x16x16xf32>
    %680 = arith.mulf %673, %679 : vector<2x16x16xf32>
    %681 = arith.addf %612, %680 : vector<2x16x16xf32>
    %c6_545 = arith.constant 6 : index
    %c2_546 = arith.constant 2 : index
    %682 = memref.load %arg7[%c6_545, %c2_546] : memref<8x4xf32, #tpu.memory_space<smem>>
    %683 = vector.broadcast %682 : f32 to vector<2x16x16xf32>
    %684 = arith.mulf %673, %683 : vector<2x16x16xf32>
    %685 = arith.addf %616, %684 : vector<2x16x16xf32>
    %c6_547 = arith.constant 6 : index
    %c3_548 = arith.constant 3 : index
    %686 = memref.load %arg7[%c6_547, %c3_548] : memref<8x4xf32, #tpu.memory_space<smem>>
    %687 = vector.broadcast %686 : f32 to vector<2x16x16xf32>
    %688 = arith.mulf %673, %687 : vector<2x16x16xf32>
    %689 = arith.addf %620, %688 : vector<2x16x16xf32>
    %c7_549 = arith.constant 7 : index
    %c0_550 = arith.constant 0 : index
    %c0_551 = arith.constant 0 : index
    %c0_552 = arith.constant 0 : index
    %690 = vector.load %arg10[%c7_549, %c0_550, %c0_551, %c0_552] : memref<8x2x18x18xf32, #tpu.memory_space<vmem>>, vector<1x2x16x16xf32>
    %691 = vector.shape_cast %690 : vector<1x2x16x16xf32> to vector<2x16x16xf32>
    %c0_553 = arith.constant 0 : index
    %c7_554 = arith.constant 7 : index
    %692 = memref.load %arg6[%c0_553, %c7_554] : memref<9x8xf32, #tpu.memory_space<smem>>
    %693 = vector.broadcast %692 : f32 to vector<2x16x16xf32>
    %694 = arith.mulf %691, %693 : vector<2x16x16xf32>
    %c7_555 = arith.constant 7 : index
    %c0_556 = arith.constant 0 : index
    %c0_557 = arith.constant 0 : index
    %c1_558 = arith.constant 1 : index
    %695 = vector.load %arg10[%c7_555, %c0_556, %c0_557, %c1_558] : memref<8x2x18x18xf32, #tpu.memory_space<vmem>>, vector<1x2x16x16xf32>
    %696 = vector.shape_cast %695 : vector<1x2x16x16xf32> to vector<2x16x16xf32>
    %c1_559 = arith.constant 1 : index
    %c7_560 = arith.constant 7 : index
    %697 = memref.load %arg6[%c1_559, %c7_560] : memref<9x8xf32, #tpu.memory_space<smem>>
    %698 = vector.broadcast %697 : f32 to vector<2x16x16xf32>
    %699 = arith.mulf %696, %698 : vector<2x16x16xf32>
    %700 = arith.addf %694, %699 : vector<2x16x16xf32>
    %c7_561 = arith.constant 7 : index
    %c0_562 = arith.constant 0 : index
    %c0_563 = arith.constant 0 : index
    %c2_564 = arith.constant 2 : index
    %701 = vector.load %arg10[%c7_561, %c0_562, %c0_563, %c2_564] : memref<8x2x18x18xf32, #tpu.memory_space<vmem>>, vector<1x2x16x16xf32>
    %702 = vector.shape_cast %701 : vector<1x2x16x16xf32> to vector<2x16x16xf32>
    %c2_565 = arith.constant 2 : index
    %c7_566 = arith.constant 7 : index
    %703 = memref.load %arg6[%c2_565, %c7_566] : memref<9x8xf32, #tpu.memory_space<smem>>
    %704 = vector.broadcast %703 : f32 to vector<2x16x16xf32>
    %705 = arith.mulf %702, %704 : vector<2x16x16xf32>
    %706 = arith.addf %700, %705 : vector<2x16x16xf32>
    %c7_567 = arith.constant 7 : index
    %c0_568 = arith.constant 0 : index
    %c1_569 = arith.constant 1 : index
    %c0_570 = arith.constant 0 : index
    %707 = vector.load %arg10[%c7_567, %c0_568, %c1_569, %c0_570] : memref<8x2x18x18xf32, #tpu.memory_space<vmem>>, vector<1x2x16x16xf32>
    %708 = vector.shape_cast %707 : vector<1x2x16x16xf32> to vector<2x16x16xf32>
    %c3_571 = arith.constant 3 : index
    %c7_572 = arith.constant 7 : index
    %709 = memref.load %arg6[%c3_571, %c7_572] : memref<9x8xf32, #tpu.memory_space<smem>>
    %710 = vector.broadcast %709 : f32 to vector<2x16x16xf32>
    %711 = arith.mulf %708, %710 : vector<2x16x16xf32>
    %712 = arith.addf %706, %711 : vector<2x16x16xf32>
    %c7_573 = arith.constant 7 : index
    %c0_574 = arith.constant 0 : index
    %c1_575 = arith.constant 1 : index
    %c1_576 = arith.constant 1 : index
    %713 = vector.load %arg10[%c7_573, %c0_574, %c1_575, %c1_576] : memref<8x2x18x18xf32, #tpu.memory_space<vmem>>, vector<1x2x16x16xf32>
    %714 = vector.shape_cast %713 : vector<1x2x16x16xf32> to vector<2x16x16xf32>
    %c4_577 = arith.constant 4 : index
    %c7_578 = arith.constant 7 : index
    %715 = memref.load %arg6[%c4_577, %c7_578] : memref<9x8xf32, #tpu.memory_space<smem>>
    %716 = vector.broadcast %715 : f32 to vector<2x16x16xf32>
    %717 = arith.mulf %714, %716 : vector<2x16x16xf32>
    %718 = arith.addf %712, %717 : vector<2x16x16xf32>
    %c7_579 = arith.constant 7 : index
    %c0_580 = arith.constant 0 : index
    %c1_581 = arith.constant 1 : index
    %c2_582 = arith.constant 2 : index
    %719 = vector.load %arg10[%c7_579, %c0_580, %c1_581, %c2_582] : memref<8x2x18x18xf32, #tpu.memory_space<vmem>>, vector<1x2x16x16xf32>
    %720 = vector.shape_cast %719 : vector<1x2x16x16xf32> to vector<2x16x16xf32>
    %c5_583 = arith.constant 5 : index
    %c7_584 = arith.constant 7 : index
    %721 = memref.load %arg6[%c5_583, %c7_584] : memref<9x8xf32, #tpu.memory_space<smem>>
    %722 = vector.broadcast %721 : f32 to vector<2x16x16xf32>
    %723 = arith.mulf %720, %722 : vector<2x16x16xf32>
    %724 = arith.addf %718, %723 : vector<2x16x16xf32>
    %c7_585 = arith.constant 7 : index
    %c0_586 = arith.constant 0 : index
    %c2_587 = arith.constant 2 : index
    %c0_588 = arith.constant 0 : index
    %725 = vector.load %arg10[%c7_585, %c0_586, %c2_587, %c0_588] : memref<8x2x18x18xf32, #tpu.memory_space<vmem>>, vector<1x2x16x16xf32>
    %726 = vector.shape_cast %725 : vector<1x2x16x16xf32> to vector<2x16x16xf32>
    %c6_589 = arith.constant 6 : index
    %c7_590 = arith.constant 7 : index
    %727 = memref.load %arg6[%c6_589, %c7_590] : memref<9x8xf32, #tpu.memory_space<smem>>
    %728 = vector.broadcast %727 : f32 to vector<2x16x16xf32>
    %729 = arith.mulf %726, %728 : vector<2x16x16xf32>
    %730 = arith.addf %724, %729 : vector<2x16x16xf32>
    %c7_591 = arith.constant 7 : index
    %c0_592 = arith.constant 0 : index
    %c2_593 = arith.constant 2 : index
    %c1_594 = arith.constant 1 : index
    %731 = vector.load %arg10[%c7_591, %c0_592, %c2_593, %c1_594] : memref<8x2x18x18xf32, #tpu.memory_space<vmem>>, vector<1x2x16x16xf32>
    %732 = vector.shape_cast %731 : vector<1x2x16x16xf32> to vector<2x16x16xf32>
    %c7_595 = arith.constant 7 : index
    %c7_596 = arith.constant 7 : index
    %733 = memref.load %arg6[%c7_595, %c7_596] : memref<9x8xf32, #tpu.memory_space<smem>>
    %734 = vector.broadcast %733 : f32 to vector<2x16x16xf32>
    %735 = arith.mulf %732, %734 : vector<2x16x16xf32>
    %736 = arith.addf %730, %735 : vector<2x16x16xf32>
    %c7_597 = arith.constant 7 : index
    %c0_598 = arith.constant 0 : index
    %c2_599 = arith.constant 2 : index
    %c2_600 = arith.constant 2 : index
    %737 = vector.load %arg10[%c7_597, %c0_598, %c2_599, %c2_600] : memref<8x2x18x18xf32, #tpu.memory_space<vmem>>, vector<1x2x16x16xf32>
    %738 = vector.shape_cast %737 : vector<1x2x16x16xf32> to vector<2x16x16xf32>
    %c8_601 = arith.constant 8 : index
    %c7_602 = arith.constant 7 : index
    %739 = memref.load %arg6[%c8_601, %c7_602] : memref<9x8xf32, #tpu.memory_space<smem>>
    %740 = vector.broadcast %739 : f32 to vector<2x16x16xf32>
    %741 = arith.mulf %738, %740 : vector<2x16x16xf32>
    %742 = arith.addf %736, %741 : vector<2x16x16xf32>
    %c7_603 = arith.constant 7 : index
    %c0_604 = arith.constant 0 : index
    %743 = memref.load %arg7[%c7_603, %c0_604] : memref<8x4xf32, #tpu.memory_space<smem>>
    %744 = vector.broadcast %743 : f32 to vector<2x16x16xf32>
    %745 = arith.mulf %742, %744 : vector<2x16x16xf32>
    %746 = arith.addf %677, %745 : vector<2x16x16xf32>
    %c7_605 = arith.constant 7 : index
    %c1_606 = arith.constant 1 : index
    %747 = memref.load %arg7[%c7_605, %c1_606] : memref<8x4xf32, #tpu.memory_space<smem>>
    %748 = vector.broadcast %747 : f32 to vector<2x16x16xf32>
    %749 = arith.mulf %742, %748 : vector<2x16x16xf32>
    %750 = arith.addf %681, %749 : vector<2x16x16xf32>
    %c7_607 = arith.constant 7 : index
    %c2_608 = arith.constant 2 : index
    %751 = memref.load %arg7[%c7_607, %c2_608] : memref<8x4xf32, #tpu.memory_space<smem>>
    %752 = vector.broadcast %751 : f32 to vector<2x16x16xf32>
    %753 = arith.mulf %742, %752 : vector<2x16x16xf32>
    %754 = arith.addf %685, %753 : vector<2x16x16xf32>
    %c7_609 = arith.constant 7 : index
    %c3_610 = arith.constant 3 : index
    %755 = memref.load %arg7[%c7_609, %c3_610] : memref<8x4xf32, #tpu.memory_space<smem>>
    %756 = vector.broadcast %755 : f32 to vector<2x16x16xf32>
    %757 = arith.mulf %742, %756 : vector<2x16x16xf32>
    %758 = arith.addf %689, %757 : vector<2x16x16xf32>
    %c0_611 = arith.constant 0 : index
    %759 = memref.load %arg8[%c0_611] : memref<4xf32, #tpu.memory_space<smem>>
    %760 = vector.broadcast %759 : f32 to vector<2x16x16xf32>
    %761 = arith.addf %746, %760 : vector<2x16x16xf32>
    %762 = vector.extract_strided_slice %2 {offsets = [0, 0, 0, 0], sizes = [2, 1, 16, 16], strides = [1, 1, 1, 1]} : vector<2x4x16x16xf32> to vector<2x1x16x16xf32>
    %763 = vector.shape_cast %762 : vector<2x1x16x16xf32> to vector<2x16x16xf32>
    %764 = arith.addf %761, %763 : vector<2x16x16xf32>
    %c1_612 = arith.constant 1 : index
    %765 = memref.load %arg8[%c1_612] : memref<4xf32, #tpu.memory_space<smem>>
    %766 = vector.broadcast %765 : f32 to vector<2x16x16xf32>
    %767 = arith.addf %750, %766 : vector<2x16x16xf32>
    %768 = vector.extract_strided_slice %2 {offsets = [0, 1, 0, 0], sizes = [2, 1, 16, 16], strides = [1, 1, 1, 1]} : vector<2x4x16x16xf32> to vector<2x1x16x16xf32>
    %769 = vector.shape_cast %768 : vector<2x1x16x16xf32> to vector<2x16x16xf32>
    %770 = arith.addf %767, %769 : vector<2x16x16xf32>
    %c2_613 = arith.constant 2 : index
    %771 = memref.load %arg8[%c2_613] : memref<4xf32, #tpu.memory_space<smem>>
    %772 = vector.broadcast %771 : f32 to vector<2x16x16xf32>
    %773 = arith.addf %754, %772 : vector<2x16x16xf32>
    %774 = vector.extract_strided_slice %2 {offsets = [0, 2, 0, 0], sizes = [2, 1, 16, 16], strides = [1, 1, 1, 1]} : vector<2x4x16x16xf32> to vector<2x1x16x16xf32>
    %775 = vector.shape_cast %774 : vector<2x1x16x16xf32> to vector<2x16x16xf32>
    %776 = arith.addf %773, %775 : vector<2x16x16xf32>
    %c3_614 = arith.constant 3 : index
    %777 = memref.load %arg8[%c3_614] : memref<4xf32, #tpu.memory_space<smem>>
    %778 = vector.broadcast %777 : f32 to vector<2x16x16xf32>
    %779 = arith.addf %758, %778 : vector<2x16x16xf32>
    %780 = vector.extract_strided_slice %2 {offsets = [0, 3, 0, 0], sizes = [2, 1, 16, 16], strides = [1, 1, 1, 1]} : vector<2x4x16x16xf32> to vector<2x1x16x16xf32>
    %781 = vector.shape_cast %780 : vector<2x1x16x16xf32> to vector<2x16x16xf32>
    %782 = arith.addf %779, %781 : vector<2x16x16xf32>
    %783 = vector.shape_cast %764 : vector<2x16x16xf32> to vector<2x1x16x16xf32>
    %784 = vector.shape_cast %770 : vector<2x16x16xf32> to vector<2x1x16x16xf32>
    %785 = vector.shape_cast %776 : vector<2x16x16xf32> to vector<2x1x16x16xf32>
    %786 = vector.shape_cast %782 : vector<2x16x16xf32> to vector<2x1x16x16xf32>
    %787 = tpu.concatenate %783, %784, %785, %786 in 1 : vector<2x1x16x16xf32>, vector<2x1x16x16xf32>, vector<2x1x16x16xf32>, vector<2x1x16x16xf32> -> vector<2x4x16x16xf32>
    %c0_615 = arith.constant 0 : index
    %c0_616 = arith.constant 0 : index
    %c0_617 = arith.constant 0 : index
    %c0_618 = arith.constant 0 : index
    %788 = vector.load %arg9[%c0_615, %c0_616, %c0_617, %c0_618] : memref<2x4x16x16xf32, #tpu.memory_space<vmem>>, vector<2x4x16x16xf32>
    tpu.vector_store %arg9[%c0_615, %c0_616, %c0_617, %c0_618], %787 {strides = array<i32>} : memref<2x4x16x16xf32, #tpu.memory_space<vmem>>, vector<2x4x16x16xf32>,
    return
  }
  func.func @transform_0(%arg0: i32) -> (i32, i32, i32, i32) {
    %c0_i32 = arith.constant 0 : i32
    %c0_i32_0 = arith.constant 0 : i32
    %c0_i32_1 = arith.constant 0 : i32
    %c0_i32_2 = arith.constant 0 : i32
    return %arg0, %c0_i32, %c0_i32_0, %c0_i32_1 : i32, i32, i32, i32
  }
  func.func @transform_1(%arg0: i32) -> i32 {
    %c0_i32 = arith.constant 0 : i32
    %c0_i32_0 = arith.constant 0 : i32
    return %c0_i32 : i32
  }
  func.func @transform_2(%arg0: i32) -> i32 {
    %c0_i32 = arith.constant 0 : i32
    %c0_i32_0 = arith.constant 0 : i32
    return %c0_i32 : i32
  }
  func.func @transform_3(%arg0: i32) -> (i32, i32) {
    %c0_i32 = arith.constant 0 : i32
    %c0_i32_0 = arith.constant 0 : i32
    %c0_i32_1 = arith.constant 0 : i32
    return %c0_i32, %c0_i32_0 : i32, i32
  }
  func.func @transform_4(%arg0: i32) -> i32 {
    %c0_i32 = arith.constant 0 : i32
    %c0_i32_0 = arith.constant 0 : i32
    return %c0_i32 : i32
  }
  func.func @transform_5(%arg0: i32) -> (i32, i32) {
    %c0_i32 = arith.constant 0 : i32
    %c0_i32_0 = arith.constant 0 : i32
    %c0_i32_1 = arith.constant 0 : i32
    return %c0_i32, %c0_i32_0 : i32, i32
  }
  func.func @transform_6(%arg0: i32) -> (i32, i32) {
    %c0_i32 = arith.constant 0 : i32
    %c0_i32_0 = arith.constant 0 : i32
    %c0_i32_1 = arith.constant 0 : i32
    return %c0_i32, %c0_i32_0 : i32, i32
  }
  func.func @transform_7(%arg0: i32) -> i32 {
    %c0_i32 = arith.constant 0 : i32
    %c0_i32_0 = arith.constant 0 : i32
    return %c0_i32 : i32
  }
  func.func @transform_8(%arg0: i32) -> (i32, i32, i32, i32) {
    %c0_i32 = arith.constant 0 : i32
    %c0_i32_0 = arith.constant 0 : i32
    %c0_i32_1 = arith.constant 0 : i32
    %c0_i32_2 = arith.constant 0 : i32
    return %arg0, %c0_i32, %c0_i32_0, %c0_i32_1 : i32, i32, i32, i32
  }
}

</mosaic_0001>

<bundles_post_ra>
// kernel: tpu_custom_call.1
= control target key start
LH: loop header
LB: loop body
LE: loop exit
PB: predicated region body
PF: predicated region fallthrough
CT: control target
= control target key end

     0   :  { %13 = vsyncpa [#allocation4], 0  ;;  %s5083_s0 = inlined_call_operand.hbm [shape: f32[2,4,16,16], index: 0, kind: input, shape index: {}]   ;;  %s5084_s1 = inlined_call_operand.vmem [shape: f32[4], index: 1, kind: input, shape index: {}]   ;;  %s5085_s2 = inlined_call_operand.vmem [shape: f32[4], index: 2, kind: input, shape index: {}]   ;;  %s5086_s3 = inlined_call_operand.vmem [shape: f32[4,8], index: 3, kind: input, shape index: {}]   ;;  %s5087_s4 = inlined_call_operand.vmem [shape: f32[8], index: 4, kind: input, shape index: {}]   ;;  %s5088_s5 = inlined_call_operand.vmem [shape: f32[9,8], index: 5, kind: input, shape index: {}]   ;;  %s5089_s6 = inlined_call_operand.vmem [shape: f32[8,4], index: 6, kind: input, shape index: {}]   ;;  %s5090_s7 = inlined_call_operand.vmem [shape: f32[4], index: 7, kind: input, shape index: {}]   ;;  %s5091_s8 = inlined_call_operand.hbm [shape: f32[2,4,16,16], index: 8, kind: output, shape index: {}]  }
   0x1   :  { %14 = vsyncpa [#allocation6], 0 }
   0x2   :  { %15 = vsyncpa [#allocation9], 0 }
   0x3   :  { %16 = vsyncpa [#allocation12], 0 }
   0x4   :  { %17 = vsyncpa [#allocation15], 0  ;;  %s47_s29 = sshll.u32 %s5085_s2, 4  ;;  %s48_s29 = int_to_ptr.vmem [resolvable:$true] %s47_s29 }
   0x5   :  { %18 = vsyncpa [#allocation5], 0  ;;  %s67_s10 = sshll.u32 %s5087_s4, 4  ;;  %s2876_s11 = scalar_lea.vmem %s48_s29, 16  ;;  %s68_s10 = int_to_ptr.vmem [resolvable:$true] %s67_s10 }
   0x6   :  { %p2877_p0 = scmp.ne.s32.totalorder %s48_s29, %s2876_s11  ;;  %p2881_p1 = scmp.lt.s32.totalorder %s48_s29, %s48_s29 }
   0x7   :  { %p2882_p2 = scmp.lt.s32.totalorder %s2876_s11, %s2876_s11 }
   0x9   :  { %p2883_p3 = por %p2882_p2, %p2881_p1 }
   0xb   :  { %p2884_p4 = pnand %p2883_p3, %p2877_p0 }
   0xd   :  { %2887 = shalt.err (!%p2884_p4)
}
   0xe   :  { %s3016_s12 = smov [#allocation8]   ;;  %s2888_s13 = scalar_lea.vmem %s68_s10, 16 }
   0xf   :  { %50 = dma.vmem_to_smem %s48_s29, 16, %s3016_s12, [#allocation9]  }
  0x10   :  { %p2889_p5 = scmp.ne.s32.totalorder %s68_s10, %s2888_s13  ;;  %p2893_p6 = scmp.lt.s32.totalorder %s68_s10, %s68_s10 }
  0x11   :  { %p2894_p7 = scmp.lt.s32.totalorder %s2888_s13, %s2888_s13 }
  0x13   :  { %p2895_p8 = por %p2894_p7, %p2893_p6 }
  0x15   :  { %p2896_p9 = pnand %p2895_p8, %p2889_p5 }
  0x17   :  { %2899 = shalt.err (!%p2896_p9)
}
  0x18   :  { %s3017_s2 = smov [#allocation11]   ;;  %s89_s15 = sshll.u32 %s5089_s6, 4  ;;  %s90_s15 = int_to_ptr.vmem [resolvable:$true] %s89_s15 }
  0x19   :  { %70 = dma.vmem_to_smem %s68_s10, 16, %s3017_s2, [#allocation12]  }
  0x1a   :  { %s2900_s16 = scalar_lea.vmem %s90_s15, 128  ;;  %p2905_p11 = scmp.lt.s32.totalorder %s90_s15, %s90_s15 }
  0x1b   :  { %p2901_p10 = scmp.ne.s32.totalorder %s90_s15, %s2900_s16  ;;  %p2906_p12 = scmp.lt.s32.totalorder %s2900_s16, %s2900_s16 }
  0x1d   :  { %p2907_p13 = por %p2906_p12, %p2905_p11 }
  0x1f   :  { %p2908_p0 = pnand %p2907_p13, %p2901_p10 }
  0x21   :  { %2911 = shalt.err (!%p2908_p0)
}
  0x22   :  { %s3018_s17 = smov [#allocation14]   ;;  %s3019_s18 = smov [#allocation3]  }
  0x23   :  { %92 = dma.vmem_to_smem %s90_s15, 128, %s3018_s17, [#allocation15]  }
  0x24   :  { %s24_s19 = sshll.u32 %s3019_s18, 4  ;;  %s2912_s22 = scalar_lea.hbm %s5083_s0, 2048  ;;  %s25_s19 = int_to_ptr.vmem [resolvable:$true] %s24_s19 }
  0x25   :  { %p2913_p1 = scmp.ne.s32.totalorder %s5083_s0, %s2912_s22  ;;  %p2916_p2 = scmp.lt.u32.totalorder %s2912_s22, %s5083_s0 }
  0x27   :  { %p2918_p3 = pnand %p2916_p2, %p2913_p1 }
  0x29   :  { %2921 = shalt.err (!%p2918_p3)
}
  0x2a   :  { %s2922_s26 = scalar_lea.vmem %s25_s19, 2048  ;;  %p2927_p5 = scmp.lt.s32.totalorder %s25_s19, %s25_s19 }
  0x2b   :  { %p2923_p4 = scmp.ne.s32.totalorder %s25_s19, %s2922_s26  ;;  %p2928_p6 = scmp.lt.s32.totalorder %s2922_s26, %s2922_s26 }
  0x2d   :  { %p2929_p7 = por %p2928_p6, %p2927_p5 }
  0x2f   :  { %p2930_p8 = pnand %p2929_p7, %p2923_p4 }
  0x31   :  { %2933 = shalt.err (!%p2930_p8)
}
  0x32   :  { %s3020_s27 = smov 128   ;;  %s3021_s28 = smov 8  }
  0x33   :  { %30 = dma.hbm_to_vmem [thread:$0]  %s5083_s0, 2048, %s25_s19, [#allocation4], %s3020_s27, %s3020_s27, %s3021_s28  }
  0x34   :  { %s37_s11 = sshll.u32 %s5084_s1, 4  ;;  %s57_s2 = sshll.u32 %s5086_s3, 4  ;;  %s38_s11 = int_to_ptr.vmem [resolvable:$true] %s37_s11  ;;  %s58_s2 = int_to_ptr.vmem [resolvable:$true] %s57_s2 }
  0x35   :  { %s2934_s4 = scalar_lea.vmem %s38_s11, 16  ;;  %p2939_p10 = scmp.lt.s32.totalorder %s38_s11, %s38_s11 }
  0x36   :  { %p2935_p9 = scmp.ne.s32.totalorder %s38_s11, %s2934_s4  ;;  %p2940_p11 = scmp.lt.s32.totalorder %s2934_s4, %s2934_s4 }
  0x38   :  { %p2941_p12 = por %p2940_p11, %p2939_p10 }
  0x3a   :  { %p2942_p13 = pnand %p2941_p12, %p2935_p9 }
  0x3c   :  { %2945 = shalt.err (!%p2942_p13)
}
  0x3d   :  { %s3022_s14 = smov [#allocation7]   ;;  %s2946_s0 = scalar_lea.vmem %s58_s2, 64 }
  0x3e   :  { %40 = dma.vmem_to_smem %s38_s11, 16, %s3022_s14, [#allocation6]  }
  0x3f   :  { %p2947_p0 = scmp.ne.s32.totalorder %s58_s2, %s2946_s0  ;;  %p2951_p1 = scmp.lt.s32.totalorder %s58_s2, %s58_s2 }
  0x40   :  { %p2952_p2 = scmp.lt.s32.totalorder %s2946_s0, %s2946_s0 }
  0x42   :  { %p2953_p3 = por %p2952_p2, %p2951_p1 }
  0x44   :  { %p2954_p4 = pnand %p2953_p3, %p2947_p0 }
  0x46   :  { %2957 = shalt.err (!%p2954_p4)
}
  0x47   :  { %s3023_s1 = smov [#allocation10]   ;;  %s76_s16 = sshll.u32 %s5088_s5, 4  ;;  %s77_s16 = int_to_ptr.vmem [resolvable:$true] %s76_s16 }
  0x48   :  { %60 = dma.vmem_to_smem %s58_s2, 64, %s3023_s1, [#allocation9]  }
  0x49   :  { %s99_s19 = sshll.u32 %s5090_s7, 4  ;;  %s2958_s20 = scalar_lea.vmem %s77_s16, 256  ;;  %s100_s19 = int_to_ptr.vmem [resolvable:$true] %s99_s19 }
  0x4a   :  { %p2959_p5 = scmp.ne.s32.totalorder %s77_s16, %s2958_s20  ;;  %p2963_p6 = scmp.lt.s32.totalorder %s77_s16, %s77_s16 }
  0x4b   :  { %p2964_p7 = scmp.lt.s32.totalorder %s2958_s20, %s2958_s20 }
  0x4d   :  { %p2965_p8 = por %p2964_p7, %p2963_p6 }
  0x4f   :  { %p2966_p9 = pnand %p2965_p8, %p2959_p5 }
  0x51   :  { %2969 = shalt.err (!%p2966_p9)
}
  0x52   :  { %s3024_s21 = smov [#allocation13]   ;;  %s2970_s22 = scalar_lea.vmem %s100_s19, 16 }
  0x53   :  { %82 = dma.vmem_to_smem %s77_s16, 256, %s3024_s21, [#allocation12], %s3020_s27, %s3020_s27, %s3021_s28  }
  0x54   :  { %p2971_p10 = scmp.ne.s32.totalorder %s100_s19, %s2970_s22  ;;  %p2975_p11 = scmp.lt.s32.totalorder %s100_s19, %s100_s19 }
  0x55   :  { %p2976_p12 = scmp.lt.s32.totalorder %s2970_s22, %s2970_s22 }
  0x57   :  { %p2977_p13 = por %p2976_p12, %p2975_p11 }
  0x59   :  { %p2978_p0 = pnand %p2977_p13, %p2971_p10 }
  0x5b   :  { %2981 = shalt.err (!%p2978_p0)
}
  0x5c   :  { %s3025_s5 = smov [#allocation16]  }
  0x5d   :  { %102 = dma.vmem_to_smem %s100_s19, 16, %s3025_s5, [#allocation15]  }
  0x5e   :  { %3004 = dma.done.wait [#allocation4], 2048  }
  0x5f   :  { %3005 = vsyncadd [#allocation4], 4294965248 }
  0x60   :  { %3006 = dma.done.wait [#allocation6], 16  }
  0x61   :  { %3007 = vsyncadd [#allocation6], 4294967280 }
  0x62   :  { %3008 = dma.done.wait [#allocation9], 80  }
  0x63   :  { %3009 = vsyncadd [#allocation9], 4294967216 }
  0x64   :  { %3010 = dma.done.wait [#allocation12], 272  }
  0x65   :  { %3011 = vsyncadd [#allocation12], 4294967024 }
  0x66   :  { %3012 = dma.done.wait [#allocation15], 144  }
  0x67   :  { %3013 = vsyncadd [#allocation15], 4294967152 }
  0x68   :  { %127 = sfence }
  0x69   :  { %s194_s7 = sld [smem:[#allocation7]]  ;;  %s2696_s24 = sld [smem:[#allocation7 + $0x1]]  ;;  %v186_v0 = vld [vmem:[#allocation3 + $0x40] sm:$0xff]  ;;  %v188_v2 = vld [vmem:[#allocation3 + $0x50] sm:$0xff]  ;;  %v187_v37 = vld [vmem:[#allocation3 + $0x48] sm:$0xff]  ;;  %vm128_vm0 = vcmask 146432  }
  0x6a   :  { %s200_s23 = sld [smem:[#allocation8]]  ;;  %s2697_s6 = sld [smem:[#allocation8 + $0x1]]  ;;  %v178_v1 = vld [vmem:[#allocation3] sm:$0xff]  ;;  %v180_v3 = vld [vmem:[#allocation3 + $0x10] sm:$0xff]  ;;  %v189_v42 = vld [vmem:[#allocation3 + $0x58] sm:$0xff]  ;;  %vm131_vm1 = vcmask 140288  }
  0x6b   :  { %s2698_s25 = sld [smem:[#allocation7 + $0x2]]  ;;  %s2700_s29 = sld [smem:[#allocation7 + $0x3]]  ;;  %v190_v4 = vld [vmem:[#allocation3 + $0x60] sm:$0xff]  ;;  %v192_v6 = vld [vmem:[#allocation3 + $0x70] sm:$0xff]  ;;  %v191_v47 = vld [vmem:[#allocation3 + $0x68] sm:$0xff]  ;;  %vm316_vm2 = vcmask 138248  }
  0x6c   :  { %s2699_s26 = sld [smem:[#allocation8 + $0x2]]  ;;  %s2701_s30 = sld [smem:[#allocation8 + $0x3]]  ;;  %v182_v27 = vld [vmem:[#allocation3 + $0x20] sm:$0xff]  ;;  %v184_v28 = vld [vmem:[#allocation3 + $0x30] sm:$0xff]  ;;  %v193_v51 = vld [vmem:[#allocation3 + $0x78] sm:$0xff]  ;;  %vm2658_vm3 = vcmask 130048  }
  0x6d   :  { %s258_s9 = sld [smem:[#allocation10]]  ;;  %s3190_s2 = sld [smem:[#allocation10 + $0x1]] }
  0x6e   :  { %s264_s10 = sld [smem:[#allocation11]]  ;;  %s3195_s4 = sld [smem:[#allocation11 + $0x1]] }
  0x6f   :  { %s2702_s11 = sld [smem:[#allocation10 + $0x80]]  ;;  %v3115_v5 = vstv %s194_s7  ;;  %v3120_v9 = vstv %s2696_s24  ;;  %s3204_s14 = sld [smem:[#allocation10 + $0x81]] }
  0x70   :  { %s2703_s12 = sld [smem:[#allocation10 + $0x100]]  ;;  %v198_v7 = vmul.f32 %v3115_v5, %v186_v0  ;;  %v3118_v8 = vstv %s200_s23  ;;  %v196_v10 = vmul.f32 %v3115_v5, %v178_v1  ;;  %v214_v11 = vmul.f32 %v3120_v9, %v188_v2  ;;  %v179_v1 = vld [vmem:[#allocation3 + $0x8] sm:$0xff]  ;;  %v181_v2 = vld [vmem:[#allocation3 + $0x18] sm:$0xff]  ;;  %s3215_s0 = sld [smem:[#allocation10 + $0x101]] }
  0x71   :  { %s2704_s13 = sld [smem:[#allocation10 + $0x180]]  ;;  %v3124_v12 = vstv %s2697_s6  ;;  %v3126_v13 = vstv %s2698_s25  ;;  %v212_v14 = vmul.f32 %v3120_v9, %v180_v3  ;;  %v3133_v18 = vstv %s2700_s29  ;;  %s3217_s1 = sld [smem:[#allocation10 + $0x181]] }
  0x72   :  { %v204_v15 = vadd.f32 %v3118_v8, %v198_v7  ;;  %v230_v16 = vmul.f32 %v3126_v13, %v190_v4  ;;  %v3131_v17 = vstv %s2699_s26  ;;  %v220_v19 = vadd.f32 %v3124_v12, %v214_v11  ;;  %s3026_s3 = smov 1   ;;  %s3255_s15 = sld [smem:[#allocation10 + $0x2]] }
  0x73   :  { %v246_v20 = vmul.f32 %v3133_v18, %v192_v6  ;;  %v3137_v21 = vstv %s2701_s30  ;;  %v3139_v22 = vstv %s258_s9  ;;  %v202_v35 = vadd.f32 %v3118_v8, %v196_v10  ;;  %v183_v10 = vld [vmem:[#allocation3 + $0x28] sm:$0xff]  ;;  %s3257_s16 = sld [smem:[#allocation11 + $0x2]]  ;;  %s3281_s20 = sld [smem:[#allocation10 + $0x3]] }
  0x74   :  { %v3141_v23 = vmax.f32 %v204_v15, 0.0  ;;  %v236_v24 = vadd.f32 %v3131_v17, %v230_v16  ;;  %v3144_v25 = vstv %s264_s10  ;;  %v3148_v29 = vmax.f32 %v220_v19, 0.0  ;;  %s3262_s17 = sld [smem:[#allocation10 + $0x82]]  ;;  %s3293_s21 = sld [smem:[#allocation11 + $0x3]] }
  0x75   :  { %v3146_v26 = vstv %s2702_s11  ;;  %v252_v30 = vadd.f32 %v3137_v21, %v246_v20  ;;  %v218_v36 = vadd.f32 %v3124_v12, %v212_v14  ;;  %v228_v40 = vmul.f32 %v3126_v13, %v182_v27  ;;  %s3264_s18 = sld [smem:[#allocation10 + $0x102]]  ;;  %s3297_s22 = sld [smem:[#allocation10 + $0x83]] }
  0x76   :  { %v3151_v31 = vstv %s2703_s12  ;;  %v3155_v33 = vmax.f32 %v236_v24, 0.0  ;;  %v262_v34 = vmul.f32 %v3139_v22, %v3141_v23  ;;  %v274_v39 = vmul.f32 %v3146_v26, %v3148_v29  ;;  %v185_v24 = vld [vmem:[#allocation3 + $0x38] sm:$0xff]  ;;  %s3274_s19 = sld [smem:[#allocation10 + $0x182]]  ;;  %s3301_s5 = sld [smem:[#allocation10 + $0x103]] }
  0x77   :  { %v3153_v32 = vstv %s2704_s13  ;;  %v3161_v38 = vmax.f32 %v252_v30, 0.0  ;;  %v244_v41 = vmul.f32 %v3133_v18, %v184_v28  ;;  %v3170_v45 = vmax.f32 %v202_v35, 0.0  ;;  %s3303_s7 = sld [smem:[#allocation10 + $0x183]]  ;;  %s3311_s23 = sld [smem:[#allocation10 + $0x4]] }
  0x78   :  { %v268_v43 = vadd.f32 %v3144_v25, %v262_v34  ;;  %v284_v44 = vmul.f32 %v3151_v31, %v3155_v33  ;;  %v3172_v46 = vmax.f32 %v218_v36, 0.0  ;;  %v234_v49 = vadd.f32 %v3131_v17, %v228_v40  ;;  %s3330_s24 = sld [smem:[#allocation11 + $0x4]]  ;;  %s3359_s29 = sld [smem:[#allocation10 + $0x5]] }
  0x79   :  { %v294_v48 = vmul.f32 %v3153_v32, %v3161_v38  ;;  %v250_v50 = vadd.f32 %v3137_v21, %v244_v41  ;;  %v199_v52 = vmul.f32 %v3115_v5, %v187_v37  ;;  %v260_v54 = vmul.f32 %v3139_v22, %v3170_v45  ;;  %s3332_s6 = sld [smem:[#allocation10 + $0x84]]  ;;  %s3364_s30 = sld [smem:[#allocation11 + $0x5]] }
  0x7a   :  { %v278_v53 = vadd.f32 %v274_v39, %v268_v43  ;;  %v272_v55 = vmul.f32 %v3146_v26, %v3172_v46  ;;  %v215_v56 = vmul.f32 %v3120_v9, %v189_v42  ;;  %v3184_v57 = vmax.f32 %v234_v49, 0.0  ;;  %s3335_s25 = sld [smem:[#allocation10 + $0x104]]  ;;  %s3368_s9 = sld [smem:[#allocation10 + $0x85]] }
  0x7b   :  { %v3186_v58 = vmax.f32 %v250_v50, 0.0  ;;  %v205_v59 = vadd.f32 %v3118_v8, %v199_v52  ;;  %v231_v60 = vmul.f32 %v3126_v13, %v191_v47  ;;  %v266_v62 = vadd.f32 %v3144_v25, %v260_v54  ;;  %s3337_s26 = sld [smem:[#allocation10 + $0x184]]  ;;  %s3370_s10 = sld [smem:[#allocation10 + $0x105]] }
  0x7c   :  { %v288_v61 = vadd.f32 %v284_v44, %v278_v53  ;;  %v221_v63 = vadd.f32 %v3124_v12, %v215_v56  ;;  %v247_v0 = vmul.f32 %v3133_v18, %v193_v51  ;;  %v282_v3 = vmul.f32 %v3151_v31, %v3184_v57  ;;  %s3378_s11 = sld [smem:[#allocation10 + $0x185]]  ;;  %s3398_s12 = sld [smem:[#allocation10 + $0x6]] }
  0x7d   :  { %v292_v4 = vmul.f32 %v3153_v32, %v3186_v58  ;;  %v3201_v6 = vmax.f32 %v205_v59, 0.0  ;;  %v237_v7 = vadd.f32 %v3131_v17, %v231_v60  ;;  %v276_v14 = vadd.f32 %v272_v55, %v266_v62  ;;  %s3400_s13 = sld [smem:[#allocation11 + $0x6]] }
  0x7e   :  { %v298_v11 = vadd.f32 %v294_v48, %v288_v61  ;;  %v3206_v15 = vmax.f32 %v221_v63, 0.0  ;;  %v253_v16 = vadd.f32 %v3137_v21, %v247_v0  ;;  %v197_v27 = vmul.f32 %v3115_v5, %v179_v1 }
  0x7f   :  { %v3209_v19 = vmax.f32 %v237_v7, 0.0  ;;  %v263_v20 = vmul.f32 %v3139_v22, %v3201_v6  ;;  %v213_v28 = vmul.f32 %v3120_v9, %v181_v2  ;;  %v286_v30 = vadd.f32 %v282_v3, %v276_v14 }
  0x80   :  { %308 = vrot.lane.b32.xlu1 %v298_v11, %s3026_s3  ;;  %v3220_v34 = vmax.f32 %v253_v16, 0.0  ;;  %v275_v35 = vmul.f32 %v3146_v26, %v3206_v15  ;;  %v229_v36 = vmul.f32 %v3126_v13, %v183_v10  ;;  %v203_v37 = vadd.f32 %v3118_v8, %v197_v27 }
  0x81   :  { %v269_v5 = vadd.f32 %v3144_v25, %v263_v20  ;;  %v285_v9 = vmul.f32 %v3151_v31, %v3209_v19  ;;  %v219_v39 = vadd.f32 %v3124_v12, %v213_v28  ;;  %v296_v40 = vadd.f32 %v292_v4, %v286_v30 }
  0x82   :  { %v295_v41 = vmul.f32 %v3153_v32, %v3220_v34  ;;  %v235_v42 = vadd.f32 %v3131_v17, %v229_v36  ;;  %v245_v43 = vmul.f32 %v3133_v18, %v185_v24  ;;  %v3234_v44 = vmax.f32 %v203_v37, 0.0 }
  0x83   :  { %v279_v13 = vadd.f32 %v275_v35, %v269_v5  ;;  %v3236_v47 = vmax.f32 %v219_v39, 0.0  ;;  %v322_v48 = vstv %s3190_s2  ;;  %304 = vrot.lane.b32.xlu0 %v296_v40, %s3026_s3  ;;  %v328_v50 = vstv %s3195_s4  ;;  %s3402_s2 = sld [smem:[#allocation10 + $0x86]] }
  0x84   :  { %v3240_v8 = vmax.f32 %v235_v42, 0.0  ;;  %v251_v12 = vadd.f32 %v3137_v21, %v245_v43  ;;  %v323_v49 = vmul.f32 %v322_v48, %v3170_v45  ;;  %v261_v18 = vmul.f32 %v3139_v22, %v3234_v44  ;;  %s3407_s4 = sld [smem:[#allocation10 + $0x106]] }
  0x85   :  { %v289_v17 = vadd.f32 %v285_v9, %v279_v13  ;;  %v273_v51 = vmul.f32 %v3146_v26, %v3236_v47  ;;  %v334_v52 = vstv %s3204_s14  ;;  %v344_v22 = vstv %s3215_s0  ;;  %s3412_s14 = sld [smem:[#allocation10 + $0x186]]  ;;  %s3440_s0 = sld [smem:[#allocation10 + $0x7]] }
  0x86   :  { %v3250_v53 = vmax.f32 %v251_v12, 0.0  ;;  %v283_v54 = vmul.f32 %v3151_v31, %v3240_v8  ;;  %v329_v55 = vadd.f32 %v328_v50, %v323_v49  ;;  %v335_v21 = vmul.f32 %v334_v52, %v3172_v46 }
  0x87   :  { %v299_v56 = vadd.f32 %v295_v41, %v289_v17  ;;  %v267_v59 = vadd.f32 %v3144_v25, %v261_v18  ;;  %v354_v60 = vstv %s3217_s1  ;;  %v345_v61 = vmul.f32 %v344_v22, %v3184_v57  ;;  %s3450_s1 = sld [smem:[#allocation11 + $0x7]] }
  0x88   :  { %v293_v26 = vmul.f32 %v3153_v32, %v3250_v53  ;;  %v339_v31 = vadd.f32 %v335_v21, %v329_v55  ;;  %v355_v62 = vmul.f32 %v354_v60, %v3186_v58  ;;  %v324_v0 = vmul.f32 %v322_v48, %v3234_v44 }
  0x89   :  { %310 = vrot.lane.b32.xlu1 %v299_v56, %s3026_s3  ;;  %v277_v63 = vadd.f32 %v273_v51, %v267_v59  ;;  %v336_v25 = vmul.f32 %v334_v52, %v3236_v47  ;;  %v346_v1 = vmul.f32 %v344_v22, %v3240_v8  ;;  %v356_v3 = vmul.f32 %v354_v60, %v3250_v53 }
  0x8a   :  { %v349_v2 = vadd.f32 %v345_v61, %v339_v31  ;;  %v325_v32 = vmul.f32 %v322_v48, %v3141_v23  ;;  %v337_v4 = vmul.f32 %v334_v52, %v3148_v29  ;;  %v330_v10 = vadd.f32 %v328_v50, %v324_v0 }
  0x8b   :  { %v287_v7 = vadd.f32 %v283_v54, %v277_v63  ;;  %v347_v11 = vmul.f32 %v344_v22, %v3155_v33  ;;  %v357_v14 = vmul.f32 %v354_v60, %v3161_v38  ;;  %v326_v24 = vmul.f32 %v322_v48, %v3201_v6 }
  0x8c   :  { %v359_v16 = vadd.f32 %v355_v62, %v349_v2  ;;  %v331_v20 = vadd.f32 %v328_v50, %v325_v32  ;;  %v338_v27 = vmul.f32 %v334_v52, %v3206_v15  ;;  %v340_v30 = vadd.f32 %v336_v25, %v330_v10 }
  0x8d   :  { %v297_v28 = vadd.f32 %v293_v26, %v287_v7  ;;  %v348_v35 = vmul.f32 %v344_v22, %v3209_v19  ;;  %v358_v36 = vmul.f32 %v354_v60, %v3220_v34  ;;  %v332_v9 = vadd.f32 %v328_v50, %v326_v24 }
  0x8e   :  { %v341_v5 = vadd.f32 %v337_v4, %v331_v20  ;;  %v385_v37 = vstv %s3255_s15  ;;  %v391_v39 = vstv %s3257_s16  ;;  %v350_v40 = vadd.f32 %v346_v1, %v340_v30  ;;  %s3452_s15 = sld [smem:[#allocation10 + $0x87]] }
  0x8f   :  { %306 = vrot.lane.b32.xlu0 %v297_v28, %s3026_s3  ;;  %v386_v41 = vmul.f32 %v385_v37, %v3170_v45  ;;  %v397_v42 = vstv %s3262_s17  ;;  %v407_v43 = vstv %s3264_s18  ;;  %v342_v48 = vadd.f32 %v338_v27, %v332_v9  ;;  %s3456_s16 = sld [smem:[#allocation10 + $0x107]]  ;;  %s2740_s18 = sld [smem:[#allocation13 + $0x80]] }
  0x90   :  { %v351_v13 = vadd.f32 %v347_v11, %v341_v5  ;;  %v398_v12 = vmul.f32 %v397_v42, %v3172_v46  ;;  %v408_v49 = vmul.f32 %v407_v43, %v3184_v57  ;;  %v360_v50 = vadd.f32 %v356_v3, %v350_v40  ;;  %s3463_s17 = sld [smem:[#allocation10 + $0x187]] }
  0x91   :  { %v392_v17 = vadd.f32 %v391_v39, %v386_v41  ;;  %v417_v18 = vstv %s3274_s19  ;;  %v387_v51 = vmul.f32 %v385_v37, %v3234_v44  ;;  %v352_v54 = vadd.f32 %v348_v35, %v342_v48  ;;  %s2741_s19 = sld [smem:[#allocation13 + $0x100]] }
  0x92   :  { %v361_v52 = vadd.f32 %v357_v14, %v351_v13  ;;  %v418_v55 = vmul.f32 %v417_v18, %v3186_v58  ;;  %v399_v21 = vmul.f32 %v397_v42, %v3236_v47  ;;  %369 = vrot.lane.b32.xlu1 %v360_v50, %s3026_s3  ;;  %v409_v22 = vmul.f32 %v407_v43, %v3240_v8 }
  0x93   :  { %367 = vrot.lane.b32.xlu0 %v359_v16, %s3026_s3  ;;  %v402_v56 = vadd.f32 %v398_v12, %v392_v17  ;;  %v393_v59 = vadd.f32 %v391_v39, %v387_v51  ;;  %v448_v60 = vstv %s3281_s20  ;;  %v362_v26 = vadd.f32 %v358_v36, %v352_v54  ;;  %s2743_s20 = sld [smem:[#allocation13 + $0x200]] }
  0x94   :  { %v419_v31 = vmul.f32 %v417_v18, %v3250_v53  ;;  %v388_v61 = vmul.f32 %v385_v37, %v3141_v23  ;;  %v400_v62 = vmul.f32 %v397_v42, %v3148_v29  ;;  %v410_v25 = vmul.f32 %v407_v43, %v3155_v33 }
  0x95   :  { %v412_v63 = vadd.f32 %v408_v49, %v402_v56  ;;  %v403_v0 = vadd.f32 %v399_v21, %v393_v59  ;;  %v420_v1 = vmul.f32 %v417_v18, %v3161_v38  ;;  %v389_v3 = vmul.f32 %v385_v37, %v3201_v6 }
  0x96   :  { %v394_v2 = vadd.f32 %v391_v39, %v388_v61  ;;  %v401_v32 = vmul.f32 %v397_v42, %v3206_v15  ;;  %v411_v4 = vmul.f32 %v407_v43, %v3209_v19  ;;  %373 = vrot.lane.b32.xlu1 %v362_v26, %s3026_s3  ;;  %v421_v11 = vmul.f32 %v417_v18, %v3220_v34 }
  0x97   :  { %371 = vrot.lane.b32.xlu0 %v361_v52, %s3026_s3  ;;  %v422_v7 = vadd.f32 %v418_v55, %v412_v63  ;;  %v413_v10 = vadd.f32 %v409_v22, %v403_v0  ;;  %v454_v14 = vstv %s3293_s21  ;;  %v395_v20 = vadd.f32 %v391_v39, %v389_v3  ;;  %s3029_s21 = smov 126  }
  0x98   :  { %v404_v16 = vadd.f32 %v400_v62, %v394_v2  ;;  %v449_v24 = vmul.f32 %v448_v60, %v3170_v45  ;;  %v460_v27 = vstv %s3297_s22  ;;  %v470_v35 = vstv %s3301_s5  ;;  %s2744_s22 = sld [smem:[#allocation13 + $0x280]] }
  0x99   :  { %v423_v28 = vadd.f32 %v419_v31, %v413_v10  ;;  %v461_v30 = vmul.f32 %v460_v27, %v3172_v46  ;;  %v480_v36 = vstv %s3303_s7  ;;  %v405_v9 = vadd.f32 %v401_v32, %v395_v20  ;;  %s2746_s5 = sld [smem:[#allocation13 + $0x380]] }
  0x9a   :  { %v414_v5 = vadd.f32 %v410_v25, %v404_v16  ;;  %v455_v37 = vadd.f32 %v454_v14, %v449_v24  ;;  %v471_v40 = vmul.f32 %v470_v35, %v3184_v57  ;;  %v481_v39 = vmul.f32 %v480_v36, %v3186_v58  ;;  %s2747_s7 = sld [smem:[#allocation13 + $0x400]] }
  0x9b   :  { %430 = vrot.lane.b32.xlu0 %v422_v7, %s3026_s3  ;;  %432 = vrot.lane.b32.xlu1 %v423_v28, %s3026_s3  ;;  %v450_v41 = vmul.f32 %v448_v60, %v3234_v44  ;;  %v462_v42 = vmul.f32 %v460_v27, %v3236_v47  ;;  %v511_v43 = vstv %s3311_s23  ;;  %v415_v48 = vadd.f32 %v411_v4, %v405_v9  ;;  %s2752_s23 = sld [smem:[#allocation13 + $0x81]] }
  0x9c   :  { %v424_v13 = vadd.f32 %v420_v1, %v414_v5  ;;  %v465_v12 = vadd.f32 %v461_v30, %v455_v37  ;;  %v472_v49 = vmul.f32 %v470_v35, %v3240_v8  ;;  %v482_v17 = vmul.f32 %v480_v36, %v3250_v53 }
  0x9d   :  { %v456_v50 = vadd.f32 %v454_v14, %v450_v41  ;;  %v451_v18 = vmul.f32 %v448_v60, %v3141_v23  ;;  %v463_v51 = vmul.f32 %v460_v27, %v3148_v29  ;;  %v425_v52 = vadd.f32 %v421_v11, %v415_v48 }
  0x9e   :  { %v475_v54 = vadd.f32 %v471_v40, %v465_v12  ;;  %v473_v55 = vmul.f32 %v470_v35, %v3155_v33  ;;  %v483_v21 = vmul.f32 %v480_v36, %v3161_v38  ;;  %v452_v22 = vmul.f32 %v448_v60, %v3201_v6 }
  0x9f   :  { %434 = vrot.lane.b32.xlu0 %v424_v13, %s3026_s3  ;;  %v466_v56 = vadd.f32 %v462_v42, %v456_v50  ;;  %v457_v59 = vadd.f32 %v454_v14, %v451_v18  ;;  %v464_v26 = vmul.f32 %v460_v27, %v3206_v15  ;;  %436 = vrot.lane.b32.xlu1 %v425_v52, %s3026_s3  ;;  %v517_v2 = vstv %s3330_s24  ;;  %s2753_s24 = sld [smem:[#allocation13 + $0x101]] }
  0xa0   :  { %v485_v31 = vadd.f32 %v481_v39, %v475_v54  ;;  %v474_v61 = vmul.f32 %v470_v35, %v3209_v19  ;;  %v484_v62 = vmul.f32 %v480_v36, %v3220_v34  ;;  %v512_v63 = vmul.f32 %v511_v43, %v3170_v45 }
  0xa1   :  { %v476_v0 = vadd.f32 %v472_v49, %v466_v56  ;;  %v467_v25 = vadd.f32 %v463_v51, %v457_v59  ;;  %v458_v1 = vadd.f32 %v454_v14, %v452_v22  ;;  %v523_v32 = vstv %s3332_s6  ;;  %s2755_s6 = sld [smem:[#allocation13 + $0x201]] }
  0xa2   :  { %v518_v3 = vadd.f32 %v517_v2, %v512_v63  ;;  %v533_v60 = vstv %s3335_s25  ;;  %v543_v4 = vstv %s3337_s26  ;;  %v524_v16 = vmul.f32 %v523_v32, %v3172_v46  ;;  %s2756_s25 = sld [smem:[#allocation13 + $0x281]] }
  0xa3   :  { %493 = vrot.lane.b32.xlu0 %v485_v31, %s3026_s3  ;;  %v486_v7 = vadd.f32 %v482_v17, %v476_v0  ;;  %v477_v10 = vadd.f32 %v473_v55, %v467_v25  ;;  %v468_v11 = vadd.f32 %v464_v26, %v458_v1  ;;  %v534_v14 = vmul.f32 %v533_v60, %v3184_v57  ;;  %s2758_s26 = sld [smem:[#allocation13 + $0x381]] }
  0xa4   :  { %v544_v20 = vmul.f32 %v543_v4, %v3186_v58  ;;  %v513_v24 = vmul.f32 %v511_v43, %v3234_v44  ;;  %v525_v27 = vmul.f32 %v523_v32, %v3236_v47  ;;  %v528_v35 = vadd.f32 %v524_v16, %v518_v3 }
  0xa5   :  { %495 = vrot.lane.b32.xlu1 %v486_v7, %s3026_s3  ;;  %v487_v28 = vadd.f32 %v483_v21, %v477_v10  ;;  %v478_v30 = vadd.f32 %v474_v61, %v468_v11  ;;  %v535_v36 = vmul.f32 %v533_v60, %v3240_v8  ;;  %v545_v9 = vmul.f32 %v543_v4, %v3250_v53 }
  0xa6   :  { %v519_v5 = vadd.f32 %v517_v2, %v513_v24  ;;  %v514_v37 = vmul.f32 %v511_v43, %v3141_v23  ;;  %v526_v40 = vmul.f32 %v523_v32, %v3148_v29  ;;  %v538_v41 = vadd.f32 %v534_v14, %v528_v35 }
  0xa7   :  { %497 = vrot.lane.b32.xlu0 %v487_v28, %s3026_s3  ;;  %v488_v39 = vadd.f32 %v484_v62, %v478_v30  ;;  %v536_v42 = vmul.f32 %v533_v60, %v3155_v33  ;;  %v546_v13 = vmul.f32 %v543_v4, %v3161_v38  ;;  %v515_v49 = vmul.f32 %v511_v43, %v3201_v6 }
  0xa8   :  { %v529_v48 = vadd.f32 %v525_v27, %v519_v5  ;;  %v520_v12 = vadd.f32 %v517_v2, %v514_v37  ;;  %v527_v50 = vmul.f32 %v523_v32, %v3206_v15  ;;  %v548_v17 = vadd.f32 %v544_v20, %v538_v41 }
  0xa9   :  { %499 = vrot.lane.b32.xlu1 %v488_v39, %s3026_s3  ;;  %v537_v18 = vmul.f32 %v533_v60, %v3209_v19  ;;  %v547_v51 = vmul.f32 %v543_v4, %v3220_v34  ;;  %v574_v52 = vstv %s3359_s29  ;;  %v521_v21 = vadd.f32 %v517_v2, %v515_v49  ;;  %s2759_s29 = sld [smem:[#allocation13 + $0x401]] }
  0xaa   :  { %v539_v54 = vadd.f32 %v535_v36, %v529_v48  ;;  %v530_v55 = vadd.f32 %v526_v40, %v520_v12  ;;  %v575_v56 = vmul.f32 %v574_v52, %v3170_v45  ;;  %v580_v59 = vstv %s3364_s30  ;;  %s2765_s30 = sld [smem:[#allocation13 + $0x82]] }
  0xab   :  { %556 = vrot.lane.b32.xlu0 %v548_v17, %s3026_s3  ;;  %v586_v43 = vstv %s3368_s9  ;;  %v596_v22 = vstv %s3370_s10  ;;  %v576_v26 = vmul.f32 %v574_v52, %v3234_v44  ;;  %v531_v62 = vadd.f32 %v527_v50, %v521_v21  ;;  %s2766_s9 = sld [smem:[#allocation13 + $0x102]] }
  0xac   :  { %v549_v31 = vadd.f32 %v545_v9, %v539_v54  ;;  %v540_v61 = vadd.f32 %v536_v42, %v530_v55  ;;  %v581_v63 = vadd.f32 %v580_v59, %v575_v56  ;;  %v587_v0 = vmul.f32 %v586_v43, %v3172_v46  ;;  %s2768_s10 = sld [smem:[#allocation13 + $0x202]] }
  0xad   :  { %v597_v25 = vmul.f32 %v596_v22, %v3184_v57  ;;  %v606_v1 = vstv %s3378_s11  ;;  %v582_v2 = vadd.f32 %v580_v59, %v576_v26  ;;  %v541_v32 = vadd.f32 %v537_v18, %v531_v62  ;;  %s2769_s11 = sld [smem:[#allocation13 + $0x282]] }
  0xae   :  { %558 = vrot.lane.b32.xlu1 %v549_v31, %s3026_s3  ;;  %v550_v3 = vadd.f32 %v546_v13, %v540_v61  ;;  %v607_v60 = vmul.f32 %v606_v1, %v3186_v58  ;;  %v588_v4 = vmul.f32 %v586_v43, %v3236_v47  ;;  %v591_v7 = vadd.f32 %v587_v0, %v581_v63 }
  0xaf   :  { %v598_v10 = vmul.f32 %v596_v22, %v3240_v8  ;;  %v608_v11 = vmul.f32 %v606_v1, %v3250_v53  ;;  %v577_v16 = vmul.f32 %v574_v52, %v3141_v23  ;;  %v551_v14 = vadd.f32 %v547_v51, %v541_v32 }
  0xb0   :  { %560 = vrot.lane.b32.xlu0 %v550_v3, %s3026_s3  ;;  %v592_v20 = vadd.f32 %v588_v4, %v582_v2  ;;  %v589_v24 = vmul.f32 %v586_v43, %v3148_v29  ;;  %v599_v27 = vmul.f32 %v596_v22, %v3155_v33  ;;  %v601_v28 = vadd.f32 %v597_v25, %v591_v7 }
  0xb1   :  { %v583_v30 = vadd.f32 %v580_v59, %v577_v16  ;;  %v609_v35 = vmul.f32 %v606_v1, %v3161_v38  ;;  %v578_v36 = vmul.f32 %v574_v52, %v3201_v6  ;;  %v590_v9 = vmul.f32 %v586_v43, %v3206_v15 }
  0xb2   :  { %562 = vrot.lane.b32.xlu1 %v551_v14, %s3026_s3  ;;  %v602_v5 = vadd.f32 %v598_v10, %v592_v20  ;;  %v600_v37 = vmul.f32 %v596_v22, %v3209_v19  ;;  %v610_v40 = vmul.f32 %v606_v1, %v3220_v34  ;;  %v611_v39 = vadd.f32 %v607_v60, %v601_v28 }
  0xb3   :  { %v593_v41 = vadd.f32 %v589_v24, %v583_v30  ;;  %v584_v42 = vadd.f32 %v580_v59, %v578_v36  ;;  %v637_v13 = vstv %s3398_s12  ;;  %v3429_v49 = vstv %s3400_s13  ;;  %s766_s12 = sld [smem:[#allocation13]] }
  0xb4   :  { %v612_v48 = vadd.f32 %v608_v11, %v602_v5  ;;  %v638_v12 = vmul.f32 %v637_v13, %v3170_v45  ;;  %v3432_v50 = vstv %s3402_s2  ;;  %619 = vrot.lane.b32.xlu0 %v611_v39, %s3026_s3  ;;  %v3438_v52 = vstv %s3407_s4  ;;  %s2742_s13 = sld [smem:[#allocation13 + $0x180]]  ;;  %s2771_s2 = sld [smem:[#allocation13 + $0x382]] }
  0xb5   :  { %v603_v17 = vadd.f32 %v599_v27, %v593_v41  ;;  %v594_v18 = vadd.f32 %v590_v9, %v584_v42  ;;  %v650_v51 = vmul.f32 %v3432_v50, %v3172_v46  ;;  %v660_v55 = vmul.f32 %v3438_v52, %v3184_v57  ;;  %s2772_s4 = sld [smem:[#allocation13 + $0x402]] }
  0xb6   :  { %621 = vrot.lane.b32.xlu1 %v612_v48, %s3026_s3  ;;  %v644_v54 = vadd.f32 %v3429_v49, %v638_v12  ;;  %v3447_v21 = vstv %s3412_s14  ;;  %v639_v56 = vmul.f32 %v637_v13, %v3234_v44  ;;  %v651_v22 = vmul.f32 %v3432_v50, %v3236_v47  ;;  %s2745_s14 = sld [smem:[#allocation13 + $0x300]] }
  0xb7   :  { %v613_v59 = vadd.f32 %v609_v35, %v603_v17  ;;  %v604_v43 = vadd.f32 %v600_v37, %v594_v18  ;;  %v670_v31 = vmul.f32 %v3447_v21, %v3186_v58  ;;  %v661_v62 = vmul.f32 %v3438_v52, %v3240_v8 }
  0xb8   :  { %v654_v26 = vadd.f32 %v650_v51, %v644_v54  ;;  %v645_v61 = vadd.f32 %v3429_v49, %v639_v56  ;;  %v671_v0 = vmul.f32 %v3447_v21, %v3250_v53  ;;  %v640_v25 = vmul.f32 %v637_v13, %v3141_v23 }
  0xb9   :  { %623 = vrot.lane.b32.xlu0 %v613_v59, %s3026_s3  ;;  %v614_v63 = vadd.f32 %v610_v40, %v604_v43  ;;  %v652_v1 = vmul.f32 %v3432_v50, %v3148_v29  ;;  %v662_v32 = vmul.f32 %v3438_v52, %v3155_v33  ;;  %v672_v60 = vmul.f32 %v3447_v21, %v3161_v38 }
  0xba   :  { %v664_v2 = vadd.f32 %v660_v55, %v654_v26  ;;  %v655_v3 = vadd.f32 %v651_v22, %v645_v61  ;;  %v646_v4 = vadd.f32 %v3429_v49, %v640_v25  ;;  %v641_v7 = vmul.f32 %v637_v13, %v3201_v6 }
  0xbb   :  { %625 = vrot.lane.b32.xlu1 %v614_v63, %s3026_s3  ;;  %v3027_v16 = vmov 0.0   ;;  %v653_v14 = vmul.f32 %v3432_v50, %v3206_v15  ;;  %v663_v20 = vmul.f32 %v3438_v52, %v3209_v19  ;;  %v673_v28 = vmul.f32 %v3447_v21, %v3220_v34 }
  0xbc   :  { %v674_v10 = vadd.f32 %v670_v31, %v664_v2  ;;  %v665_v11 = vadd.f32 %v661_v62, %v655_v3  ;;  %133 = vst.msk [vmem:[#allocation2 + $0x18] sm:$0xff] %vm128_vm0, %v3027_v16  ;;  %134 = vst.msk [vmem:[#allocation2 + $0x20] sm:$0xff] %vm128_vm0, %v3027_v16  ;;  %v656_v24 = vadd.f32 %v652_v1, %v646_v4  ;;  %v700_v30 = vstv %s3440_s0  ;;  %s2778_s0 = sld [smem:[#allocation13 + $0x83]] }
  0xbd   :  { %129 = vst.msk [vmem:[#allocation2] sm:$0xff] %vm128_vm0, %v3027_v16  ;;  %130 = vst.msk [vmem:[#allocation2 + $0x8] sm:$0xff] %vm128_vm0, %v3027_v16  ;;  %v647_v27 = vadd.f32 %v3429_v49, %v641_v7  ;;  %v701_v36 = vmul.f32 %v700_v30, %v3170_v45  ;;  %v706_v5 = vstv %s3450_s1  ;;  %v712_v9 = vstv %s3452_s15  ;;  %s2779_s1 = sld [smem:[#allocation13 + $0x103]] }
  0xbe   :  { %136 = vst.msk [vmem:[#allocation2 + $0x30] sm:$0xff] %vm128_vm0, %v3027_v16  ;;  %137 = vst.msk [vmem:[#allocation2 + $0x38] sm:$0xff] %vm128_vm0, %v3027_v16  ;;  %682 = vrot.lane.b32.xlu0 %v674_v10, %s3026_s3  ;;  %v675_v35 = vadd.f32 %v671_v0, %v665_v11  ;;  %v666_v37 = vadd.f32 %v662_v32, %v656_v24  ;;  %v713_v39 = vmul.f32 %v712_v9, %v3172_v46  ;;  %s2781_s15 = sld [smem:[#allocation13 + $0x203]] }
  0xbf   :  { %139 = vst.msk [vmem:[#allocation2 + $0x48] sm:$0xff] %vm128_vm0, %v3027_v16  ;;  %140 = vst.msk [vmem:[#allocation2 + $0x50] sm:$0xff] %vm128_vm0, %v3027_v16  ;;  %v657_v40 = vadd.f32 %v653_v14, %v647_v27  ;;  %v722_v41 = vstv %s3456_s16  ;;  %v707_v42 = vadd.f32 %v706_v5, %v701_v36  ;;  %v732_v48 = vstv %s3463_s17  ;;  %s2782_s16 = sld [smem:[#allocation13 + $0x283]]  ;;  %s2751_s17 = sld [smem:[#allocation13 + $0x1]] }
  0xc0   :  { %142 = vst.msk [vmem:[#allocation2 + $0x60] sm:$0xff] %vm128_vm0, %v3027_v16  ;;  %143 = vst.msk [vmem:[#allocation2 + $0x68] sm:$0xff] %vm128_vm0, %v3027_v16  ;;  %684 = vrot.lane.b32.xlu1 %v675_v35, %s3026_s3  ;;  %v723_v13 = vmul.f32 %v722_v41, %v3184_v57  ;;  %v676_v12 = vadd.f32 %v672_v60, %v666_v37  ;;  %v702_v45 = vmul.f32 %v700_v30, %v3234_v44 }
  0xc1   :  { %145 = vst.msk [vmem:[#allocation2 + $0x78] sm:$0xff] %vm128_vm0, %v3027_v16  ;;  %146 = vst.msk [vmem:[#allocation2 + $0x80] sm:$0xff] %vm128_vm0, %v3027_v16  ;;  %v667_v49 = vadd.f32 %v663_v20, %v657_v40  ;;  %v717_v46 = vadd.f32 %v713_v39, %v707_v42  ;;  %v733_v57 = vmul.f32 %v732_v48, %v3186_v58  ;;  %v773_v63 = vstv %s2740_s18  ;;  %s2754_s18 = sld [smem:[#allocation13 + $0x181]] }
  0xc2   :  { %148 = vst.msk [vmem:[#allocation2 + $0x90] sm:$0xff] %vm128_vm0, %v3027_v16  ;;  %149 = vst.msk [vmem:[#allocation2 + $0x98] sm:$0xff] %vm128_vm0, %v3027_v16  ;;  %v714_v50 = vmul.f32 %v712_v9, %v3236_v47  ;;  %v724_v17 = vmul.f32 %v722_v41, %v3240_v8  ;;  %686 = vrot.lane.b32.xlu0 %v676_v12, %s3026_s3  ;;  %v708_v51 = vadd.f32 %v706_v5, %v702_v45 }
  0xc3   :  { %151 = vst.msk [vmem:[#allocation2 + $0xa8] sm:$0xff] %vm128_vm0, %v3027_v16  ;;  %152 = vst.msk [vmem:[#allocation2 + $0xb0] sm:$0xff] %vm128_vm0, %v3027_v16  ;;  %v677_v18 = vadd.f32 %v673_v28, %v667_v49  ;;  %v703_v52 = vmul.f32 %v700_v30, %v3141_v23  ;;  %v715_v54 = vmul.f32 %v712_v9, %v3148_v29  ;;  %v799_v32 = vstv %s2741_s19  ;;  %s2784_s19 = sld [smem:[#allocation13 + $0x383]] }
  0xc4   :  { %154 = vst.msk [vmem:[#allocation2 + $0xc0] sm:$0xff] %vm128_vm0, %v3027_v16  ;;  %155 = vst.msk [vmem:[#allocation2 + $0xc8] sm:$0xff] %vm128_vm0, %v3027_v16  ;;  %v727_v55 = vadd.f32 %v723_v13, %v717_v46  ;;  %v734_v21 = vmul.f32 %v732_v48, %v3250_v53  ;;  %v704_v44 = vmul.f32 %v700_v30, %v3201_v6  ;;  %v839_v28 = vstv %s2743_s20  ;;  %s2785_s20 = sld [smem:[#allocation13 + $0x403]] }
  0xc5   :  { %157 = vst.msk [vmem:[#allocation2 + $0xd8] sm:$0xff] %vm128_vm0, %v3027_v16  ;;  %158 = vst.msk [vmem:[#allocation2 + $0xe0] sm:$0xff] %vm128_vm0, %v3027_v16  ;;  %688 = vrot.lane.b32.xlu1 %v677_v18, %s3026_s3  ;;  %v718_v58 = vadd.f32 %v714_v50, %v708_v51  ;;  %v709_v56 = vadd.f32 %v706_v5, %v703_v52  ;;  %v725_v47 = vmul.f32 %v722_v41, %v3155_v33 }
  0xc6   :  { %160 = vst.msk [vmem:[#allocation2 + $0xf0] sm:$0xff] %vm128_vm0, %v3027_v16  ;;  %161 = vst.msk [vmem:[#allocation2 + $0xf8] sm:$0xff] %vm128_vm0, %v3027_v16  ;;  %v716_v8 = vmul.f32 %v712_v9, %v3206_v15  ;;  %v737_v59 = vadd.f32 %v733_v57, %v727_v55  ;;  %v710_v43 = vadd.f32 %v706_v5, %v704_v44  ;;  %v865_v42 = vstv %s2744_s22  ;;  %s2757_s22 = sld [smem:[#allocation13 + $0x301]] }
  0xc7   :  { %163 = vst.msk [vmem:[#allocation2 + $0x108] sm:$0xff] %vm128_vm0, %v3027_v16  ;;  %164 = vst.msk [vmem:[#allocation2 + $0x110] sm:$0xff] %vm128_vm0, %v3027_v16  ;;  %v726_v22 = vmul.f32 %v722_v41, %v3209_v19  ;;  %v728_v23 = vadd.f32 %v724_v17, %v718_v58  ;;  %v719_v26 = vadd.f32 %v715_v54, %v709_v56  ;;  %v905_v52 = vstv %s2746_s5  ;;  %s2791_s5 = sld [smem:[#allocation13 + $0x84]] }
  0xc8   :  { %166 = vst.msk [vmem:[#allocation2 + $0x120] sm:$0xff] %vm128_vm0, %v3027_v16  ;;  %167 = vst.msk [vmem:[#allocation2 + $0x128] sm:$0xff] %vm128_vm0, %v3027_v16  ;;  %v735_v29 = vmul.f32 %v732_v48, %v3161_v38  ;;  %745 = vrot.lane.b32.xlu0 %v737_v59, %s3026_s3  ;;  %v720_v53 = vadd.f32 %v716_v8, %v710_v43  ;;  %v736_v6 = vmul.f32 %v732_v48, %v3220_v34 }
  0xc9   :  { %169 = vst.msk [vmem:[#allocation2 + $0x138] sm:$0xff] %vm128_vm0, %v3027_v16  ;;  %170 = vst.msk [vmem:[#allocation2 + $0x140] sm:$0xff] %vm128_vm0, %v3027_v16  ;;  %v738_v31 = vadd.f32 %v734_v21, %v728_v23  ;;  %v729_v61 = vadd.f32 %v725_v47, %v719_v26  ;;  %v931_v59 = vstv %s2747_s7  ;;  %s2792_s7 = sld [smem:[#allocation13 + $0x104]] }
  0xca   :  { %172 = vst.msk [vmem:[#allocation2 + $0x150] sm:$0xff] %vm128_vm0, %v3027_v16  ;;  %173 = vst.msk [vmem:[#allocation2 + $0x158] sm:$0xff] %vm128_vm0, %v3027_v16  ;;  %v730_v62 = vadd.f32 %v726_v22, %v720_v53 }
  0xcb   :  { %175 = vst.msk [vmem:[#allocation2 + $0x168] sm:$0xff] %vm128_vm0, %v3027_v16  ;;  %176 = vst.msk [vmem:[#allocation2 + $0x170] sm:$0xff] %vm128_vm0, %v3027_v16  ;;  %747 = vrot.lane.b32.xlu1 %v738_v31, %s3026_s3  ;;  %v739_v33 = vadd.f32 %v735_v29, %v729_v61  ;;  %v991_v61 = vstv %s2752_s23  ;;  %s2794_s23 = sld [smem:[#allocation13 + $0x204]] }
  0xcc   :  { %135 = vst.msk [vmem:[#allocation2 + $0x28] sm:$0x3] %vm131_vm1, %v3027_v16  ;;  %132 = vst.msk [vmem:[#allocation2 + $0x10] sm:$0x3] %vm131_vm1, %v3027_v16  ;;  %v740_v15 = vadd.f32 %v736_v6, %v730_v62 }
  0xcd   :  { %138 = vst.msk [vmem:[#allocation2 + $0x40] sm:$0x3] %vm131_vm1, %v3027_v16  ;;  %141 = vst.msk [vmem:[#allocation2 + $0x58] sm:$0x3] %vm131_vm1, %v3027_v16  ;;  %749 = vrot.lane.b32.xlu0 %v739_v33, %s3026_s3 }
  0xce   :  { %144 = vst.msk [vmem:[#allocation2 + $0x70] sm:$0x3] %vm131_vm1, %v3027_v16  ;;  %147 = vst.msk [vmem:[#allocation2 + $0x88] sm:$0x3] %vm131_vm1, %v3027_v16 }
  0xcf   :  { %150 = vst.msk [vmem:[#allocation2 + $0xa0] sm:$0x3] %vm131_vm1, %v3027_v16  ;;  %153 = vst.msk [vmem:[#allocation2 + $0xb8] sm:$0x3] %vm131_vm1, %v3027_v16  ;;  %751 = vrot.lane.b32.xlu1 %v740_v15, %s3026_s3  ;;  %s3028_s3 = smov 127  }
  0xd0   :  { %156 = vst.msk [vmem:[#allocation2 + $0xd0] sm:$0x3] %vm131_vm1, %v3027_v16  ;;  %159 = vst.msk [vmem:[#allocation2 + $0xe8] sm:$0x3] %vm131_vm1, %v3027_v16 }
  0xd1   :  { %162 = vst.msk [vmem:[#allocation2 + $0x100] sm:$0x3] %vm131_vm1, %v3027_v16  ;;  %165 = vst.msk [vmem:[#allocation2 + $0x118] sm:$0x3] %vm131_vm1, %v3027_v16 }
  0xd2   :  { %168 = vst.msk [vmem:[#allocation2 + $0x130] sm:$0x3] %vm131_vm1, %v3027_v16  ;;  %171 = vst.msk [vmem:[#allocation2 + $0x148] sm:$0x3] %vm131_vm1, %v3027_v16 }
  0xd3   :  { %174 = vst.msk [vmem:[#allocation2 + $0x160] sm:$0x3] %vm131_vm1, %v3027_v16  ;;  %177 = vst.msk [vmem:[#allocation2 + $0x178] sm:$0x3] %vm131_vm1, %v3027_v16 }
  0xf2   :  { %v309_v19 = vpop.permute.xlu1 %308 }
  0xf3   :  { %319 = vst.msk [vmem:[#allocation2 + $0x19] sm:$0xff] %vm316_vm2, %v309_v19 }
  0xf5   :  { %v305_v38 = vpop.permute.xlu0 %304 }
  0xf6   :  { %317 = vst.msk [vmem:[#allocation2 + $0x1] sm:$0xff] %vm316_vm2, %v305_v38 }
  0xfa   :  { %v3615_v25 = vld [vmem:[#allocation2 + $0x18] sm:$0xff] }
  0xfb   :  { %v311_v34 = vpop.permute.xlu1 %310  ;;  %v776_v3 = vmul.f32 %v773_v63, %v3615_v25  ;;  %v802_v24 = vmul.f32 %v799_v32, %v3615_v25  ;;  %v3643_v9 = vld [vmem:[#allocation2 + $0x19] sm:$0xff] }
  0xfc   :  { %320 = vst.msk [vmem:[#allocation2 + $0x21] sm:$0xff] %vm316_vm2, %v311_v34  ;;  %v842_v41 = vmul.f32 %v839_v28, %v3643_v9  ;;  %v868_v17 = vmul.f32 %v865_v42, %v3643_v9 }
  0xfd   :  { %v3613_v0 = vld [vmem:[#allocation2] sm:$0xff] }
  0xfe   :  { %v774_v1 = vmul.f32 %v773_v63, %v3613_v0  ;;  %v800_v7 = vmul.f32 %v799_v32, %v3613_v0  ;;  %v3635_v27 = vld [vmem:[#allocation2 + $0x1] sm:$0xff] }
  0xff   :  { %v840_v5 = vmul.f32 %v839_v28, %v3635_v27  ;;  %v866_v49 = vmul.f32 %v865_v42, %v3635_v27 }
 0x100   :  { %782 = vrot.lane.b32.xlu0 %v774_v1, %s3028_s3 }
 0x101   :  { %v307_v2 = vpop.permute.xlu0 %306 }
 0x102   :  { %318 = vst.msk [vmem:[#allocation2 + $0x9] sm:$0xff] %vm316_vm2, %v307_v2 }
 0x103   :  { %v3631_v20 = vld [vmem:[#allocation2 + $0x20] sm:$0xff] }
 0x104   :  { %786 = vrot.lane.b32.xlu0 %v776_v3, %s3028_s3  ;;  %v370_v4 = vpop.permute.xlu1 %369  ;;  %v777_v36 = vmul.f32 %v773_v63, %v3631_v20  ;;  %v803_v48 = vmul.f32 %v799_v32, %v3631_v20  ;;  %v3662_v50 = vld [vmem:[#allocation2 + $0x21] sm:$0xff] }
 0x105   :  { %v368_v60 = vpop.permute.xlu0 %367  ;;  %381 = vst.msk [vmem:[#allocation2 + $0x39] sm:$0xff] %vm316_vm2, %v370_v4  ;;  %v843_v55 = vmul.f32 %v839_v28, %v3662_v50  ;;  %v3674_v44 = vld [vmem:[#allocation2 + $0x1a] sm:$0xff]  ;;  %v869_v22 = vmul.f32 %v865_v42, %v3662_v50  ;;  %v3695_v62 = vld [vmem:[#allocation2 + $0x22] sm:$0xff] }
 0x106   :  { %380 = vst.msk [vmem:[#allocation2 + $0x31] sm:$0xff] %vm316_vm2, %v368_v60  ;;  %v908_v8 = vmul.f32 %v905_v52, %v3674_v44  ;;  %v934_v33 = vmul.f32 %v931_v59, %v3674_v44  ;;  %v909_v34 = vmul.f32 %v905_v52, %v3695_v62  ;;  %v1017_v60 = vstv %s2753_s24  ;;  %s3978_s24 = sld [smem:[#allocation14]] }
 0x108   :  { %808 = vrot.lane.b32.xlu0 %v800_v7, %s3029_s21  ;;  %v374_v16 = vpop.permute.xlu1 %373 }
 0x109   :  { %v3625_v10 = vld [vmem:[#allocation2 + $0x8] sm:$0xff]  ;;  %v372_v11 = vpop.permute.xlu0 %371  ;;  %383 = vst.msk [vmem:[#allocation2 + $0x51] sm:$0xff] %vm316_vm2, %v374_v16 }
 0x10a   :  { %v775_v14 = vmul.f32 %v773_v63, %v3625_v10  ;;  %382 = vst.msk [vmem:[#allocation2 + $0x49] sm:$0xff] %vm316_vm2, %v372_v11  ;;  %v801_v40 = vmul.f32 %v799_v32, %v3625_v10  ;;  %v3654_v12 = vld [vmem:[#allocation2 + $0x9] sm:$0xff]  ;;  %v935_v11 = vmul.f32 %v931_v59, %v3695_v62 }
 0x10b   :  { %v841_v57 = vmul.f32 %v839_v28, %v3654_v12  ;;  %v3666_v51 = vld [vmem:[#allocation2 + $0x2] sm:$0xff]  ;;  %v867_v56 = vmul.f32 %v865_v42, %v3654_v12  ;;  %v3685_v23 = vld [vmem:[#allocation2 + $0xa] sm:$0xff] }
 0x10c   :  { %784 = vrot.lane.b32.xlu1 %v775_v14, %s3028_s3  ;;  %812 = vrot.lane.b32.xlu0 %v802_v24, %s3029_s21  ;;  %v906_v21 = vmul.f32 %v905_v52, %v3666_v51  ;;  %v932_v26 = vmul.f32 %v931_v59, %v3666_v51  ;;  %v907_v6 = vmul.f32 %v905_v52, %v3685_v23 }
 0x10d   :  { %v431_v30 = vpop.permute.xlu0 %430  ;;  %v433_v35 = vpop.permute.xlu1 %432  ;;  %v3693_v31 = vld [vmem:[#allocation2 + $0x30] sm:$0xff]  ;;  %v933_v3 = vmul.f32 %v931_v59, %v3685_v23  ;;  %v3713_v4 = vld [vmem:[#allocation2 + $0x38] sm:$0xff] }
 0x10e   :  { %443 = vst.msk [vmem:[#allocation2 + $0x61] sm:$0xff] %vm316_vm2, %v431_v30  ;;  %444 = vst.msk [vmem:[#allocation2 + $0x69] sm:$0xff] %vm316_vm2, %v433_v35  ;;  %v992_v19 = vmul.f32 %v991_v61, %v3693_v31  ;;  %v1018_v16 = vmul.f32 %v1017_v60, %v3693_v31  ;;  %v993_v24 = vmul.f32 %v991_v61, %v3713_v4 }
 0x110   :  { %788 = vrot.lane.b32.xlu1 %v777_v36, %s3028_s3  ;;  %848 = vrot.lane.b32.xlu0 %v840_v5, %s3028_s3  ;;  %v3729_v5 = vld [vmem:[#allocation2 + $0x31] sm:$0xff] }
 0x111   :  { %v435_v37 = vpop.permute.xlu0 %434  ;;  %v437_v39 = vpop.permute.xlu1 %436  ;;  %v3703_v63 = vld [vmem:[#allocation2 + $0x48] sm:$0xff]  ;;  %v3722_v28 = vld [vmem:[#allocation2 + $0x50] sm:$0xff] }
 0x112   :  { %445 = vst.msk [vmem:[#allocation2 + $0x79] sm:$0xff] %vm316_vm2, %v435_v37  ;;  %446 = vst.msk [vmem:[#allocation2 + $0x81] sm:$0xff] %vm316_vm2, %v437_v39  ;;  %v994_v2 = vmul.f32 %v991_v61, %v3703_v63  ;;  %v1020_v35 = vmul.f32 %v1017_v60, %v3703_v63  ;;  %v995_v36 = vmul.f32 %v991_v61, %v3722_v28  ;;  %v1057_v37 = vstv %s2755_s6  ;;  %v3735_v42 = vld [vmem:[#allocation2 + $0x49] sm:$0xff]  ;;  %v3751_v52 = vld [vmem:[#allocation2 + $0x51] sm:$0xff]  ;;  %s3982_s6 = sld [smem:[#allocation14 + $0x1]] }
 0x113   :  { %v1058_v39 = vmul.f32 %v1057_v37, %v3729_v5 }
 0x114   :  { %810 = vrot.lane.b32.xlu1 %v801_v40, %s3029_s21  ;;  %852 = vrot.lane.b32.xlu0 %v842_v41, %s3028_s3 }
 0x115   :  { %v494_v13 = vpop.permute.xlu0 %493 }
 0x116   :  { %506 = vst.msk [vmem:[#allocation2 + $0x91] sm:$0xff] %vm316_vm2, %v494_v13 }
 0x117   :  { %v496_v45 = vpop.permute.xlu1 %495 }
 0x118   :  { %814 = vrot.lane.b32.xlu1 %v803_v48, %s3029_s21  ;;  %507 = vst.msk [vmem:[#allocation2 + $0x99] sm:$0xff] %vm316_vm2, %v496_v45  ;;  %874 = vrot.lane.b32.xlu0 %v866_v49, %s3029_s21  ;;  %v1019_v48 = vmul.f32 %v1017_v60, %v3713_v4  ;;  %v1060_v49 = vmul.f32 %v1057_v37, %v3735_v42  ;;  %v1083_v45 = vstv %s2756_s25  ;;  %s3984_s25 = sld [smem:[#allocation14 + $0x2]] }
 0x119   :  { %v498_v46 = vpop.permute.xlu0 %497 }
 0x11a   :  { %508 = vst.msk [vmem:[#allocation2 + $0xa9] sm:$0xff] %vm316_vm2, %v498_v46  ;;  %v1021_v46 = vmul.f32 %v1017_v60, %v3722_v28  ;;  %v3793_v60 = vld [vmem:[#allocation2 + $0x68] sm:$0xff] }
 0x11b   :  { %v500_v18 = vpop.permute.xlu1 %499 }
 0x11c   :  { %850 = vrot.lane.b32.xlu1 %v841_v57, %s3028_s3  ;;  %509 = vst.msk [vmem:[#allocation2 + $0xb1] sm:$0xff] %vm316_vm2, %v500_v18  ;;  %878 = vrot.lane.b32.xlu0 %v868_v17, %s3029_s21  ;;  %v3745_v57 = vld [vmem:[#allocation2 + $0x39] sm:$0xff]  ;;  %v1084_v17 = vmul.f32 %v1083_v45, %v3729_v5 }
 0x11d   :  { %v557_v54 = vpop.permute.xlu0 %556  ;;  %v1059_v18 = vmul.f32 %v1057_v37, %v3745_v57 }
 0x11e   :  { %569 = vst.msk [vmem:[#allocation2 + $0xc1] sm:$0xff] %vm316_vm2, %v557_v54  ;;  %v1086_v54 = vmul.f32 %v1083_v45, %v3735_v42 }
 0x120   :  { %854 = vrot.lane.b32.xlu1 %v843_v55, %s3028_s3  ;;  %v559_v58 = vpop.permute.xlu1 %558  ;;  %914 = vrot.lane.b32.xlu0 %v906_v21, %s3028_s3  ;;  %v3755_v55 = vld [vmem:[#allocation2 + $0x32] sm:$0xff]  ;;  %v1123_v21 = vstv %s2758_s26  ;;  %s3990_s26 = sld [smem:[#allocation14 + $0x3]] }
 0x121   :  { %570 = vst.msk [vmem:[#allocation2 + $0xc9] sm:$0xff] %vm316_vm2, %v559_v58  ;;  %v1061_v58 = vmul.f32 %v1057_v37, %v3751_v52  ;;  %v3809_v37 = vld [vmem:[#allocation2 + $0x79] sm:$0xff] }
 0x122   :  { %v561_v47 = vpop.permute.xlu0 %560 }
 0x123   :  { %571 = vst.msk [vmem:[#allocation2 + $0xd9] sm:$0xff] %vm316_vm2, %v561_v47  ;;  %v3761_v47 = vld [vmem:[#allocation2 + $0x4a] sm:$0xff] }
 0x124   :  { %876 = vrot.lane.b32.xlu1 %v867_v56, %s3029_s21  ;;  %v563_v43 = vpop.permute.xlu1 %562  ;;  %918 = vrot.lane.b32.xlu0 %v908_v8, %s3028_s3  ;;  %v1124_v56 = vmul.f32 %v1123_v21, %v3755_v55  ;;  %v1085_v8 = vmul.f32 %v1083_v45, %v3745_v57  ;;  %v1126_v59 = vmul.f32 %v1123_v21, %v3761_v47 }
 0x125   :  { %572 = vst.msk [vmem:[#allocation2 + $0xe1] sm:$0xff] %vm316_vm2, %v563_v43  ;;  %v1149_v43 = vstv %s2759_s29  ;;  %s3995_s29 = sld [smem:[#allocation14 + $0x80]] }
 0x126   :  { %v620_v29 = vpop.permute.xlu0 %619  ;;  %v1152_v61 = vmul.f32 %v1149_v43, %v3761_v47 }
 0x127   :  { %632 = vst.msk [vmem:[#allocation2 + $0xf1] sm:$0xff] %vm316_vm2, %v620_v29  ;;  %v1150_v29 = vmul.f32 %v1149_v43, %v3755_v55 }
 0x128   :  { %880 = vrot.lane.b32.xlu1 %v869_v22, %s3029_s21  ;;  %v622_v53 = vpop.permute.xlu1 %621  ;;  %940 = vrot.lane.b32.xlu0 %v932_v26, %s3029_s21  ;;  %v1087_v22 = vmul.f32 %v1083_v45, %v3751_v52  ;;  %v3769_v26 = vld [vmem:[#allocation2 + $0x3a] sm:$0xff]  ;;  %v3817_v45 = vld [vmem:[#allocation2 + $0x69] sm:$0xff] }
 0x129   :  { %633 = vst.msk [vmem:[#allocation2 + $0xf9] sm:$0xff] %vm316_vm2, %v622_v53  ;;  %v1125_v53 = vmul.f32 %v1123_v21, %v3769_v26 }
 0x12b   :  { %v624_v15 = vpop.permute.xlu0 %623 }
 0x12c   :  { %916 = vrot.lane.b32.xlu1 %v907_v6, %s3028_s3  ;;  %634 = vst.msk [vmem:[#allocation2 + $0x109] sm:$0xff] %vm316_vm2, %v624_v15  ;;  %944 = vrot.lane.b32.xlu0 %v934_v33, %s3029_s21  ;;  %v3775_v6 = vld [vmem:[#allocation2 + $0x52] sm:$0xff]  ;;  %v3779_v33 = vld [vmem:[#allocation2 + $0x60] sm:$0xff]  ;;  %v1225_v15 = vstv %s2765_s30  ;;  %s3997_s30 = sld [smem:[#allocation14 + $0x81]] }
 0x12d   :  { %v626_v38 = vpop.permute.xlu1 %625 }
 0x12e   :  { %635 = vst.msk [vmem:[#allocation2 + $0x111] sm:$0xff] %vm316_vm2, %v626_v38  ;;  %v1226_v38 = vmul.f32 %v1225_v15, %v3779_v33 }
 0x130   :  { %920 = vrot.lane.b32.xlu1 %v909_v34, %s3028_s3  ;;  %v683_v1 = vpop.permute.xlu0 %682  ;;  %1000 = vrot.lane.b32.xlu0 %v992_v19, %s3028_s3  ;;  %v1127_v19 = vmul.f32 %v1123_v21, %v3775_v6  ;;  %v3785_v34 = vld [vmem:[#allocation2 + $0x78] sm:$0xff] }
 0x131   :  { %695 = vst.msk [vmem:[#allocation2 + $0x121] sm:$0xff] %vm316_vm2, %v683_v1  ;;  %v1151_v1 = vmul.f32 %v1149_v43, %v3769_v26 }
 0x132   :  { %v685_v32 = vpop.permute.xlu1 %684 }
 0x133   :  { %696 = vst.msk [vmem:[#allocation2 + $0x129] sm:$0xff] %vm316_vm2, %v685_v32  ;;  %v1153_v32 = vmul.f32 %v1149_v43, %v3775_v6 }
 0x134   :  { %942 = vrot.lane.b32.xlu1 %v933_v3, %s3029_s21  ;;  %1004 = vrot.lane.b32.xlu0 %v994_v2, %s3028_s3  ;;  %v687_v7 = vpop.permute.xlu0 %686  ;;  %v1228_v2 = vmul.f32 %v1225_v15, %v3785_v34  ;;  %v1251_v3 = vstv %s2766_s9  ;;  %s4001_s9 = sld [smem:[#allocation14 + $0x82]] }
 0x135   :  { %697 = vst.msk [vmem:[#allocation2 + $0x139] sm:$0xff] %vm316_vm2, %v687_v7  ;;  %v1252_v7 = vmul.f32 %v1251_v3, %v3779_v33 }
 0x137   :  { %v689_v14 = vpop.permute.xlu1 %688 }
 0x138   :  { %946 = vrot.lane.b32.xlu1 %v935_v11, %s3029_s21  ;;  %698 = vst.msk [vmem:[#allocation2 + $0x141] sm:$0xff] %vm316_vm2, %v689_v14  ;;  %1026 = vrot.lane.b32.xlu0 %v1018_v16, %s3029_s21  ;;  %v1227_v11 = vmul.f32 %v1225_v15, %v3793_v60  ;;  %v3799_v16 = vld [vmem:[#allocation2 + $0x80] sm:$0xff]  ;;  %v1254_v14 = vmul.f32 %v1251_v3, %v3785_v34 }
 0x13a   :  { %v746_v30 = vpop.permute.xlu0 %745 }
 0x13b   :  { %758 = vst.msk [vmem:[#allocation2 + $0x151] sm:$0xff] %vm316_vm2, %v746_v30  ;;  %v1291_v30 = vstv %s2768_s10  ;;  %s4003_s10 = sld [smem:[#allocation14 + $0x83]] }
 0x13c   :  { %1002 = vrot.lane.b32.xlu1 %v993_v24, %s3028_s3  ;;  %1030 = vrot.lane.b32.xlu0 %v1020_v35, %s3029_s21  ;;  %v3803_v24 = vld [vmem:[#allocation2 + $0x61] sm:$0xff]  ;;  %v1229_v35 = vmul.f32 %v1225_v15, %v3799_v16 }
 0x13d   :  { %v748_v40 = vpop.permute.xlu1 %747 }
 0x13e   :  { %759 = vst.msk [vmem:[#allocation2 + $0x159] sm:$0xff] %vm316_vm2, %v748_v40  ;;  %v1253_v40 = vmul.f32 %v1251_v3, %v3793_v60 }
 0x13f   :  { %v750_v41 = vpop.permute.xlu0 %749 }
 0x140   :  { %1006 = vrot.lane.b32.xlu1 %v995_v36, %s3028_s3  ;;  %760 = vst.msk [vmem:[#allocation2 + $0x169] sm:$0xff] %vm316_vm2, %v750_v41  ;;  %1066 = vrot.lane.b32.xlu0 %v1058_v39, %s3028_s3  ;;  %v1292_v36 = vmul.f32 %v1291_v30, %v3803_v24  ;;  %v1294_v41 = vmul.f32 %v1291_v30, %v3809_v37 }
 0x141   :  { %v752_v13 = vpop.permute.xlu1 %751 }
 0x142   :  { %761 = vst.msk [vmem:[#allocation2 + $0x171] sm:$0xff] %vm316_vm2, %v752_v13  ;;  %v1317_v13 = vstv %s2769_s11  ;;  %s4021_s11 = sld [smem:[#allocation13 + $0x2]] }
 0x144   :  { %1028 = vrot.lane.b32.xlu1 %v1019_v48, %s3029_s21  ;;  %1070 = vrot.lane.b32.xlu0 %v1060_v49, %s3028_s3  ;;  %v767_v48 = vstv %s766_s12  ;;  %v1255_v49 = vmul.f32 %v1251_v3, %v3799_v16  ;;  %v3836_v3 = vld [vmem:[#allocation2 + $0x7a] sm:$0xff]  ;;  %s4042_s12 = sld [smem:[#allocation13 + $0x182]] }
 0x145   :  { %v770_v43 = vmul.f32 %v767_v48, %v3615_v25 }
 0x148   :  { %1032 = vrot.lane.b32.xlu1 %v1021_v46, %s3029_s21  ;;  %1092 = vrot.lane.b32.xlu0 %v1084_v17, %s3029_s21  ;;  %v1318_v17 = vmul.f32 %v1317_v13, %v3803_v24 }
 0x14c   :  { %1068 = vrot.lane.b32.xlu1 %v1059_v18, %s3028_s3  ;;  %1096 = vrot.lane.b32.xlu0 %v1086_v54, %s3029_s21  ;;  %v768_v18 = vmul.f32 %v767_v48, %v3613_v0  ;;  %v829_v54 = vstv %s2742_s13  ;;  %s4067_s13 = sld [smem:[#allocation13 + $0x284]] }
 0x14d   :  { %v830_v0 = vmul.f32 %v829_v54, %v3635_v27 }
 0x150   :  { %1072 = vrot.lane.b32.xlu1 %v1061_v58, %s3028_s3  ;;  %1132 = vrot.lane.b32.xlu0 %v1124_v56, %s3028_s3  ;;  %v1293_v58 = vmul.f32 %v1291_v30, %v3817_v45  ;;  %v3824_v56 = vld [vmem:[#allocation2 + $0x81] sm:$0xff] }
 0x154   :  { %1094 = vrot.lane.b32.xlu1 %v1085_v8, %s3029_s21  ;;  %1136 = vrot.lane.b32.xlu0 %v1126_v59, %s3028_s3  ;;  %v1320_v59 = vmul.f32 %v1317_v13, %v3809_v37 }
 0x158   :  { %1098 = vrot.lane.b32.xlu1 %v1087_v22, %s3029_s21  ;;  %1158 = vrot.lane.b32.xlu0 %v1150_v29, %s3029_s21  ;;  %v3829_v29 = vld [vmem:[#allocation2 + $0x62] sm:$0xff] }
 0x15c   :  { %1134 = vrot.lane.b32.xlu1 %v1125_v53, %s3028_s3  ;;  %1162 = vrot.lane.b32.xlu0 %v1152_v61, %s3029_s21  ;;  %v1357_v53 = vstv %s2771_s2  ;;  %s4069_s2 = sld [smem:[#allocation13 + $0x384]] }
 0x160   :  { %1138 = vrot.lane.b32.xlu1 %v1127_v19, %s3028_s3  ;;  %1234 = vrot.lane.b32.xlu0 %v1226_v38, %s3028_s3  ;;  %v1295_v19 = vmul.f32 %v1291_v30, %v3824_v56 }
 0x164   :  { %1160 = vrot.lane.b32.xlu1 %v1151_v1, %s3029_s21  ;;  %1238 = vrot.lane.b32.xlu0 %v1228_v2, %s3028_s3  ;;  %v1358_v2 = vmul.f32 %v1357_v53, %v3829_v29 }
 0x168   :  { %1164 = vrot.lane.b32.xlu1 %v1153_v32, %s3029_s21  ;;  %1260 = vrot.lane.b32.xlu0 %v1252_v7, %s3029_s21  ;;  %v832_v32 = vmul.f32 %v829_v54, %v3643_v9  ;;  %v1319_v7 = vmul.f32 %v1317_v13, %v3817_v45 }
 0x16c   :  { %1236 = vrot.lane.b32.xlu1 %v1227_v11, %s3028_s3  ;;  %1264 = vrot.lane.b32.xlu0 %v1254_v14, %s3029_s21  ;;  %v769_v14 = vmul.f32 %v767_v48, %v3625_v10  ;;  %v831_v10 = vmul.f32 %v829_v54, %v3654_v12 }
 0x170   :  { %1240 = vrot.lane.b32.xlu1 %v1229_v35, %s3028_s3  ;;  %1300 = vrot.lane.b32.xlu0 %v1292_v36, %s3028_s3  ;;  %v1360_v35 = vmul.f32 %v1357_v53, %v3836_v3  ;;  %v1383_v36 = vstv %s2772_s4  ;;  %s4177_s4 = sld [smem:[#allocation13 + $0x404]] }
 0x172   :  { %v783_v39 = vpop.permute.xlu0 %782 }
 0x173   :  { %v794_v21 = vadd.f32 %v783_v39, %v768_v18  ;;  %v1321_v39 = vmul.f32 %v1317_v13, %v3824_v56  ;;  %v1384_v18 = vmul.f32 %v1383_v36, %v3829_v29 }
 0x174   :  { %1262 = vrot.lane.b32.xlu1 %v1253_v40, %s3029_s21  ;;  %1304 = vrot.lane.b32.xlu0 %v1294_v41, %s3028_s3  ;;  %v771_v41 = vmul.f32 %v767_v48, %v3631_v20  ;;  %v3854_v48 = vld [vmem:[#allocation2 + $0x82] sm:$0xff] }
 0x176   :  { %v787_v46 = vpop.permute.xlu0 %786 }
 0x177   :  { %v796_v15 = vadd.f32 %v787_v46, %v770_v43  ;;  %v3847_v46 = vld [vmem:[#allocation2 + $0x6a] sm:$0xff] }
 0x178   :  { %1266 = vrot.lane.b32.xlu1 %v1255_v49, %s3029_s21  ;;  %1326 = vrot.lane.b32.xlu0 %v1318_v17, %s3029_s21  ;;  %v1359_v13 = vmul.f32 %v1357_v53, %v3847_v46 }
 0x17a   :  { %v809_v8 = vpop.permute.xlu0 %808 }
 0x17b   :  { %v820_v22 = vadd.f32 %v809_v8, %v794_v21  ;;  %v895_v8 = vstv %s2745_s14  ;;  %s2770_s14 = sld [smem:[#allocation13 + $0x302]] }
 0x17c   :  { %1302 = vrot.lane.b32.xlu1 %v1293_v58, %s3028_s3  ;;  %1330 = vrot.lane.b32.xlu0 %v1320_v59, %s3029_s21 }
 0x17d   :  { %v834_v38 = vadd.f32 %v830_v0, %v820_v22  ;;  %v833_v22 = vmul.f32 %v829_v54, %v3662_v50  ;;  %v1386_v0 = vmul.f32 %v1383_v36, %v3836_v3 }
 0x17e   :  { %v785_v61 = vpop.permute.xlu1 %784  ;;  %v813_v1 = vpop.permute.xlu0 %812 }
 0x17f   :  { %v822_v25 = vadd.f32 %v813_v1, %v796_v15  ;;  %v795_v40 = vadd.f32 %v785_v61, %v769_v14  ;;  %v3859_v15 = vld [vmem:[#allocation2 + $0x90] sm:$0xff]  ;;  %v896_v1 = vmul.f32 %v895_v8, %v3666_v51  ;;  %v3868_v14 = vld [vmem:[#allocation2 + $0xa8] sm:$0xff]  ;;  %v898_v51 = vmul.f32 %v895_v8, %v3674_v44 }
 0x180   :  { %1306 = vrot.lane.b32.xlu1 %v1295_v19, %s3028_s3  ;;  %1366 = vrot.lane.b32.xlu0 %v1358_v2, %s3028_s3  ;;  %v1459_v19 = vstv %s2778_s0  ;;  %v1387_v44 = vmul.f32 %v1383_v36, %v3854_v48  ;;  %s2804_s0 = sld [smem:[#allocation13 + $0x85]] }
 0x181   :  { %v836_v11 = vadd.f32 %v832_v32, %v822_v25  ;;  %v1361_v32 = vmul.f32 %v1357_v53, %v3854_v48 }
 0x182   :  { %v789_v27 = vpop.permute.xlu1 %788  ;;  %v849_v30 = vpop.permute.xlu0 %848 }
 0x183   :  { %v797_v21 = vadd.f32 %v789_v27, %v771_v41  ;;  %v860_v43 = vadd.f32 %v849_v30, %v834_v38  ;;  %v1460_v27 = vmul.f32 %v1459_v19, %v3859_v15 }
 0x184   :  { %1328 = vrot.lane.b32.xlu1 %v1319_v7, %s3029_s21  ;;  %1370 = vrot.lane.b32.xlu0 %v1360_v35, %s3028_s3  ;;  %v1385_v35 = vmul.f32 %v1383_v36, %v3847_v46 }
 0x186   :  { %v811_v9 = vpop.permute.xlu1 %810  ;;  %v853_v17 = vpop.permute.xlu0 %852 }
 0x187   :  { %v821_v49 = vadd.f32 %v811_v9, %v795_v40  ;;  %v862_v25 = vadd.f32 %v853_v17, %v836_v11  ;;  %v1462_v40 = vmul.f32 %v1459_v19, %v3868_v14  ;;  %v1485_v9 = vstv %s2779_s1  ;;  %s2805_s1 = sld [smem:[#allocation13 + $0x105]] }
 0x188   :  { %1332 = vrot.lane.b32.xlu1 %v1321_v39, %s3029_s21  ;;  %1392 = vrot.lane.b32.xlu0 %v1384_v18, %s3029_s21  ;;  %v897_v17 = vmul.f32 %v895_v8, %v3685_v23 }
 0x189   :  { %v835_v58 = vadd.f32 %v831_v10, %v821_v49  ;;  %v3881_v10 = vld [vmem:[#allocation2 + $0x98] sm:$0xff] }
 0x18a   :  { %v815_v59 = vpop.permute.xlu1 %814  ;;  %v875_v12 = vpop.permute.xlu0 %874  ;;  %5114 = vst [vmem:[#allocation24_spill] sm:$0xff] %v3881_v10 }
 0x18b   :  { %v823_v20 = vadd.f32 %v815_v59, %v797_v21  ;;  %v886_v61 = vadd.f32 %v875_v12, %v860_v43  ;;  %v1486_v21 = vmul.f32 %v1485_v9, %v3859_v15  ;;  %v1488_v12 = vmul.f32 %v1485_v9, %v3868_v14 }
 0x18c   :  { %1368 = vrot.lane.b32.xlu1 %v1359_v13, %s3028_s3  ;;  %1396 = vrot.lane.b32.xlu0 %v1386_v0, %s3029_s21  ;;  %v1461_v13 = vmul.f32 %v1459_v19, %v3881_v10  ;;  %v3899_v0 = vld [vmem:[#allocation2 + $0x91] sm:$0xff] }
 0x18d   :  { %v837_v38 = vadd.f32 %v833_v22, %v823_v20  ;;  %v3864_v50 = vadd.f32 %v896_v1, %v886_v61  ;;  %v3892_v20 = vld [vmem:[#allocation2 + $0xb0] sm:$0xff]  ;;  %v899_v22 = vmul.f32 %v895_v8, %v3695_v62  ;;  %v1525_v61 = vstv %s2781_s15  ;;  %s2773_s15 = sld [smem:[#allocation14 + $0x100]] }
 0x18e   :  { %v851_v2 = vpop.permute.xlu1 %850  ;;  %v879_v54 = vpop.permute.xlu0 %878  ;;  %5115 = vst [vmem:[#allocation25_spill] sm:$0xff] %v3892_v20  ;;  %v1526_v8 = vmul.f32 %v1525_v61, %v3899_v0 }
 0x18f   :  { %v888_v7 = vadd.f32 %v879_v54, %v862_v25  ;;  %v861_v39 = vadd.f32 %v851_v2, %v835_v58  ;;  %v1463_v2 = vmul.f32 %v1459_v19, %v3892_v20  ;;  %v3911_v25 = vld [vmem:[#allocation2 + $0xa9] sm:$0xff]  ;;  %v1487_v54 = vmul.f32 %v1485_v9, %v3881_v10 }
 0x190   :  { %1372 = vrot.lane.b32.xlu1 %v1361_v32, %s3028_s3  ;;  %1468 = vrot.lane.b32.xlu0 %v1460_v27, %s3028_s3  ;;  %v1551_v19 = vstv %s2782_s16  ;;  %s2774_s16 = sld [smem:[#allocation14 + $0x101]] }
 0x191   :  { %v3873_v11 = vadd.f32 %v898_v51, %v888_v7  ;;  %v1528_v7 = vmul.f32 %v1525_v61, %v3911_v25  ;;  %v985_v51 = vstv %s2751_s17  ;;  %s2775_s17 = sld [smem:[#allocation14 + $0x102]] }
 0x192   :  { %v855_v30 = vpop.permute.xlu1 %854  ;;  %v3875_v53 = vpop.permute.xlu0 %914 }
 0x193   :  { %v863_v59 = vadd.f32 %v855_v30, %v837_v38 }
 0x194   :  { %1394 = vrot.lane.b32.xlu1 %v1385_v35, %s3029_s21  ;;  %1472 = vrot.lane.b32.xlu0 %v1462_v40, %s3028_s3  ;;  %v1489_v35 = vmul.f32 %v1485_v9, %v3892_v20  ;;  %v3923_v40 = vld [vmem:[#allocation2 + $0x99] sm:$0xff] }
 0x195   :  { %5116 = vst [vmem:[#allocation26_spill] sm:$0xff] %v3923_v40 }
 0x196   :  { %v877_v41 = vpop.permute.xlu1 %876  ;;  %v3884_v18 = vpop.permute.xlu0 %918 }
 0x197   :  { %v887_v49 = vadd.f32 %v877_v41, %v861_v39  ;;  %v1552_v41 = vmul.f32 %v1551_v19, %v3899_v0 }
 0x198   :  { %1398 = vrot.lane.b32.xlu1 %v1387_v44, %s3029_s21  ;;  %1494 = vrot.lane.b32.xlu0 %v1486_v21, %s3029_s21  ;;  %v986_v44 = vmul.f32 %v985_v51, %v3693_v31  ;;  %v1591_v31 = vstv %s2784_s19  ;;  %s2807_s19 = sld [smem:[#allocation13 + $0x205]] }
 0x199   :  { %v3888_v43 = vadd.f32 %v897_v17, %v887_v49  ;;  %v1047_v49 = vstv %s2754_s18  ;;  %s2776_s18 = sld [smem:[#allocation14 + $0x103]] }
 0x19a   :  { %v881_v58 = vpop.permute.xlu1 %880  ;;  %v3895_v23 = vpop.permute.xlu0 %940 }
 0x19b   :  { %v889_v36 = vadd.f32 %v881_v58, %v863_v59  ;;  %v1527_v59 = vmul.f32 %v1525_v61, %v3923_v40  ;;  %v3932_v58 = vld [vmem:[#allocation2 + $0xb1] sm:$0xff] }
 0x19c   :  { %1470 = vrot.lane.b32.xlu1 %v1461_v13, %s3028_s3  ;;  %1498 = vrot.lane.b32.xlu0 %v1488_v12, %s3029_s21  ;;  %5117 = vst [vmem:[#allocation27_spill] sm:$0xff] %v3932_v58  ;;  %v1554_v13 = vmul.f32 %v1551_v19, %v3911_v25  ;;  %v3937_v12 = vld [vmem:[#allocation2 + $0x92] sm:$0xff] }
 0x19d   :  { %v3901_v1 = vadd.f32 %v899_v22, %v889_v36  ;;  %v988_v36 = vmul.f32 %v985_v51, %v3703_v63  ;;  %5118 = vst [vmem:[#allocation28_spill] sm:$0xff] %v3937_v12 }
 0x19e   :  { %v3904_v38 = vpop.permute.xlu1 %916  ;;  %v3907_v62 = vpop.permute.xlu0 %944 }
 0x1a0   :  { %1474 = vrot.lane.b32.xlu1 %v1463_v2, %s3028_s3  ;;  %1534 = vrot.lane.b32.xlu0 %v1526_v8, %s3028_s3  ;;  %v1048_v2 = vmul.f32 %v1047_v49, %v3729_v5 }
 0x1a2   :  { %v3914_v32 = vpop.permute.xlu1 %920  ;;  %v1001_v27 = vpop.permute.xlu0 %1000 }
 0x1a3   :  { %v1012_v21 = vadd.f32 %v1001_v27, %v986_v44  ;;  %v1529_v27 = vmul.f32 %v1525_v61, %v3932_v58  ;;  %v3944_v44 = vld [vmem:[#allocation2 + $0xaa] sm:$0xff]  ;;  %v987_v61 = vmul.f32 %v985_v51, %v3713_v4  ;;  %v1049_v4 = vmul.f32 %v1047_v49, %v3745_v57 }
 0x1a4   :  { %1496 = vrot.lane.b32.xlu1 %v1487_v54, %s3029_s21  ;;  %1538 = vrot.lane.b32.xlu0 %v1528_v7, %s3028_s3  ;;  %5119 = vst [vmem:[#allocation29_spill] sm:$0xff] %v3944_v44  ;;  %v1051_v57 = vmul.f32 %v1047_v49, %v3751_v52 }
 0x1a6   :  { %v3920_v30 = vpop.permute.xlu1 %942  ;;  %v1005_v39 = vpop.permute.xlu0 %1004 }
 0x1a7   :  { %v1014_v54 = vadd.f32 %v1005_v39, %v988_v36  ;;  %v3952_v36 = vstv %s2785_s20  ;;  %s4277_s20 = sld [smem:[#allocation13 + $0x3]] }
 0x1a8   :  { %1500 = vrot.lane.b32.xlu1 %v1489_v35, %s3029_s21  ;;  %1560 = vrot.lane.b32.xlu0 %v1552_v41, %s3029_s21  ;;  %v1592_v41 = vmul.f32 %v1591_v31, %v3937_v12 }
 0x1aa   :  { %v3929_v17 = vpop.permute.xlu1 %946  ;;  %v1027_v9 = vpop.permute.xlu0 %1026 }
 0x1ab   :  { %v1038_v22 = vadd.f32 %v1027_v9, %v1012_v21  ;;  %v1050_v21 = vmul.f32 %v1047_v49, %v3735_v42 }
 0x1ac   :  { %1536 = vrot.lane.b32.xlu1 %v1527_v59, %s3028_s3  ;;  %1564 = vrot.lane.b32.xlu0 %v1554_v13, %s3029_s21  ;;  %v1553_v59 = vmul.f32 %v1551_v19, %v3923_v40  ;;  %v1594_v13 = vmul.f32 %v1591_v31, %v3944_v44 }
 0x1ad   :  { %v1052_v7 = vadd.f32 %v1048_v2, %v1038_v22  ;;  %v1555_v2 = vmul.f32 %v1551_v19, %v3932_v58 }
 0x1ae   :  { %v1003_v8 = vpop.permute.xlu1 %1002  ;;  %v1031_v35 = vpop.permute.xlu0 %1030 }
 0x1af   :  { %v1040_v63 = vadd.f32 %v1031_v35, %v1014_v54  ;;  %v1013_v22 = vadd.f32 %v1003_v8, %v987_v61  ;;  %v989_v54 = vmul.f32 %v985_v51, %v3722_v28  ;;  %v3957_v35 = vld [vmem:[#allocation2 + $0x9a] sm:$0xff] }
 0x1b0   :  { %1540 = vrot.lane.b32.xlu1 %v1529_v27, %s3028_s3  ;;  %1600 = vrot.lane.b32.xlu0 %v1592_v41, %s3028_s3  ;;  %5120 = vst [vmem:[#allocation30_spill] sm:$0xff] %v3957_v35  ;;  %v1593_v28 = vmul.f32 %v1591_v31, %v3957_v35 }
 0x1b1   :  { %v1054_v39 = vadd.f32 %v1050_v21, %v1040_v63  ;;  %v1618_v63 = vmul.f32 %v3952_v36, %v3937_v12 }
 0x1b2   :  { %v1007_v5 = vpop.permute.xlu1 %1006  ;;  %v1067_v9 = vpop.permute.xlu0 %1066 }
 0x1b3   :  { %v1015_v21 = vadd.f32 %v1007_v5, %v989_v54  ;;  %v1078_v19 = vadd.f32 %v1067_v9, %v1052_v7  ;;  %v3973_v54 = vstv %s2791_s5  ;;  %s2780_s5 = sld [smem:[#allocation13 + $0x183]] }
 0x1b4   :  { %1562 = vrot.lane.b32.xlu1 %v1553_v59, %s3029_s21  ;;  %1604 = vrot.lane.b32.xlu0 %v1594_v13, %s3028_s3  ;;  %v1113_v59 = vstv %s2757_s22  ;;  %v3965_v13 = vld [vmem:[#allocation2 + $0xb2] sm:$0xff]  ;;  %s4279_s22 = sld [smem:[#allocation13 + $0x285]] }
 0x1b5   :  { %5121 = vst [vmem:[#allocation31_spill] sm:$0xff] %v3965_v13  ;;  %v1114_v7 = vmul.f32 %v1113_v59, %v3755_v55  ;;  %v1595_v52 = vmul.f32 %v1591_v31, %v3965_v13 }
 0x1b6   :  { %v1029_v42 = vpop.permute.xlu1 %1028  ;;  %v1071_v41 = vpop.permute.xlu0 %1070 }
 0x1b7   :  { %v1039_v27 = vadd.f32 %v1029_v42, %v1013_v22  ;;  %v1620_v42 = vmul.f32 %v3952_v36, %v3944_v44 }
 0x1b8   :  { %1566 = vrot.lane.b32.xlu1 %v1555_v2, %s3029_s21  ;;  %1626 = vrot.lane.b32.xlu0 %v1618_v63, %s3029_s21  ;;  %v3971_v2 = vld [vmem:[#allocation2 + $0xc0] sm:$0xff] }
 0x1b9   :  { %v1053_v8 = vadd.f32 %v1049_v4, %v1039_v27  ;;  %5122 = vst [vmem:[#allocation32_spill] sm:$0xff] %v3971_v2  ;;  %v1080_v4 = vadd.f32 %v1071_v41, %v1054_v39  ;;  %v1116_v39 = vmul.f32 %v1113_v59, %v3761_v47  ;;  %v1619_v41 = vmul.f32 %v3952_v36, %v3957_v35 }
 0x1ba   :  { %v1033_v61 = vpop.permute.xlu1 %1032  ;;  %v1093_v22 = vpop.permute.xlu0 %1092  ;;  %v4006_v47 = vstv %s2792_s7  ;;  %s4320_s7 = sld [smem:[#allocation13 + $0x385]] }
 0x1bb   :  { %v1041_v51 = vadd.f32 %v1033_v61, %v1015_v21  ;;  %v1104_v5 = vadd.f32 %v1093_v22, %v1078_v19  ;;  %v1694_v21 = vmul.f32 %v3973_v54, %v3971_v2  ;;  %v3987_v61 = vld [vmem:[#allocation2 + $0xd8] sm:$0xff]  ;;  %v926_v22 = vadd.f32 %v3875_v53, %v3864_v50 }
 0x1bc   :  { %1602 = vrot.lane.b32.xlu1 %v1593_v28, %s3028_s3  ;;  %1630 = vrot.lane.b32.xlu0 %v1620_v42, %s3029_s21  ;;  %5123 = vst [vmem:[#allocation33_spill] sm:$0xff] %v3987_v61  ;;  %v4024_v50 = vstv %s3978_s24  ;;  %v4027_v53 = vstv %s3982_s6  ;;  %s2783_s24 = sld [smem:[#allocation13 + $0x303]]  ;;  %s2817_s6 = sld [smem:[#allocation13 + $0x86]] }
 0x1bd   :  { %v1055_v9 = vadd.f32 %v1051_v57, %v1041_v51  ;;  %v1118_v49 = vadd.f32 %v1114_v7, %v1104_v5  ;;  %v1696_v51 = vmul.f32 %v3973_v54, %v3987_v61  ;;  %v1621_v5 = vmul.f32 %v3952_v36, %v3965_v13  ;;  %v4013_v7 = vld [vmem:[#allocation2 + $0xc8] sm:$0xff] }
 0x1be   :  { %v1069_v27 = vpop.permute.xlu1 %1068  ;;  %v1097_v63 = vpop.permute.xlu0 %1096  ;;  %5124 = vst [vmem:[#allocation34_spill] sm:$0xff] %v4013_v7  ;;  %v4030_v36 = vstv %s3984_s25  ;;  %s2818_s25 = sld [smem:[#allocation13 + $0x106]] }
 0x1bf   :  { %v1106_v55 = vadd.f32 %v1097_v63, %v1080_v4  ;;  %v1079_v57 = vadd.f32 %v1069_v27, %v1053_v8  ;;  %v4015_v4 = vstv %s2794_s23  ;;  %v1115_v63 = vmul.f32 %v1113_v59, %v3769_v26  ;;  %s4375_s23 = sld [smem:[#allocation13 + $0x405]] }
 0x1c0   :  { %1606 = vrot.lane.b32.xlu1 %v1595_v52, %s3028_s3  ;;  %1702 = vrot.lane.b32.xlu0 %v1694_v21, %s3028_s3  ;;  %v1720_v8 = vmul.f32 %v4006_v47, %v3971_v2  ;;  %v1117_v27 = vmul.f32 %v1113_v59, %v3775_v6  ;;  %v4035_v26 = vstv %s3990_s26  ;;  %v1695_v6 = vmul.f32 %v3973_v54, %v4013_v7  ;;  %s2786_s26 = sld [smem:[#allocation14 + $0x180]] }
 0x1c1   :  { %v1120_v19 = vadd.f32 %v1116_v39, %v1106_v55  ;;  %v952_v55 = vadd.f32 %v3895_v23, %v926_v22  ;;  %v4045_v23 = vstv %s3995_s29  ;;  %v4048_v22 = vstv %s3997_s30  ;;  %s2787_s29 = sld [smem:[#allocation14 + $0x181]]  ;;  %s2788_s30 = sld [smem:[#allocation14 + $0x182]] }
 0x1c2   :  { %v1073_v31 = vpop.permute.xlu1 %1072  ;;  %v1133_v28 = vpop.permute.xlu0 %1132 }
 0x1c3   :  { %v1081_v39 = vadd.f32 %v1073_v31, %v1055_v9  ;;  %v928_v9 = vadd.f32 %v3884_v18, %v3873_v11  ;;  %v970_v11 = vmul.f32 %v4030_v36, %v952_v55  ;;  %v976_v18 = vmul.f32 %v4035_v26, %v952_v55 }
 0x1c4   :  { %1628 = vrot.lane.b32.xlu1 %v1619_v41, %s3029_s21  ;;  %1706 = vrot.lane.b32.xlu0 %v1696_v51, %s3028_s3  ;;  %v4039_v41 = vld [vmem:[#allocation2 + $0xe0] sm:$0xff] }
 0x1c5   :  { %5125 = vst [vmem:[#allocation35_spill] sm:$0xff] %v4039_v41 }
 0x1c6   :  { %v1095_v42 = vpop.permute.xlu1 %1094  ;;  %v1137_v21 = vpop.permute.xlu0 %1136 }
 0x1c7   :  { %v1105_v52 = vadd.f32 %v1095_v42, %v1079_v57  ;;  %v1144_v57 = vadd.f32 %v1133_v28, %v1118_v49  ;;  %v1722_v42 = vmul.f32 %v4006_v47, %v3987_v61  ;;  %v964_v49 = vmul.f32 %v4027_v53, %v952_v55  ;;  %v4065_v61 = vld [vmem:[#allocation2 + $0xc1] sm:$0xff] }
 0x1c8   :  { %1632 = vrot.lane.b32.xlu1 %v1621_v5, %s3029_s21  ;;  %1728 = vrot.lane.b32.xlu0 %v1720_v8, %s3029_s21  ;;  %v4055_v5 = vstv %s4001_s9  ;;  %v958_v8 = vmul.f32 %v4024_v50, %v952_v55  ;;  %v1697_v28 = vmul.f32 %v3973_v54, %v4039_v41  ;;  %5126 = vst [vmem:[#allocation36_spill] sm:$0xff] %v4065_v61  ;;  %s2789_s9 = sld [smem:[#allocation14 + $0x183]] }
 0x1c9   :  { %v1119_v59 = vadd.f32 %v1115_v63, %v1105_v52  ;;  %v4058_v52 = vstv %s4003_s10  ;;  %v1146_v35 = vadd.f32 %v1137_v21, %v1120_v19  ;;  %v1760_v55 = vmul.f32 %v4015_v4, %v4065_v61  ;;  %s2830_s10 = sld [smem:[#allocation13 + $0x87]] }
 0x1ca   :  { %v1099_v51 = vpop.permute.xlu1 %1098  ;;  %v1159_v63 = vpop.permute.xlu0 %1158  ;;  %v1721_v19 = vmul.f32 %v4006_v47, %v4013_v7  ;;  %v4121_v7 = vstv %s4069_s2  ;;  %s4528_s2 = sld [smem:[#allocation13 + $0x206]] }
 0x1cb   :  { %v1107_v31 = vadd.f32 %v1099_v51, %v1081_v39  ;;  %v1170_v2 = vadd.f32 %v1159_v63, %v1144_v57  ;;  %v954_v39 = vadd.f32 %v3907_v62, %v928_v9  ;;  %v4084_v62 = vstv %s4021_s11  ;;  %s4460_s11 = sld [smem:[#allocation13 + $0x4]] }
 0x1cc   :  { %1704 = vrot.lane.b32.xlu1 %v1695_v6, %s3028_s3  ;;  %1732 = vrot.lane.b32.xlu0 %v1722_v42, %s3029_s21 }
 0x1cd   :  { %v4074_v51 = vadd.f32 %v1117_v27, %v1107_v31  ;;  %v1176_v54 = vmul.f32 %v4045_v23, %v1170_v2  ;;  %v1186_v57 = vmul.f32 %v4048_v22, %v1170_v2  ;;  %v1196_v63 = vmul.f32 %v4055_v5, %v1170_v2  ;;  %v4086_v27 = vld [vmem:[#allocation2 + $0xd9] sm:$0xff] }
 0x1ce   :  { %v1135_v6 = vpop.permute.xlu1 %1134  ;;  %v1206_v13 = vmul.f32 %v4058_v52, %v1170_v2  ;;  %v1163_v44 = vpop.permute.xlu0 %1162  ;;  %v927_v2 = vadd.f32 %v3904_v38, %v3888_v43  ;;  %v1762_v43 = vmul.f32 %v4015_v4, %v4086_v27 }
 0x1cf   :  { %v4089_v42 = vadd.f32 %v1176_v54, %v958_v8  ;;  %v4091_v9 = vadd.f32 %v1186_v57, %v964_v49  ;;  %v4093_v31 = vadd.f32 %v1196_v63, %v970_v11  ;;  %v1172_v21 = vadd.f32 %v1163_v44, %v1146_v35 }
 0x1d0   :  { %1708 = vrot.lane.b32.xlu1 %v1697_v28, %s3028_s3  ;;  %v4095_v12 = vadd.f32 %v1206_v13, %v976_v18  ;;  %1768 = vrot.lane.b32.xlu0 %v1760_v55, %s3028_s3  ;;  %v4103_v28 = vstv %s4042_s12  ;;  %v960_v8 = vmul.f32 %v4024_v50, %v954_v39  ;;  %v966_v49 = vmul.f32 %v4027_v53, %v954_v39  ;;  %s4483_s12 = sld [smem:[#allocation13 + $0x107]] }
 0x1d1   :  { %v972_v13 = vmul.f32 %v4030_v36, %v954_v39  ;;  %v953_v38 = vadd.f32 %v3920_v30, %v927_v2  ;;  %v1178_v44 = vmul.f32 %v4045_v23, %v1172_v21  ;;  %v1188_v35 = vmul.f32 %v4048_v22, %v1172_v21 }
 0x1d2   :  { %v1139_v11 = vpop.permute.xlu1 %1138  ;;  %v1198_v18 = vmul.f32 %v4055_v5, %v1172_v21  ;;  %v1235_v54 = vpop.permute.xlu0 %1234  ;;  %v978_v57 = vmul.f32 %v4035_v26, %v954_v39  ;;  %v1208_v63 = vmul.f32 %v4058_v52, %v1172_v21  ;;  %v4118_v55 = vstv %s4067_s13  ;;  %s4516_s13 = sld [smem:[#allocation13 + $0x184]] }
 0x1d3   :  { %v1145_v58 = vadd.f32 %v1135_v6, %v1119_v59  ;;  %v4123_v40 = vadd.f32 %v1178_v44, %v960_v8  ;;  %v4125_v30 = vadd.f32 %v1188_v35, %v966_v49  ;;  %v929_v39 = vadd.f32 %v3914_v32, %v3901_v1  ;;  %v4139_v49 = vld [vmem:[#allocation2 + $0xc9] sm:$0xff] }
 0x1d4   :  { %1730 = vrot.lane.b32.xlu1 %v1721_v19, %s3029_s21  ;;  %v4127_v2 = vadd.f32 %v1198_v18, %v972_v13  ;;  %1772 = vrot.lane.b32.xlu0 %v1762_v43, %s3028_s3  ;;  %v4132_v19 = vadd.f32 %v1208_v63, %v978_v57  ;;  %v1723_v21 = vmul.f32 %v4006_v47, %v4039_v41  ;;  %v4154_v18 = vld [vmem:[#allocation2 + $0xe1] sm:$0xff] }
 0x1d5   :  { %v1220_v59 = vmul.f32 %v4084_v62, %v3779_v33  ;;  %v959_v6 = vmul.f32 %v4024_v50, %v953_v38  ;;  %v1222_v13 = vmul.f32 %v4084_v62, %v3785_v34  ;;  %v1786_v1 = vmul.f32 %v4118_v55, %v4065_v61 }
 0x1d6   :  { %v1161_v20 = vpop.permute.xlu1 %1160  ;;  %v1239_v43 = vpop.permute.xlu0 %1238  ;;  %v965_v32 = vmul.f32 %v4027_v53, %v953_v38  ;;  %v971_v44 = vmul.f32 %v4030_v36, %v953_v38  ;;  %v977_v47 = vmul.f32 %v4035_v26, %v953_v38  ;;  %v955_v33 = vadd.f32 %v3929_v17, %v929_v39 }
 0x1d7   :  { %v1171_v8 = vadd.f32 %v1161_v20, %v1145_v58  ;;  %v1147_v57 = vadd.f32 %v1139_v11, %v4074_v51  ;;  %v1246_v38 = vadd.f32 %v1235_v54, %v1220_v59  ;;  %v1761_v17 = vmul.f32 %v4015_v4, %v4139_v49  ;;  %v4173_v54 = vld [vmem:[#allocation2 + $0xc2] sm:$0xff] }
 0x1d8   :  { %1734 = vrot.lane.b32.xlu1 %v1723_v21, %s3029_s21  ;;  %1794 = vrot.lane.b32.xlu0 %v1786_v1, %s3029_s21  ;;  %v1788_v39 = vmul.f32 %v4118_v55, %v4086_v27  ;;  %v1763_v51 = vmul.f32 %v4015_v4, %v4154_v18  ;;  %v1282_v59 = vmul.f32 %v4103_v28, %v3803_v24 }
 0x1d9   :  { %v1177_v20 = vmul.f32 %v4045_v23, %v1171_v8  ;;  %v1187_v58 = vmul.f32 %v4048_v22, %v1171_v8  ;;  %v1197_v34 = vmul.f32 %v4055_v5, %v1171_v8  ;;  %v1207_v35 = vmul.f32 %v4058_v52, %v1171_v8 }
 0x1da   :  { %v1165_v63 = vpop.permute.xlu1 %1164  ;;  %v1261_v10 = vpop.permute.xlu0 %1260 }
 0x1db   :  { %v4162_v21 = vadd.f32 %v1177_v20, %v959_v6  ;;  %v4164_v41 = vadd.f32 %v1187_v58, %v965_v32  ;;  %v4166_v61 = vadd.f32 %v1197_v34, %v971_v44  ;;  %v4168_v8 = vadd.f32 %v1207_v35, %v977_v47 }
 0x1dc   :  { %v1173_v1 = vadd.f32 %v1165_v63, %v1147_v57  ;;  %1770 = vrot.lane.b32.xlu1 %v1761_v17, %s3028_s3  ;;  %v1272_v11 = vadd.f32 %v1261_v10, %v1246_v38  ;;  %v961_v6 = vmul.f32 %v4024_v50, %v955_v33  ;;  %v967_v32 = vmul.f32 %v4027_v53, %v955_v33 }
 0x1dd   :  { %v973_v44 = vmul.f32 %v4030_v36, %v955_v33  ;;  %v979_v47 = vmul.f32 %v4035_v26, %v955_v33  ;;  %1798 = vrot.lane.b32.xlu0 %v1788_v39, %s3029_s21  ;;  %v1248_v34 = vadd.f32 %v1239_v43, %v1222_v13  ;;  %v1826_v50 = vmul.f32 %v4121_v7, %v4173_v54 }
 0x1de   :  { %v1179_v4 = vmul.f32 %v4045_v23, %v1173_v1  ;;  %v1189_v10 = vmul.f32 %v4048_v22, %v1173_v1  ;;  %v1199_v20 = vmul.f32 %v4055_v5, %v1173_v1  ;;  %v1209_v24 = vmul.f32 %v4058_v52, %v1173_v1  ;;  %v1237_v58 = vpop.permute.xlu1 %1236  ;;  %v1265_v35 = vpop.permute.xlu0 %1264  ;;  %v4199_v22 = vld [vmem:[#allocation2 + $0xda] sm:$0xff] }
 0x1df   :  { %v1286_v53 = vadd.f32 %v1282_v59, %v1272_v11  ;;  %v1274_v5 = vadd.f32 %v1265_v35, %v1248_v34  ;;  %v1284_v52 = vmul.f32 %v4103_v28, %v3809_v37  ;;  %v1787_v43 = vmul.f32 %v4118_v55, %v4139_v49  ;;  %v4217_v59 = vld [vmem:[#allocation2 + $0xca] sm:$0xff] }
 0x1e0   :  { %v4190_v36 = vadd.f32 %v1179_v4, %v961_v6  ;;  %v4192_v26 = vadd.f32 %v1189_v10, %v967_v32  ;;  %v4194_v33 = vadd.f32 %v1199_v20, %v973_v44  ;;  %v4196_v23 = vadd.f32 %v1209_v24, %v979_v47  ;;  %1774 = vrot.lane.b32.xlu1 %v1763_v51, %s3028_s3  ;;  %v4226_v24 = vld [vmem:[#allocation2 + $0xe2] sm:$0xff] }
 0x1e1   :  { %1834 = vrot.lane.b32.xlu0 %v1826_v50, %s3028_s3  ;;  %v1221_v57 = vmul.f32 %v4084_v62, %v3793_v60  ;;  %v1828_v38 = vmul.f32 %v4121_v7, %v4199_v22  ;;  %v1288_v17 = vadd.f32 %v1284_v52, %v1274_v5  ;;  %v1851_v39 = vstv %s4177_s4  ;;  %v4232_v50 = vld [vmem:[#allocation2 + $0xf0] sm:$0xff]  ;;  %s4584_s4 = sld [smem:[#allocation13 + $0x286]] }
 0x1e2   :  { %v1241_v13 = vpop.permute.xlu1 %1240  ;;  %v1301_v63 = vpop.permute.xlu0 %1300  ;;  %v1789_v51 = vmul.f32 %v4118_v55, %v4154_v18  ;;  %v1223_v11 = vmul.f32 %v4084_v62, %v3799_v16  ;;  %v1283_v6 = vmul.f32 %v4103_v28, %v3817_v45  ;;  %v1852_v44 = vmul.f32 %v1851_v39, %v4173_v54 }
 0x1e3   :  { %v1247_v1 = vadd.f32 %v1237_v58, %v1221_v57  ;;  %v1347_v10 = vstv %s2770_s14  ;;  %v1312_v20 = vadd.f32 %v1301_v63, %v1286_v53  ;;  %v1827_v16 = vmul.f32 %v4121_v7, %v4217_v59  ;;  %s2796_s14 = sld [smem:[#allocation13 + $0x304]] }
 0x1e4   :  { %1796 = vrot.lane.b32.xlu1 %v1787_v43, %s3029_s21  ;;  %v1249_v47 = vadd.f32 %v1241_v13, %v1223_v11  ;;  %v1285_v45 = vmul.f32 %v4103_v28, %v3824_v56  ;;  %v1854_v34 = vmul.f32 %v1851_v39, %v4199_v22  ;;  %v1927_v5 = vstv %s2804_s0  ;;  %s2833_s0 = sld [smem:[#allocation13 + $0x207]] }
 0x1e5   :  { %1838 = vrot.lane.b32.xlu0 %v1828_v38, %s3028_s3  ;;  %v1348_v53 = vmul.f32 %v1347_v10, %v3829_v29  ;;  %v1829_v56 = vmul.f32 %v4121_v7, %v4226_v24  ;;  %v1928_v63 = vmul.f32 %v1927_v5, %v4232_v50  ;;  %v1350_v29 = vmul.f32 %v1347_v10, %v3836_v3 }
 0x1e6   :  { %v1263_v37 = vpop.permute.xlu1 %1262  ;;  %v1305_v32 = vpop.permute.xlu0 %1304 }
 0x1e7   :  { %v1273_v60 = vadd.f32 %v1263_v37, %v1247_v1  ;;  %v1314_v43 = vadd.f32 %v1305_v32, %v1288_v17  ;;  %v4240_v1 = vld [vmem:[#allocation2 + $0x108] sm:$0xff]  ;;  %v1855_v32 = vmul.f32 %v1851_v39, %v4226_v24 }
 0x1e8   :  { %1800 = vrot.lane.b32.xlu1 %v1789_v51, %s3029_s21  ;;  %v1853_v51 = vmul.f32 %v1851_v39, %v4217_v59  ;;  %v1930_v11 = vmul.f32 %v1927_v5, %v4240_v1 }
 0x1e9   :  { %v1287_v4 = vadd.f32 %v1283_v6, %v1273_v60  ;;  %1860 = vrot.lane.b32.xlu0 %v1852_v44, %s3029_s21  ;;  %v4247_v60 = vstv %s2805_s1  ;;  %s2834_s1 = sld [smem:[#allocation13 + $0x287]] }
 0x1ea   :  { %v1267_v55 = vpop.permute.xlu1 %1266  ;;  %v1327_v58 = vpop.permute.xlu0 %1326 }
 0x1eb   :  { %v1275_v62 = vadd.f32 %v1267_v55, %v1249_v47  ;;  %v1338_v35 = vadd.f32 %v1327_v58, %v1312_v20  ;;  %v4251_v47 = vld [vmem:[#allocation2 + $0xf8] sm:$0xff]  ;;  %v1349_v55 = vmul.f32 %v1347_v10, %v3847_v46  ;;  %v1956_v46 = vmul.f32 %v4247_v60, %v4240_v1 }
 0x1ec   :  { %1836 = vrot.lane.b32.xlu1 %v1827_v16, %s3028_s3  ;;  %v1954_v16 = vmul.f32 %v4247_v60, %v4232_v50  ;;  %v1929_v39 = vmul.f32 %v1927_v5, %v4251_v47 }
 0x1ed   :  { %v1289_v52 = vadd.f32 %v1285_v45, %v1275_v62  ;;  %1864 = vrot.lane.b32.xlu0 %v1854_v34, %s3029_s21  ;;  %v1352_v28 = vadd.f32 %v1348_v53, %v1338_v35  ;;  %v4260_v35 = vld [vmem:[#allocation2 + $0x110] sm:$0xff]  ;;  %v4262_v53 = vstv %s2773_s15  ;;  %s2799_s15 = sld [smem:[#allocation14 + $0x200]] }
 0x1ee   :  { %v1303_v13 = vpop.permute.xlu1 %1302  ;;  %v1331_v57 = vpop.permute.xlu0 %1330 }
 0x1ef   :  { %v1340_v38 = vadd.f32 %v1331_v57, %v1314_v43  ;;  %v1313_v6 = vadd.f32 %v1303_v13, %v1287_v4  ;;  %v1351_v4 = vmul.f32 %v1347_v10, %v3854_v48  ;;  %v4266_v43 = vstv %s2774_s16  ;;  %v4273_v10 = vld [vmem:[#allocation2 + $0xf1] sm:$0xff]  ;;  %s2800_s16 = sld [smem:[#allocation14 + $0x201]] }
 0x1f0   :  { %1840 = vrot.lane.b32.xlu1 %v1829_v56, %s3028_s3  ;;  %v4270_v56 = vstv %s2776_s18  ;;  %s2802_s18 = sld [smem:[#allocation14 + $0x203]] }
 0x1f1   :  { %1936 = vrot.lane.b32.xlu0 %v1928_v63, %s3028_s3  ;;  %v1354_v17 = vadd.f32 %v1350_v29, %v1340_v38  ;;  %v1931_v63 = vmul.f32 %v1927_v5, %v4260_v35 }
 0x1f2   :  { %v1307_v37 = vpop.permute.xlu1 %1306  ;;  %v1367_v7 = vpop.permute.xlu0 %1366 }
 0x1f3   :  { %v1315_v62 = vadd.f32 %v1307_v37, %v1289_v52  ;;  %v1378_v34 = vadd.f32 %v1367_v7, %v1352_v28  ;;  %v4268_v52 = vstv %s2775_s17  ;;  %v4275_v28 = vstv %s2807_s19  ;;  %s2801_s17 = sld [smem:[#allocation14 + $0x202]]  ;;  %s2823_s19 = sld [smem:[#allocation13 + $0x386]] }
 0x1f4   :  { %1862 = vrot.lane.b32.xlu1 %v1853_v51, %s3029_s21 }
 0x1f5   :  { %1940 = vrot.lane.b32.xlu0 %v1930_v11, %s3028_s3 }
 0x1f6   :  { %v1329_v3 = vpop.permute.xlu1 %1328  ;;  %v1371_v20 = vpop.permute.xlu0 %1370 }
 0x1f7   :  { %v1339_v44 = vadd.f32 %v1329_v3, %v1313_v6  ;;  %v1380_v6 = vadd.f32 %v1371_v20, %v1354_v17  ;;  %v4302_v17 = vld [vmem:[#allocation2 + $0x109] sm:$0xff] }
 0x1f8   :  { %1866 = vrot.lane.b32.xlu1 %v1855_v32, %s3029_s21  ;;  %v1994_v32 = vmul.f32 %v4275_v28, %v4273_v10 }
 0x1f9   :  { %v1353_v45 = vadd.f32 %v1349_v55, %v1339_v44  ;;  %1962 = vrot.lane.b32.xlu0 %v1954_v16, %s3029_s21 }
 0x1fa   :  { %v1333_v58 = vpop.permute.xlu1 %1332  ;;  %v1393_v57 = vpop.permute.xlu0 %1392 }
 0x1fb   :  { %v1341_v13 = vadd.f32 %v1333_v58, %v1315_v62  ;;  %v1404_v48 = vadd.f32 %v1393_v57, %v1378_v34 }
 0x1fc   :  { %1938 = vrot.lane.b32.xlu1 %v1929_v39, %s3028_s3  ;;  %v4315_v39 = vstv %s4277_s20  ;;  %s4667_s20 = sld [smem:[#allocation13 + $0x5]] }
 0x1fd   :  { %v1355_v38 = vadd.f32 %v1351_v4, %v1341_v13  ;;  %1966 = vrot.lane.b32.xlu0 %v1956_v46, %s3029_s21  ;;  %v1410_v37 = vmul.f32 %v4262_v53, %v1404_v48  ;;  %v1420_v51 = vmul.f32 %v4266_v43, %v1404_v48  ;;  %v1430_v7 = vmul.f32 %v4268_v52, %v1404_v48 }
 0x1fe   :  { %v1369_v29 = vpop.permute.xlu1 %1368  ;;  %v1440_v11 = vmul.f32 %v4270_v56, %v1404_v48  ;;  %v1397_v3 = vpop.permute.xlu0 %1396  ;;  %v4318_v46 = vstv %s4279_s22  ;;  %s4690_s22 = sld [smem:[#allocation13 + $0x406]] }
 0x1ff   :  { %v4291_v5 = vadd.f32 %v1410_v37, %v4089_v42  ;;  %v4294_v44 = vadd.f32 %v1420_v51, %v4091_v9  ;;  %v4297_v55 = vadd.f32 %v1430_v7, %v4093_v31  ;;  %v1406_v20 = vadd.f32 %v1397_v3, %v1380_v6 }
 0x200   :  { %1942 = vrot.lane.b32.xlu1 %v1931_v63, %s3028_s3  ;;  %v4300_v16 = vadd.f32 %v1440_v11, %v4095_v12  ;;  %v1955_v42 = vmul.f32 %v4247_v60, %v4251_v47  ;;  %v1996_v12 = vmul.f32 %v4275_v28, %v4302_v17  ;;  %v1379_v13 = vadd.f32 %v1369_v29, %v1353_v45  ;;  %v4337_v45 = vld [vmem:[#allocation2 + $0xf9] sm:$0xff] }
 0x201   :  { %2002 = vrot.lane.b32.xlu0 %v1994_v32, %s3028_s3  ;;  %v1412_v9 = vmul.f32 %v4262_v53, %v1406_v20  ;;  %v1422_v4 = vmul.f32 %v4266_v43, %v1406_v20  ;;  %v1432_v31 = vmul.f32 %v4268_v52, %v1406_v20  ;;  %v1442_v34 = vmul.f32 %v4270_v56, %v1406_v20 }
 0x202   :  { %v1373_v62 = vpop.permute.xlu1 %1372  ;;  %v1469_v58 = vpop.permute.xlu0 %1468  ;;  %v1957_v7 = vmul.f32 %v4247_v60, %v4260_v35  ;;  %v4344_v29 = vstv %s2780_s5  ;;  %s4725_s5 = sld [smem:[#allocation13 + $0x185]] }
 0x203   :  { %v4323_v57 = vadd.f32 %v1412_v9, %v4123_v40  ;;  %v4326_v48 = vadd.f32 %v1422_v4, %v4125_v30  ;;  %v4329_v63 = vadd.f32 %v1432_v31, %v4127_v2  ;;  %v4333_v51 = vadd.f32 %v1442_v34, %v4132_v19 }
 0x204   :  { %1964 = vrot.lane.b32.xlu1 %v1955_v42, %s3029_s21  ;;  %v2020_v30 = vmul.f32 %v4318_v46, %v4273_v10  ;;  %v1454_v2 = vmul.f32 %v4315_v39, %v3859_v15  ;;  %v1381_v32 = vadd.f32 %v1373_v62, %v1355_v38  ;;  %v1995_v9 = vmul.f32 %v4275_v28, %v4337_v45  ;;  %v4353_v15 = vld [vmem:[#allocation2 + $0x111] sm:$0xff] }
 0x205   :  { %2006 = vrot.lane.b32.xlu0 %v1996_v12, %s3028_s3  ;;  %v2022_v4 = vmul.f32 %v4318_v46, %v4302_v17 }
 0x206   :  { %v1395_v37 = vpop.permute.xlu1 %1394  ;;  %v1473_v40 = vpop.permute.xlu0 %1472  ;;  %v1480_v42 = vadd.f32 %v1469_v58, %v1454_v2 }
 0x207   :  { %v1405_v11 = vadd.f32 %v1395_v37, %v1379_v13  ;;  %v4370_v37 = vld [vmem:[#allocation2 + $0xf2] sm:$0xff] }
 0x208   :  { %1968 = vrot.lane.b32.xlu1 %v1957_v7, %s3029_s21  ;;  %v4373_v7 = vstv %s4320_s7  ;;  %s4735_s7 = sld [smem:[#allocation13 + $0x387]] }
 0x209   :  { %v1411_v19 = vmul.f32 %v4262_v53, %v1405_v11  ;;  %v1421_v6 = vmul.f32 %v4266_v43, %v1405_v11  ;;  %v1431_v60 = vmul.f32 %v4268_v52, %v1405_v11  ;;  %v1441_v3 = vmul.f32 %v4270_v56, %v1405_v11  ;;  %2028 = vrot.lane.b32.xlu0 %v2020_v30, %s3029_s21 }
 0x20a   :  { %v1399_v20 = vpop.permute.xlu1 %1398  ;;  %v1495_v62 = vpop.permute.xlu0 %1494 }
 0x20b   :  { %v4358_v31 = vadd.f32 %v1411_v19, %v4162_v21  ;;  %v4361_v12 = vadd.f32 %v1421_v6, %v4164_v41  ;;  %v4364_v34 = vadd.f32 %v1431_v60, %v4166_v61  ;;  %v4367_v38 = vadd.f32 %v1441_v3, %v4168_v8 }
 0x20c   :  { %v1407_v58 = vadd.f32 %v1399_v20, %v1381_v32  ;;  %2004 = vrot.lane.b32.xlu1 %v1995_v9, %s3028_s3  ;;  %v1506_v13 = vadd.f32 %v1495_v62, %v1480_v42  ;;  %v1456_v41 = vmul.f32 %v4315_v39, %v3868_v14  ;;  %v1997_v61 = vmul.f32 %v4275_v28, %v4353_v15 }
 0x20d   :  { %2032 = vrot.lane.b32.xlu0 %v2022_v4, %s3029_s21  ;;  %v1516_v21 = vmul.f32 %v4344_v29, %v3899_v0  ;;  %v2060_v14 = vmul.f32 %v4373_v7, %v4370_v37  ;;  %v2085_v9 = vstv %s4375_s23  ;;  %v2023_v62 = vmul.f32 %v4318_v46, %v4353_v15  ;;  %s4787_s23 = sld [smem:[#allocation13 + $0x407]] }
 0x20e   :  { %v1413_v8 = vmul.f32 %v4262_v53, %v1407_v58  ;;  %v1423_v11 = vmul.f32 %v4266_v43, %v1407_v58  ;;  %v1433_v30 = vmul.f32 %v4268_v52, %v1407_v58  ;;  %v1443_v2 = vmul.f32 %v4270_v56, %v1407_v58  ;;  %v1471_v19 = vpop.permute.xlu1 %1470  ;;  %v1499_v60 = vpop.permute.xlu0 %1498  ;;  %v4403_v52 = vld [vmem:[#allocation2 + $0x10a] sm:$0xff] }
 0x20f   :  { %v1482_v6 = vadd.f32 %v1473_v40, %v1456_v41  ;;  %v1520_v28 = vadd.f32 %v1516_v21, %v1506_v13  ;;  %v2021_v40 = vmul.f32 %v4318_v46, %v4337_v45  ;;  %v2062_v20 = vmul.f32 %v4373_v7, %v4403_v52  ;;  %v5128_v58 = vld [vmem:[#allocation25_spill] sm:$0xff]  ;;  %v5129_v21 = vld [vmem:[#allocation26_spill] sm:$0xff] }
 0x210   :  { %v4391_v3 = vadd.f32 %v1413_v8, %v4190_v36  ;;  %v4394_v0 = vadd.f32 %v1423_v11, %v4192_v26  ;;  %v4397_v53 = vadd.f32 %v1433_v30, %v4194_v33  ;;  %v4400_v43 = vadd.f32 %v1443_v2, %v4196_v23  ;;  %2008 = vrot.lane.b32.xlu1 %v1997_v61, %s3028_s3  ;;  %v5127_v33 = vld [vmem:[#allocation24_spill] sm:$0xff] }
 0x211   :  { %v1508_v56 = vadd.f32 %v1499_v60, %v1482_v6  ;;  %2068 = vrot.lane.b32.xlu0 %v2060_v14, %s3028_s3  ;;  %v1518_v36 = vmul.f32 %v4344_v29, %v3911_v25  ;;  %v1455_v32 = vmul.f32 %v4315_v39, %v5127_v33  ;;  %v1457_v13 = vmul.f32 %v4315_v39, %v5128_v58  ;;  %v4421_v61 = vld [vmem:[#allocation2 + $0xfa] sm:$0xff] }
 0x212   :  { %v1475_v26 = vpop.permute.xlu1 %1474  ;;  %v1535_v23 = vpop.permute.xlu0 %1534  ;;  %v1517_v8 = vmul.f32 %v4344_v29, %v5129_v21  ;;  %v2086_v30 = vmul.f32 %v2085_v9, %v4370_v37  ;;  %v1581_v6 = vstv %s2783_s24  ;;  %v2061_v39 = vmul.f32 %v4373_v7, %v4421_v61  ;;  %s2809_s24 = sld [smem:[#allocation13 + $0x305]] }
 0x213   :  { %v1522_v42 = vadd.f32 %v1518_v36, %v1508_v56  ;;  %v1481_v4 = vadd.f32 %v1471_v19, %v1455_v32  ;;  %v1483_v2 = vadd.f32 %v1475_v26, %v1457_v13  ;;  %v1546_v60 = vadd.f32 %v1535_v23, %v1520_v28  ;;  %v4430_v56 = vld [vmem:[#allocation2 + $0x112] sm:$0xff] }
 0x214   :  { %2030 = vrot.lane.b32.xlu1 %v2021_v40, %s3029_s21  ;;  %v5130_v36 = vld [vmem:[#allocation27_spill] sm:$0xff]  ;;  %v2088_v32 = vmul.f32 %v2085_v9, %v4403_v52 }
 0x215   :  { %2072 = vrot.lane.b32.xlu0 %v2062_v20, %s3028_s3  ;;  %v1519_v40 = vmul.f32 %v4344_v29, %v5130_v36  ;;  %v4436_v20 = vld [vmem:[#allocation2 + $0x120] sm:$0xff]  ;;  %v2063_v29 = vmul.f32 %v4373_v7, %v4430_v56 }
 0x216   :  { %v1497_v25 = vpop.permute.xlu1 %1496  ;;  %v1539_v11 = vpop.permute.xlu0 %1538  ;;  %5131 = vst [vmem:[#allocation24_spill] sm:$0xff] %v4436_v20 }
 0x217   :  { %v1507_v41 = vadd.f32 %v1497_v25, %v1481_v4  ;;  %v2161_v4 = vstv %s2817_s6  ;;  %v5132_v25 = vld [vmem:[#allocation28_spill] sm:$0xff]  ;;  %v1548_v58 = vadd.f32 %v1539_v11, %v1522_v42  ;;  %s2812_s6 = sld [smem:[#allocation14 + $0x280]] }
 0x218   :  { %2034 = vrot.lane.b32.xlu1 %v2023_v62, %s3029_s21  ;;  %v1582_v28 = vmul.f32 %v1581_v6, %v5132_v25  ;;  %v2162_v21 = vmul.f32 %v2161_v4, %v4436_v20  ;;  %v5136_v25 = vld [vmem:[#allocation30_spill] sm:$0xff] }
 0x219   :  { %v1521_v19 = vadd.f32 %v1517_v8, %v1507_v41  ;;  %2094 = vrot.lane.b32.xlu0 %v2086_v30, %s3029_s21  ;;  %v4444_v30 = vld [vmem:[#allocation2 + $0x138] sm:$0xff] }
 0x21a   :  { %v1501_v46 = vpop.permute.xlu1 %1500  ;;  %v1561_v33 = vpop.permute.xlu0 %1560  ;;  %5133 = vst [vmem:[#allocation25_spill] sm:$0xff] %v4444_v30  ;;  %v2164_v11 = vmul.f32 %v2161_v4, %v4444_v30 }
 0x21b   :  { %v1509_v14 = vadd.f32 %v1501_v46, %v1483_v2  ;;  %v1572_v26 = vadd.f32 %v1561_v33, %v1546_v60  ;;  %v5134_v2 = vld [vmem:[#allocation29_spill] sm:$0xff]  ;;  %v2089_v33 = vmul.f32 %v2085_v9, %v4430_v56 }
 0x21c   :  { %2070 = vrot.lane.b32.xlu1 %v2061_v39, %s3028_s3  ;;  %v1584_v46 = vmul.f32 %v1581_v6, %v5134_v2  ;;  %v2087_v39 = vmul.f32 %v2085_v9, %v4421_v61 }
 0x21d   :  { %v1523_v23 = vadd.f32 %v1519_v40, %v1509_v14  ;;  %2098 = vrot.lane.b32.xlu0 %v2088_v32, %s3029_s21  ;;  %v1586_v13 = vadd.f32 %v1582_v28, %v1572_v26  ;;  %v4451_v14 = vstv %s2818_s25  ;;  %v4455_v26 = vld [vmem:[#allocation2 + $0x128] sm:$0xff]  ;;  %v1583_v28 = vmul.f32 %v1581_v6, %v5136_v25  ;;  %s2813_s25 = sld [smem:[#allocation14 + $0x281]] }
 0x21e   :  { %v1537_v62 = vpop.permute.xlu1 %1536  ;;  %v1565_v41 = vpop.permute.xlu0 %1564  ;;  %5135 = vst [vmem:[#allocation26_spill] sm:$0xff] %v4455_v26  ;;  %v2163_v2 = vmul.f32 %v2161_v4, %v4455_v26 }
 0x21f   :  { %v1574_v8 = vadd.f32 %v1565_v41, %v1548_v58  ;;  %v1547_v36 = vadd.f32 %v1537_v62, %v1521_v19  ;;  %v5137_v62 = vld [vmem:[#allocation31_spill] sm:$0xff] }
 0x220   :  { %2074 = vrot.lane.b32.xlu1 %v2063_v29, %s3028_s3  ;;  %v2188_v29 = vmul.f32 %v4451_v14, %v4436_v20 }
 0x221   :  { %2170 = vrot.lane.b32.xlu0 %v2162_v21, %s3028_s3  ;;  %v1588_v42 = vadd.f32 %v1584_v46, %v1574_v8  ;;  %v1585_v21 = vmul.f32 %v1581_v6, %v5137_v62  ;;  %v4466_v46 = vld [vmem:[#allocation2 + $0x140] sm:$0xff] }
 0x222   :  { %v1541_v60 = vpop.permute.xlu1 %1540  ;;  %v1601_v7 = vpop.permute.xlu0 %1600  ;;  %5138 = vst [vmem:[#allocation27_spill] sm:$0xff] %v4466_v46 }
 0x223   :  { %v1549_v41 = vadd.f32 %v1541_v60, %v1523_v23  ;;  %v1612_v8 = vadd.f32 %v1601_v7, %v1586_v13  ;;  %v4474_v23 = vstv %s2788_s30  ;;  %v4476_v60 = vstv %s2789_s9  ;;  %v4479_v13 = vld [vmem:[#allocation2 + $0x150] sm:$0xff]  ;;  %s2829_s30 = sld [smem:[#allocation13 + $0x7]] }
 0x224   :  { %2096 = vrot.lane.b32.xlu1 %v2087_v39, %s3029_s21  ;;  %v4468_v39 = vstv %s2786_s26  ;;  %5139 = vst [vmem:[#allocation28_spill] sm:$0xff] %v4479_v13  ;;  %v4481_v7 = vstv %s2830_s10  ;;  %s2814_s26 = sld [smem:[#allocation14 + $0x282]]  ;;  %s2832_s9 = sld [smem:[#allocation13 + $0x187]] }
 0x225   :  { %2174 = vrot.lane.b32.xlu0 %v2164_v11, %s3028_s3  ;;  %v2190_v11 = vmul.f32 %v4451_v14, %v4444_v30  ;;  %v4494_v30 = vstv %s4460_s11  ;;  %s2822_s10 = sld [smem:[#allocation13 + $0x306]]  ;;  %s2835_s11 = sld [smem:[#allocation13 + $0x307]] }
 0x226   :  { %v1563_v40 = vpop.permute.xlu1 %1562  ;;  %v1605_v58 = vpop.permute.xlu0 %1604 }
 0x227   :  { %v1573_v32 = vadd.f32 %v1563_v40, %v1547_v36  ;;  %v4472_v40 = vstv %s2787_s29  ;;  %s2815_s29 = sld [smem:[#allocation14 + $0x283]] }
 0x228   :  { %2100 = vrot.lane.b32.xlu1 %v2089_v33, %s3029_s21 }
 0x229   :  { %v1587_v19 = vadd.f32 %v1583_v28, %v1573_v32  ;;  %2196 = vrot.lane.b32.xlu0 %v2188_v29, %s3029_s21  ;;  %v2165_v32 = vmul.f32 %v2161_v4, %v4466_v46 }
 0x22a   :  { %v1567_v9 = vpop.permute.xlu1 %1566  ;;  %v1627_v33 = vpop.permute.xlu0 %1626 }
 0x22b   :  { %v1575_v36 = vadd.f32 %v1567_v9, %v1549_v41  ;;  %v1638_v6 = vadd.f32 %v1627_v33, %v1612_v8  ;;  %v1614_v8 = vadd.f32 %v1605_v58, %v1588_v42  ;;  %v2396_v33 = vmul.f32 %v4481_v7, %v4479_v13  ;;  %v4509_v42 = vld [vmem:[#allocation2 + $0x168] sm:$0xff] }
 0x22c   :  { %2172 = vrot.lane.b32.xlu1 %v2163_v2, %s3028_s3  ;;  %5140 = vst [vmem:[#allocation29_spill] sm:$0xff] %v4509_v42 }
 0x22d   :  { %v1589_v25 = vadd.f32 %v1585_v21, %v1575_v36  ;;  %2200 = vrot.lane.b32.xlu0 %v2190_v11, %s3029_s21  ;;  %v1644_v29 = vmul.f32 %v4468_v39, %v1638_v6  ;;  %v1654_v41 = vmul.f32 %v4472_v40, %v1638_v6  ;;  %v1664_v62 = vmul.f32 %v4474_v23, %v1638_v6 }
 0x22e   :  { %v1603_v28 = vpop.permute.xlu1 %1602  ;;  %v1674_v9 = vmul.f32 %v4476_v60, %v1638_v6  ;;  %v1631_v2 = vpop.permute.xlu0 %1630 }
 0x22f   :  { %v4498_v4 = vadd.f32 %v1644_v29, %v4291_v5  ;;  %v4501_v21 = vadd.f32 %v1654_v41, %v4294_v44  ;;  %v4504_v11 = vadd.f32 %v1664_v62, %v4297_v55  ;;  %v1640_v58 = vadd.f32 %v1631_v2, %v1614_v8 }
 0x230   :  { %2176 = vrot.lane.b32.xlu1 %v2165_v32, %s3028_s3  ;;  %v4507_v36 = vadd.f32 %v1674_v9, %v4300_v16  ;;  %v2189_v5 = vmul.f32 %v4451_v14, %v4455_v26  ;;  %v5141_v32 = vld [vmem:[#allocation32_spill] sm:$0xff]  ;;  %v2398_v62 = vmul.f32 %v4481_v7, %v4509_v42  ;;  %v4526_v2 = vstv %s4483_s12  ;;  %s2825_s12 = sld [smem:[#allocation14 + $0x300]] }
 0x231   :  { %2404 = vrot.lane.b32.xlu0 %v2396_v33, %s3028_s3  ;;  %v1688_v44 = vmul.f32 %v4494_v30, %v5141_v32  ;;  %v1646_v55 = vmul.f32 %v4468_v39, %v1640_v58  ;;  %v1656_v16 = vmul.f32 %v4472_v40, %v1640_v58  ;;  %v1666_v29 = vmul.f32 %v4474_v23, %v1640_v58 }
 0x232   :  { %v1607_v6 = vpop.permute.xlu1 %1606  ;;  %v1703_v41 = vpop.permute.xlu0 %1702  ;;  %v1676_v9 = vmul.f32 %v4476_v60, %v1640_v58  ;;  %v1613_v33 = vadd.f32 %v1603_v28, %v1587_v19  ;;  %v4547_v28 = vld [vmem:[#allocation2 + $0x158] sm:$0xff] }
 0x233   :  { %v1714_v8 = vadd.f32 %v1703_v41, %v1688_v44  ;;  %v4531_v32 = vadd.f32 %v1646_v55, %v4323_v57  ;;  %v4534_v26 = vadd.f32 %v1656_v16, %v4326_v48  ;;  %v4537_v20 = vadd.f32 %v1666_v29, %v4329_v63  ;;  %v5142_v41 = vld [vmem:[#allocation33_spill] sm:$0xff] }
 0x234   :  { %2198 = vrot.lane.b32.xlu1 %v2189_v5, %s3029_s21  ;;  %v4541_v58 = vadd.f32 %v1676_v9, %v4333_v51  ;;  %v2191_v44 = vmul.f32 %v4451_v14, %v4466_v46  ;;  %v1690_v19 = vmul.f32 %v4494_v30, %v5142_v41  ;;  %v2422_v63 = vmul.f32 %v4526_v2, %v4479_v13 }
 0x235   :  { %2408 = vrot.lane.b32.xlu0 %v2398_v62, %s3028_s3  ;;  %v1615_v62 = vadd.f32 %v1607_v6, %v1589_v25  ;;  %v4564_v41 = vstv %s4516_s13  ;;  %v4582_v46 = vstv %s4528_s2  ;;  %s2826_s13 = sld [smem:[#allocation14 + $0x301]]  ;;  %s2827_s2 = sld [smem:[#allocation14 + $0x302]] }
 0x236   :  { %v1629_v5 = vpop.permute.xlu1 %1628  ;;  %v1707_v48 = vpop.permute.xlu0 %1706 }
 0x237   :  { %v1639_v57 = vadd.f32 %v1629_v5, %v1613_v33  ;;  %v1716_v55 = vadd.f32 %v1707_v48, %v1690_v19  ;;  %v2397_v33 = vmul.f32 %v4481_v7, %v4547_v28  ;;  %v4559_v5 = vld [vmem:[#allocation2 + $0x170] sm:$0xff] }
 0x238   :  { %2202 = vrot.lane.b32.xlu1 %v2191_v44, %s3029_s21  ;;  %v2424_v44 = vmul.f32 %v4526_v2, %v4509_v42  ;;  %v4579_v42 = vld [vmem:[#allocation2 + $0x121] sm:$0xff] }
 0x239   :  { %v1645_v51 = vmul.f32 %v4468_v39, %v1639_v57  ;;  %v1655_v16 = vmul.f32 %v4472_v40, %v1639_v57  ;;  %v1665_v14 = vmul.f32 %v4474_v23, %v1639_v57  ;;  %v1675_v29 = vmul.f32 %v4476_v60, %v1639_v57  ;;  %2430 = vrot.lane.b32.xlu0 %v2422_v63, %s3029_s21 }
 0x23a   :  { %v1633_v9 = vpop.permute.xlu1 %1632  ;;  %v1729_v6 = vpop.permute.xlu0 %1728 }
 0x23b   :  { %v4567_v19 = vadd.f32 %v1645_v51, %v4358_v31  ;;  %v4570_v57 = vadd.f32 %v1655_v16, %v4361_v12  ;;  %v4573_v48 = vadd.f32 %v1665_v14, %v4364_v34  ;;  %v4576_v25 = vadd.f32 %v1675_v29, %v4367_v38  ;;  %v5143_v31 = vld [vmem:[#allocation34_spill] sm:$0xff]  ;;  %v5144_v38 = vld [vmem:[#allocation36_spill] sm:$0xff] }
 0x23c   :  { %v1641_v63 = vadd.f32 %v1633_v9, %v1615_v62  ;;  %2406 = vrot.lane.b32.xlu1 %v2397_v33, %s3028_s3  ;;  %v1740_v13 = vadd.f32 %v1729_v6, %v1714_v8  ;;  %v1689_v12 = vmul.f32 %v4494_v30, %v5143_v31  ;;  %v2399_v34 = vmul.f32 %v4481_v7, %v4559_v5 }
 0x23d   :  { %2434 = vrot.lane.b32.xlu0 %v2424_v44, %s3029_s21  ;;  %v1750_v51 = vmul.f32 %v4564_v41, %v5144_v38  ;;  %v2228_v6 = vmul.f32 %v4582_v46, %v4579_v42 }
 0x23e   :  { %v1647_v16 = vmul.f32 %v4468_v39, %v1641_v63  ;;  %v1657_v8 = vmul.f32 %v4472_v40, %v1641_v63  ;;  %v1667_v14 = vmul.f32 %v4474_v23, %v1641_v63  ;;  %v1677_v29 = vmul.f32 %v4476_v60, %v1641_v63  ;;  %v1705_v62 = vpop.permute.xlu1 %1704  ;;  %v1733_v33 = vpop.permute.xlu0 %1732  ;;  %v4612_v23 = vld [vmem:[#allocation2 + $0x139] sm:$0xff] }
 0x23f   :  { %v1715_v9 = vadd.f32 %v1705_v62, %v1689_v12  ;;  %v1754_v7 = vadd.f32 %v1750_v51, %v1740_v13  ;;  %v5145_v60 = vld [vmem:[#allocation35_spill] sm:$0xff]  ;;  %v1742_v63 = vadd.f32 %v1733_v33, %v1716_v55  ;;  %v2253_v55 = vstv %s4584_s4  ;;  %s2828_s4 = sld [smem:[#allocation14 + $0x303]] }
 0x240   :  { %v4600_v44 = vadd.f32 %v1647_v16, %v4391_v3  ;;  %v4603_v31 = vadd.f32 %v1657_v8, %v4394_v0  ;;  %v4606_v39 = vadd.f32 %v1667_v14, %v4397_v53  ;;  %v4609_v40 = vadd.f32 %v1677_v29, %v4400_v43  ;;  %2410 = vrot.lane.b32.xlu1 %v2399_v34, %s3028_s3  ;;  %v4628_v8 = vld [vmem:[#allocation2 + $0x129] sm:$0xff] }
 0x241   :  { %v1691_v13 = vmul.f32 %v4494_v30, %v5145_v60  ;;  %2236 = vrot.lane.b32.xlu0 %v2228_v6, %s3028_s3  ;;  %v1752_v3 = vmul.f32 %v4564_v41, %v4086_v27  ;;  %v2423_v53 = vmul.f32 %v4526_v2, %v4547_v28  ;;  %v2230_v34 = vmul.f32 %v4582_v46, %v4612_v23 }
 0x242   :  { %v1709_v0 = vpop.permute.xlu1 %1708  ;;  %v1769_v12 = vpop.permute.xlu0 %1768  ;;  %v2425_v27 = vmul.f32 %v4526_v2, %v4559_v5  ;;  %v1751_v14 = vmul.f32 %v4564_v41, %v4139_v49  ;;  %v2254_v62 = vmul.f32 %v2253_v55, %v4579_v42  ;;  %v2229_v2 = vmul.f32 %v4582_v46, %v4628_v8 }
 0x243   :  { %v1717_v43 = vadd.f32 %v1709_v0, %v1691_v13  ;;  %v1756_v38 = vadd.f32 %v1752_v3, %v1742_v63  ;;  %v1780_v30 = vadd.f32 %v1769_v12, %v1754_v7  ;;  %v1815_v7 = vstv %s2796_s14  ;;  %v4637_v13 = vld [vmem:[#allocation2 + $0x141] sm:$0xff]  ;;  %s2838_s14 = sld [smem:[#allocation14 + $0x380]] }
 0x244   :  { %2432 = vrot.lane.b32.xlu1 %v2423_v53, %s3029_s21  ;;  %v1753_v49 = vmul.f32 %v4564_v41, %v4154_v18  ;;  %v2256_v3 = vmul.f32 %v2253_v55, %v4612_v23  ;;  %v4643_v53 = vld [vmem:[#allocation2 + $0x151] sm:$0xff]  ;;  %v2461_v12 = vstv %s2833_s0  ;;  %s2839_s0 = sld [smem:[#allocation14 + $0x381]] }
 0x245   :  { %2240 = vrot.lane.b32.xlu0 %v2230_v34, %s3028_s3  ;;  %v1816_v34 = vmul.f32 %v1815_v7, %v4173_v54  ;;  %v1818_v54 = vmul.f32 %v1815_v7, %v4199_v22 }
 0x246   :  { %v1731_v51 = vpop.permute.xlu1 %1730  ;;  %v1773_v29 = vpop.permute.xlu0 %1772 }
 0x247   :  { %v1741_v16 = vadd.f32 %v1731_v51, %v1715_v9  ;;  %v1782_v33 = vadd.f32 %v1773_v29, %v1756_v38  ;;  %v2231_v51 = vmul.f32 %v4582_v46, %v4637_v13 }
 0x248   :  { %2436 = vrot.lane.b32.xlu1 %v2425_v27, %s3029_s21 }
 0x249   :  { %v1755_v6 = vadd.f32 %v1751_v14, %v1741_v16  ;;  %2262 = vrot.lane.b32.xlu0 %v2254_v62, %s3029_s21  ;;  %v2462_v16 = vmul.f32 %v2461_v12, %v4643_v53  ;;  %v4651_v14 = vld [vmem:[#allocation2 + $0x169] sm:$0xff]  ;;  %v2255_v62 = vmul.f32 %v2253_v55, %v4628_v8 }
 0x24a   :  { %v1735_v60 = vpop.permute.xlu1 %1734  ;;  %v1795_v63 = vpop.permute.xlu0 %1794 }
 0x24b   :  { %v1743_v9 = vadd.f32 %v1735_v60, %v1717_v43  ;;  %v1806_v0 = vadd.f32 %v1795_v63, %v1780_v30 }
 0x24c   :  { %2238 = vrot.lane.b32.xlu1 %v2229_v2, %s3028_s3  ;;  %v2464_v2 = vmul.f32 %v2461_v12, %v4651_v14 }
 0x24d   :  { %v1757_v38 = vadd.f32 %v1753_v49, %v1743_v9  ;;  %2266 = vrot.lane.b32.xlu0 %v2256_v3, %s3029_s21  ;;  %v1820_v18 = vadd.f32 %v1816_v34, %v1806_v0  ;;  %v4658_v9 = vstv %s2834_s1  ;;  %v2257_v49 = vmul.f32 %v2253_v55, %v4637_v13  ;;  %v4662_v3 = vld [vmem:[#allocation2 + $0x159] sm:$0xff]  ;;  %s2840_s1 = sld [smem:[#allocation14 + $0x382]] }
 0x24e   :  { %v1771_v43 = vpop.permute.xlu1 %1770  ;;  %v1817_v0 = vmul.f32 %v1815_v7, %v4217_v59  ;;  %v2463_v55 = vmul.f32 %v2461_v12, %v4662_v3  ;;  %v4675_v59 = vstv %s2799_s15  ;;  %s2841_s15 = sld [smem:[#allocation14 + $0x383]] }
 0x24f   :  { %v1781_v41 = vadd.f32 %v1771_v43, %v1755_v6  ;;  %v1799_v27 = vpop.permute.xlu0 %1798 }
 0x250   :  { %2242 = vrot.lane.b32.xlu1 %v2231_v51, %s3028_s3  ;;  %v1808_v30 = vadd.f32 %v1799_v27, %v1782_v33  ;;  %v1819_v27 = vmul.f32 %v1815_v7, %v4226_v24  ;;  %v4688_v24 = vstv %s2823_s19  ;;  %s4962_s19 = sld [smem:[#allocation16 + $0x3]] }
 0x251   :  { %2470 = vrot.lane.b32.xlu0 %v2462_v16, %s3028_s3  ;;  %v2490_v16 = vmul.f32 %v4658_v9, %v4651_v14 }
 0x252   :  { %v1775_v29 = vpop.permute.xlu1 %1774  ;;  %v1822_v60 = vadd.f32 %v1818_v54, %v1808_v30  ;;  %v4679_v54 = vstv %s2800_s16  ;;  %s2618_s16 = sld [smem:[#allocation16]] }
 0x253   :  { %v1783_v46 = vadd.f32 %v1775_v29, %v1757_v38  ;;  %v1835_v6 = vpop.permute.xlu0 %1834  ;;  %v2488_v38 = vmul.f32 %v4658_v9, %v4643_v53  ;;  %v4681_v29 = vstv %s2801_s17  ;;  %s2842_s17 = sld [smem:[#allocation16 + $0x1]] }
 0x254   :  { %2264 = vrot.lane.b32.xlu1 %v2255_v62, %s3029_s21  ;;  %v1846_v33 = vadd.f32 %v1835_v6, %v1820_v18  ;;  %v4683_v62 = vstv %s2802_s18  ;;  %s2843_s18 = sld [smem:[#allocation16 + $0x2]] }
 0x255   :  { %2474 = vrot.lane.b32.xlu0 %v2464_v2, %s3028_s3  ;;  %v4686_v2 = vld [vmem:[#allocation2 + $0x122] sm:$0xff] }
 0x256   :  { %v1797_v22 = vpop.permute.xlu1 %1796  ;;  %5147 = vst [vmem:[#allocation31_spill] sm:$0xff] %v4686_v2 }
 0x257   :  { %v1807_v63 = vadd.f32 %v1797_v22, %v1781_v41  ;;  %v1839_v34 = vpop.permute.xlu0 %1838  ;;  %v4672_v41 = vld [vmem:[#allocation2 + $0x171] sm:$0xff] }
 0x258   :  { %2268 = vrot.lane.b32.xlu1 %v2257_v49, %s3029_s21  ;;  %v1848_v43 = vadd.f32 %v1839_v34, %v1822_v60  ;;  %5146 = vst [vmem:[#allocation30_spill] sm:$0xff] %v4672_v41  ;;  %v2465_v7 = vmul.f32 %v2461_v12, %v4672_v41  ;;  %v4703_v12 = vld [vmem:[#allocation2 + $0x13a] sm:$0xff] }
 0x259   :  { %v1821_v51 = vadd.f32 %v1817_v0, %v1807_v63  ;;  %2496 = vrot.lane.b32.xlu0 %v2488_v38, %s3029_s21  ;;  %5148 = vst [vmem:[#allocation32_spill] sm:$0xff] %v4703_v12 }
 0x25a   :  { %v1801_v18 = vpop.permute.xlu1 %1800 }
 0x25b   :  { %v1809_v30 = vadd.f32 %v1801_v18, %v1783_v46  ;;  %v1861_v60 = vpop.permute.xlu0 %1860  ;;  %v2294_v18 = vmul.f32 %v4688_v24, %v4686_v2 }
 0x25c   :  { %2472 = vrot.lane.b32.xlu1 %v2463_v55, %s3028_s3  ;;  %v1872_v6 = vadd.f32 %v1861_v60, %v1846_v33  ;;  %v4701_v55 = vstv %s4667_s20  ;;  %s3030_s20 = smov [#allocation17]  }
 0x25d   :  { %v1823_v46 = vadd.f32 %v1819_v27, %v1809_v30  ;;  %2500 = vrot.lane.b32.xlu0 %v2490_v16, %s3029_s21 }
 0x25e   :  { %v1837_v22 = vpop.permute.xlu1 %1836  ;;  %v1878_v49 = vmul.f32 %v4675_v59, %v1872_v6  ;;  %v1888_v63 = vmul.f32 %v4679_v54, %v1872_v6  ;;  %v1898_v0 = vmul.f32 %v4681_v29, %v1872_v6  ;;  %v1908_v33 = vmul.f32 %v4683_v62, %v1872_v6 }
 0x25f   :  { %v1847_v34 = vadd.f32 %v1837_v22, %v1821_v51  ;;  %v1865_v38 = vpop.permute.xlu0 %1864 }
 0x260   :  { %2476 = vrot.lane.b32.xlu1 %v2465_v7, %s3028_s3  ;;  %v4707_v27 = vadd.f32 %v1878_v49, %v4498_v4  ;;  %v4710_v16 = vadd.f32 %v1888_v63, %v4501_v21  ;;  %v4713_v30 = vadd.f32 %v1898_v0, %v4504_v11  ;;  %v4716_v51 = vadd.f32 %v1908_v33, %v4507_v36 }
 0x261   :  { %v1874_v60 = vadd.f32 %v1865_v38, %v1848_v43  ;;  %2302 = vrot.lane.b32.xlu0 %v2294_v18, %s3028_s3  ;;  %v2489_v7 = vmul.f32 %v4658_v9, %v4662_v3  ;;  %v1922_v4 = vmul.f32 %v4701_v55, %v4232_v50  ;;  %v2296_v21 = vmul.f32 %v4688_v24, %v4703_v12 }
 0x262   :  { %v1841_v6 = vpop.permute.xlu1 %1840  ;;  %v4733_v33 = vstv %s4690_s22  ;;  %s2680_s22 = sshll.u32 %s3030_s20, 4  ;;  %s2681_s22 = int_to_ptr.vmem [resolvable:$true] %s2680_s22 }
 0x263   :  { %v1849_v11 = vadd.f32 %v1841_v6, %v1823_v46  ;;  %v1880_v36 = vmul.f32 %v4675_v59, %v1874_v60  ;;  %v1890_v22 = vmul.f32 %v4679_v54, %v1874_v60  ;;  %v1900_v43 = vmul.f32 %v4681_v29, %v1874_v60  ;;  %v1937_v49 = vpop.permute.xlu0 %1936  ;;  %p2987_p2 = scmp.lt.s32.totalorder %s2681_s22, %s2681_s22 }
 0x264   :  { %2498 = vrot.lane.b32.xlu1 %v2489_v7, %s3029_s21  ;;  %v1910_v63 = vmul.f32 %v4683_v62, %v1874_v60  ;;  %v1948_v0 = vadd.f32 %v1937_v49, %v1922_v4  ;;  %v2491_v60 = vmul.f32 %v4658_v9, %v4672_v41  ;;  %v1924_v7 = vmul.f32 %v4701_v55, %v4240_v1  ;;  %v4754_v4 = vld [vmem:[#allocation2 + $0x12a] sm:$0xff]  ;;  %v4784_v41 = vld [vmem:[#allocation2 + $0x152] sm:$0xff] }
 0x265   :  { %v4738_v50 = vadd.f32 %v1880_v36, %v4531_v32  ;;  %v4741_v46 = vadd.f32 %v1890_v22, %v4534_v26  ;;  %v4744_v38 = vadd.f32 %v1900_v43, %v4537_v20  ;;  %2306 = vrot.lane.b32.xlu0 %v2296_v21, %s3028_s3  ;;  %v2320_v20 = vmul.f32 %v4733_v33, %v4686_v2  ;;  %v4766_v43 = vld [vmem:[#allocation2 + $0x142] sm:$0xff] }
 0x266   :  { %v1863_v18 = vpop.permute.xlu1 %1862  ;;  %v4748_v6 = vadd.f32 %v1910_v63, %v4541_v58  ;;  %v2322_v49 = vmul.f32 %v4733_v33, %v4703_v12  ;;  %v1983_v63 = vstv %s4725_s5  ;;  %v2527_v12 = vstv %s4735_s7  ;;  %s2982_s5 = scalar_lea.vmem %s2681_s22, 2048 }
 0x267   :  { %v1873_v32 = vadd.f32 %v1863_v18, %v1847_v34  ;;  %v1941_v26 = vpop.permute.xlu0 %1940  ;;  %v2295_v34 = vmul.f32 %v4688_v24, %v4754_v4  ;;  %p2983_p1 = scmp.ne.s32.totalorder %s2681_s22, %s2982_s5  ;;  %p2988_p3 = scmp.lt.s32.totalorder %s2982_s5, %s2982_s5 }
 0x268   :  { %2502 = vrot.lane.b32.xlu1 %v2491_v60, %s3029_s21  ;;  %v1950_v21 = vadd.f32 %v1941_v26, %v1924_v7 }
 0x269   :  { %v1879_v58 = vmul.f32 %v4675_v59, %v1873_v32  ;;  %v1889_v36 = vmul.f32 %v4679_v54, %v1873_v32  ;;  %v1899_v9 = vmul.f32 %v4681_v29, %v1873_v32  ;;  %v1909_v22 = vmul.f32 %v4683_v62, %v1873_v32  ;;  %2328 = vrot.lane.b32.xlu0 %v2320_v20, %s3029_s21  ;;  %p2989_p4 = por %p2988_p3, %p2987_p2 }
 0x26a   :  { %v1867_v1 = vpop.permute.xlu1 %1866 }
 0x26b   :  { %v4772_v18 = vadd.f32 %v1879_v58, %v4567_v19  ;;  %v4775_v60 = vadd.f32 %v1889_v36, %v4570_v57  ;;  %v4778_v7 = vadd.f32 %v1899_v9, %v4573_v48  ;;  %v4781_v32 = vadd.f32 %v1909_v22, %v4576_v25  ;;  %v1963_v26 = vpop.permute.xlu0 %1962  ;;  %p2990_p5 = pnand %p2989_p4, %p2983_p1 }
 0x26c   :  { %v1875_v20 = vadd.f32 %v1867_v1, %v1849_v11  ;;  %2304 = vrot.lane.b32.xlu1 %v2295_v34, %s3028_s3  ;;  %v1974_v2 = vadd.f32 %v1963_v26, %v1948_v0  ;;  %v1923_v19 = vmul.f32 %v4701_v55, %v4251_v47  ;;  %v2297_v57 = vmul.f32 %v4688_v24, %v4766_v43 }
 0x26d   :  { %2332 = vrot.lane.b32.xlu0 %v2322_v49, %s3029_s21  ;;  %v1984_v48 = vmul.f32 %v1983_v63, %v4273_v10  ;;  %v2528_v47 = vmul.f32 %v2527_v12, %v4784_v41 }
 0x26e   :  { %v1881_v25 = vmul.f32 %v4675_v59, %v1875_v20  ;;  %v1891_v11 = vmul.f32 %v4679_v54, %v1875_v20  ;;  %v1901_v0 = vmul.f32 %v4681_v29, %v1875_v20  ;;  %v1911_v58 = vmul.f32 %v4683_v62, %v1875_v20  ;;  %v1939_v36 = vpop.permute.xlu1 %1938  ;;  %v4813_v54 = vld [vmem:[#allocation2 + $0x16a] sm:$0xff] }
 0x26f   :  { %v1949_v9 = vadd.f32 %v1939_v36, %v1923_v19  ;;  %v1967_v22 = vpop.permute.xlu0 %1966  ;;  %v1988_v1 = vadd.f32 %v1984_v48, %v1974_v2  ;;  %v1925_v29 = vmul.f32 %v4701_v55, %v4260_v35  ;;  %v2530_v49 = vmul.f32 %v2527_v12, %v4813_v54 }
 0x270   :  { %v4801_v24 = vadd.f32 %v1881_v25, %v4600_v44  ;;  %v4804_v34 = vadd.f32 %v1891_v11, %v4603_v31  ;;  %v4807_v10 = vadd.f32 %v1901_v0, %v4606_v39  ;;  %v4810_v59 = vadd.f32 %v1911_v58, %v4609_v40  ;;  %2308 = vrot.lane.b32.xlu1 %v2297_v57, %s3028_s3 }
 0x271   :  { %v1976_v62 = vadd.f32 %v1967_v22, %v1950_v21  ;;  %2536 = vrot.lane.b32.xlu0 %v2528_v47, %s3028_s3  ;;  %v1986_v44 = vmul.f32 %v1983_v63, %v4302_v17  ;;  %v2321_v39 = vmul.f32 %v4733_v33, %v4754_v4  ;;  %v2553_v19 = vstv %s4787_s23  ;;  %v4827_v21 = vld [vmem:[#allocation2 + $0x15a] sm:$0xff] }
 0x272   :  { %v1943_v31 = vpop.permute.xlu1 %1942  ;;  %v2323_v17 = vmul.f32 %v4733_v33, %v4766_v43  ;;  %v1985_v57 = vmul.f32 %v1983_v63, %v4337_v45  ;;  %v2554_v25 = vmul.f32 %v2553_v19, %v4784_v41  ;;  %v2049_v58 = vstv %s2809_s24  ;;  %v4834_v33 = vld [vmem:[#allocation2 + $0x172] sm:$0xff] }
 0x273   :  { %v1951_v40 = vadd.f32 %v1943_v31, %v1925_v29  ;;  %v2003_v2 = vpop.permute.xlu0 %2002  ;;  %v1990_v26 = vadd.f32 %v1986_v44, %v1976_v62  ;;  %v2529_v22 = vmul.f32 %v2527_v12, %v4827_v21  ;;  %v2556_v45 = vmul.f32 %v2553_v19, %v4813_v54 }
 0x274   :  { %2330 = vrot.lane.b32.xlu1 %v2321_v39, %s3029_s21  ;;  %v2014_v20 = vadd.f32 %v2003_v2, %v1988_v1  ;;  %v2050_v62 = vmul.f32 %v2049_v58, %v4370_v37  ;;  %v2531_v39 = vmul.f32 %v2527_v12, %v4834_v33 }
 0x275   :  { %2540 = vrot.lane.b32.xlu0 %v2530_v49, %s3028_s3 }
 0x276   :  { %v1965_v35 = vpop.permute.xlu1 %1964 }
 0x277   :  { %v1975_v55 = vadd.f32 %v1965_v35, %v1949_v9  ;;  %v2007_v48 = vpop.permute.xlu0 %2006  ;;  %v1987_v9 = vmul.f32 %v1983_v63, %v4353_v15  ;;  %v2052_v63 = vmul.f32 %v2049_v58, %v4403_v52  ;;  %v2555_v35 = vmul.f32 %v2553_v19, %v4827_v21 }
 0x278   :  { %2334 = vrot.lane.b32.xlu1 %v2323_v17, %s3029_s21  ;;  %v2016_v11 = vadd.f32 %v2007_v48, %v1990_v26 }
 0x279   :  { %v1989_v0 = vadd.f32 %v1985_v57, %v1975_v55  ;;  %2562 = vrot.lane.b32.xlu0 %v2554_v25, %s3029_s21  ;;  %v2557_v57 = vmul.f32 %v2553_v19, %v4834_v33  ;;  %v2051_v25 = vmul.f32 %v2049_v58, %v4421_v61 }
 0x27a   :  { %v1969_v36 = vpop.permute.xlu1 %1968 }
 0x27b   :  { %v1977_v47 = vadd.f32 %v1969_v36, %v1951_v40  ;;  %v2029_v1 = vpop.permute.xlu0 %2028 }
 0x27c   :  { %2538 = vrot.lane.b32.xlu1 %v2529_v22, %s3028_s3  ;;  %v2040_v29 = vadd.f32 %v2029_v1, %v2014_v20  ;;  %v2053_v22 = vmul.f32 %v2049_v58, %v4430_v56  ;;  %v2121_v1 = vstv %s2813_s25 }
 0x27d   :  { %v1991_v44 = vadd.f32 %v1987_v9, %v1977_v47  ;;  %2566 = vrot.lane.b32.xlu0 %v2556_v45, %s3029_s21  ;;  %v2111_v47 = vstv %s2812_s6  ;;  %v2131_v45 = vstv %s2814_s26 }
 0x27e   :  { %v2005_v31 = vpop.permute.xlu1 %2004  ;;  %v2054_v2 = vadd.f32 %v2050_v62, %v2040_v29  ;;  %v2141_v29 = vstv %s2815_s29 }
 0x27f   :  { %v2015_v40 = vadd.f32 %v2005_v31, %v1989_v0  ;;  %v2033_v49 = vpop.permute.xlu0 %2032 }
 0x280   :  { %2542 = vrot.lane.b32.xlu1 %v2531_v39, %s3028_s3  ;;  %v2042_v15 = vadd.f32 %v2033_v49, %v2016_v11  ;;  %s2816_s3 = sld [smem:[#allocation13 + $0x6]] }
 0x282   :  { %v2009_v26 = vpop.permute.xlu1 %2008  ;;  %v2056_v20 = vadd.f32 %v2052_v63, %v2042_v15 }
 0x283   :  { %v2017_v37 = vadd.f32 %v2009_v26, %v1991_v44  ;;  %v2069_v17 = vpop.permute.xlu0 %2068 }
 0x284   :  { %2564 = vrot.lane.b32.xlu1 %v2555_v35, %s3029_s21  ;;  %v2080_v12 = vadd.f32 %v2069_v17, %v2054_v2  ;;  %v5149_v17 = vld [vmem:[#allocation24_spill] sm:$0xff] }
 0x286   :  { %v2031_v55 = vpop.permute.xlu1 %2030  ;;  %v2155_v63 = vstv %s2816_s3 }
 0x287   :  { %v2041_v48 = vadd.f32 %v2031_v55, %v2015_v40  ;;  %v2073_v52 = vpop.permute.xlu0 %2072 }
 0x288   :  { %2568 = vrot.lane.b32.xlu1 %v2557_v57, %s3029_s21  ;;  %v2082_v11 = vadd.f32 %v2073_v52, %v2056_v20  ;;  %s2819_s21 = sld [smem:[#allocation13 + $0x186]] }
 0x289   :  { %v2055_v0 = vadd.f32 %v2051_v25, %v2041_v48 }
 0x28a   :  { %v2035_v36 = vpop.permute.xlu1 %2034 }
 0x28b   :  { %v2043_v9 = vadd.f32 %v2035_v36, %v2017_v37  ;;  %v2095_v62 = vpop.permute.xlu0 %2094 }
 0x28c   :  { %v2106_v44 = vadd.f32 %v2095_v62, %v2080_v12  ;;  %v2156_v12 = vmul.f32 %v2155_v63, %v5149_v17  ;;  %v5151_v17 = vld [vmem:[#allocation26_spill] sm:$0xff] }
 0x28d   :  { %v2057_v19 = vadd.f32 %v2053_v22, %v2043_v9  ;;  %v5150_v22 = vld [vmem:[#allocation25_spill] sm:$0xff] }
 0x28e   :  { %v2071_v31 = vpop.permute.xlu1 %2070  ;;  %v2112_v39 = vmul.f32 %v2111_v47, %v2106_v44  ;;  %v2122_v61 = vmul.f32 %v2121_v1, %v2106_v44  ;;  %v2132_v2 = vmul.f32 %v2131_v45, %v2106_v44  ;;  %v2142_v40 = vmul.f32 %v2141_v29, %v2106_v44 }
 0x28f   :  { %v2081_v49 = vadd.f32 %v2071_v31, %v2055_v0  ;;  %v2099_v15 = vpop.permute.xlu0 %2098  ;;  %v2158_v9 = vmul.f32 %v2155_v63, %v5150_v22 }
 0x290   :  { %v4851_v26 = vadd.f32 %v2112_v39, %v4707_v27  ;;  %v4854_v56 = vadd.f32 %v2122_v61, %v4710_v16  ;;  %v4857_v58 = vadd.f32 %v2132_v2, %v4713_v30  ;;  %v4860_v35 = vadd.f32 %v2142_v40, %v4716_v51 }
 0x291   :  { %v2108_v20 = vadd.f32 %v2099_v15, %v2082_v11  ;;  %v2217_v40 = vstv %s2819_s21 }
 0x292   :  { %v2075_v37 = vpop.permute.xlu1 %2074 }
 0x293   :  { %v2083_v55 = vadd.f32 %v2075_v37, %v2057_v19  ;;  %v2114_v57 = vmul.f32 %v2111_v47, %v2108_v20  ;;  %v2124_v48 = vmul.f32 %v2121_v1, %v2108_v20  ;;  %v2134_v25 = vmul.f32 %v2131_v45, %v2108_v20  ;;  %v2171_v27 = vpop.permute.xlu0 %2170 }
 0x294   :  { %v2144_v52 = vmul.f32 %v2141_v29, %v2108_v20  ;;  %v2182_v0 = vadd.f32 %v2171_v27, %v2156_v12  ;;  %v2157_v12 = vmul.f32 %v2155_v63, %v5151_v17 }
 0x295   :  { %v4864_v16 = vadd.f32 %v2114_v57, %v4738_v50  ;;  %v4867_v30 = vadd.f32 %v2124_v48, %v4741_v46  ;;  %v4870_v51 = vadd.f32 %v2134_v25, %v4744_v38  ;;  %v2218_v57 = vmul.f32 %v2217_v40, %v4579_v42  ;;  %v5152_v42 = vld [vmem:[#allocation27_spill] sm:$0xff] }
 0x296   :  { %v2097_v11 = vpop.permute.xlu1 %2096  ;;  %v4873_v36 = vadd.f32 %v2144_v52, %v4748_v6 }
 0x297   :  { %v2107_v62 = vadd.f32 %v2097_v11, %v2081_v49  ;;  %v2175_v44 = vpop.permute.xlu0 %2174 }
 0x298   :  { %v2184_v19 = vadd.f32 %v2175_v44, %v2158_v9  ;;  %v2389_v44 = vstv %s2829_s30 }
 0x299   :  { %v2113_v31 = vmul.f32 %v2111_v47, %v2107_v62  ;;  %v2123_v39 = vmul.f32 %v2121_v1, %v2107_v62  ;;  %v2133_v61 = vmul.f32 %v2131_v45, %v2107_v62  ;;  %v2143_v50 = vmul.f32 %v2141_v29, %v2107_v62 }
 0x29a   :  { %v2101_v2 = vpop.permute.xlu1 %2100 }
 0x29b   :  { %v4877_v46 = vadd.f32 %v2113_v31, %v4772_v18  ;;  %v4880_v38 = vadd.f32 %v2123_v39, %v4775_v60  ;;  %v4883_v6 = vadd.f32 %v2133_v61, %v4778_v7  ;;  %v4886_v15 = vadd.f32 %v2143_v50, %v4781_v32  ;;  %v2197_v49 = vpop.permute.xlu0 %2196  ;;  %v5153_v61 = vld [vmem:[#allocation28_spill] sm:$0xff] }
 0x29c   :  { %v2109_v20 = vadd.f32 %v2101_v2, %v2083_v55  ;;  %v2208_v37 = vadd.f32 %v2197_v49, %v2182_v0  ;;  %v2390_v50 = vmul.f32 %v2389_v44, %v5153_v61  ;;  %v2451_v2 = vstv %s2832_s9 }
 0x29e   :  { %v2115_v48 = vmul.f32 %v2111_v47, %v2109_v20  ;;  %v2125_v18 = vmul.f32 %v2121_v1, %v2109_v20  ;;  %v2135_v25 = vmul.f32 %v2131_v45, %v2109_v20  ;;  %v2145_v27 = vmul.f32 %v2141_v29, %v2109_v20  ;;  %v2173_v60 = vpop.permute.xlu1 %2172 }
 0x29f   :  { %v2183_v52 = vadd.f32 %v2173_v60, %v2157_v12  ;;  %v2201_v11 = vpop.permute.xlu0 %2200  ;;  %v2222_v7 = vadd.f32 %v2218_v57, %v2208_v37  ;;  %v2159_v47 = vmul.f32 %v2155_v63, %v5152_v42  ;;  %v2220_v45 = vmul.f32 %v2217_v40, %v4612_v23  ;;  %v5154_v37 = vld [vmem:[#allocation29_spill] sm:$0xff] }
 0x2a0   :  { %v4891_v22 = vadd.f32 %v2115_v48, %v4801_v24  ;;  %v4894_v32 = vadd.f32 %v2125_v18, %v4804_v34  ;;  %v4897_v55 = vadd.f32 %v2135_v25, %v4807_v10  ;;  %v4900_v0 = vadd.f32 %v2145_v27, %v4810_v59 }
 0x2a1   :  { %v2210_v1 = vadd.f32 %v2201_v11, %v2184_v19  ;;  %v2219_v10 = vmul.f32 %v2217_v40, %v4628_v8  ;;  %v2221_v23 = vmul.f32 %v2217_v40, %v4637_v13  ;;  %v2392_v17 = vmul.f32 %v2389_v44, %v5154_v37 }
 0x2a2   :  { %v2177_v29 = vpop.permute.xlu1 %2176  ;;  %v2452_v57 = vmul.f32 %v2451_v2, %v4643_v53 }
 0x2a3   :  { %v2185_v9 = vadd.f32 %v2177_v29, %v2159_v47  ;;  %v2405_v62 = vpop.permute.xlu0 %2404  ;;  %v2224_v24 = vadd.f32 %v2220_v45, %v2210_v1  ;;  %v2391_v47 = vmul.f32 %v2389_v44, %v4547_v28  ;;  %v2393_v45 = vmul.f32 %v2389_v44, %v4559_v5  ;;  %v5156_v28 = vld [vmem:[#allocation31_spill] sm:$0xff] }
 0x2a4   :  { %v2416_v63 = vadd.f32 %v2405_v62, %v2390_v50  ;;  %v5155_v50 = vld [vmem:[#allocation30_spill] sm:$0xff] }
 0x2a6   :  { %v2199_v31 = vpop.permute.xlu1 %2198 }
 0x2a7   :  { %v2209_v34 = vadd.f32 %v2199_v31, %v2183_v52  ;;  %v2409_v39 = vpop.permute.xlu0 %2408  ;;  %v2454_v52 = vmul.f32 %v2451_v2, %v4651_v14 }
 0x2a8   :  { %v2418_v25 = vadd.f32 %v2409_v39, %v2392_v17 }
 0x2a9   :  { %v2223_v59 = vadd.f32 %v2219_v10, %v2209_v34  ;;  %v2283_v34 = vstv %s2822_s10 }
 0x2aa   :  { %v2203_v49 = vpop.permute.xlu1 %2202 }
 0x2ab   :  { %v2211_v19 = vadd.f32 %v2203_v49, %v2185_v9  ;;  %v2431_v20 = vpop.permute.xlu0 %2430  ;;  %v2453_v9 = vmul.f32 %v2451_v2, %v4662_v3  ;;  %v2455_v49 = vmul.f32 %v2451_v2, %v5155_v50  ;;  %v2285_v2 = vmul.f32 %v2283_v34, %v4754_v4 }
 0x2ac   :  { %v2442_v12 = vadd.f32 %v2431_v20, %v2416_v63 }
 0x2ad   :  { %v2225_v48 = vadd.f32 %v2221_v23, %v2211_v19  ;;  %v2284_v19 = vmul.f32 %v2283_v34, %v5156_v28 }
 0x2ae   :  { %v2407_v18 = vpop.permute.xlu1 %2406  ;;  %v2456_v27 = vadd.f32 %v2452_v57, %v2442_v12  ;;  %v5157_v12 = vld [vmem:[#allocation32_spill] sm:$0xff] }
 0x2af   :  { %v2435_v8 = vpop.permute.xlu0 %2434  ;;  %v2417_v13 = vadd.f32 %v2407_v18, %v2391_v47  ;;  %v2286_v3 = vmul.f32 %v2283_v34, %v5157_v12  ;;  %v2365_v12 = vstv %s2827_s2 }
 0x2b0   :  { %v2444_v60 = vadd.f32 %v2435_v8, %v2418_v25 }
 0x2b2   :  { %v2411_v11 = vpop.permute.xlu1 %2410  ;;  %v2458_v42 = vadd.f32 %v2454_v52, %v2444_v60 }
 0x2b3   :  { %v2237_v1 = vpop.permute.xlu0 %2236  ;;  %v2419_v62 = vadd.f32 %v2411_v11, %v2393_v45 }
 0x2b4   :  { %v2248_v10 = vadd.f32 %v2237_v1, %v2222_v7  ;;  %v2517_v1 = vstv %s2835_s11 }
 0x2b6   :  { %v2433_v40 = vpop.permute.xlu1 %2432 }
 0x2b7   :  { %v2443_v29 = vadd.f32 %v2433_v40, %v2417_v13  ;;  %v2241_v53 = vpop.permute.xlu0 %2240 }
 0x2b8   :  { %v2250_v37 = vadd.f32 %v2241_v53, %v2224_v24 }
 0x2b9   :  { %v2457_v31 = vadd.f32 %v2453_v9, %v2443_v29  ;;  %v2287_v29 = vmul.f32 %v2283_v34, %v4766_v43  ;;  %v2518_v9 = vmul.f32 %v2517_v1, %v4784_v41 }
 0x2ba   :  { %v2437_v39 = vpop.permute.xlu1 %2436 }
 0x2bb   :  { %v2445_v14 = vadd.f32 %v2437_v39, %v2419_v62  ;;  %v2263_v61 = vpop.permute.xlu0 %2262 }
 0x2bc   :  { %v2274_v63 = vadd.f32 %v2263_v61, %v2248_v10 }
 0x2bd   :  { %v2459_v20 = vadd.f32 %v2455_v49, %v2445_v14  ;;  %v2520_v14 = vmul.f32 %v2517_v1, %v4813_v54  ;;  %v4931_v54 = vstv %s2825_s12 }
 0x2be   :  { %v2239_v23 = vpop.permute.xlu1 %2238  ;;  %v2288_v5 = vadd.f32 %v2284_v19, %v2274_v63 }
 0x2bf   :  { %v2267_v44 = vpop.permute.xlu0 %2266  ;;  %v2249_v7 = vadd.f32 %v2239_v23, %v2223_v59 }
 0x2c0   :  { %v2276_v17 = vadd.f32 %v2267_v44, %v2250_v37  ;;  %v2521_v37 = vmul.f32 %v2517_v1, %v4834_v33 }
 0x2c2   :  { %v2243_v57 = vpop.permute.xlu1 %2242  ;;  %v2290_v18 = vadd.f32 %v2286_v3, %v2276_v17  ;;  %v2355_v17 = vstv %s2826_s13  ;;  %v2375_v3 = vstv %s2828_s4 }
 0x2c3   :  { %v2471_v25 = vpop.permute.xlu0 %2470  ;;  %v2251_v11 = vadd.f32 %v2243_v57, %v2225_v48 }
 0x2c4   :  { %v2482_v13 = vadd.f32 %v2471_v25, %v2456_v27 }
 0x2c6   :  { %v2265_v8 = vpop.permute.xlu1 %2264 }
 0x2c7   :  { %v2275_v60 = vadd.f32 %v2265_v8, %v2249_v7  ;;  %v2475_v52 = vpop.permute.xlu0 %2474 }
 0x2c8   :  { %v2484_v39 = vadd.f32 %v2475_v52, %v2458_v42  ;;  %v2519_v42 = vmul.f32 %v2517_v1, %v4827_v21 }
 0x2c9   :  { %v4917_v47 = vadd.f32 %v2285_v2, %v2275_v60 }
 0x2ca   :  { %v2269_v24 = vpop.permute.xlu1 %2268 }
 0x2cb   :  { %v2277_v40 = vadd.f32 %v2269_v24, %v2251_v11  ;;  %v2497_v45 = vpop.permute.xlu0 %2496 }
 0x2cc   :  { %v2508_v53 = vadd.f32 %v2497_v45, %v2482_v13 }
 0x2cd   :  { %v4921_v62 = vadd.f32 %v2287_v29, %v2277_v40 }
 0x2ce   :  { %v2473_v59 = vpop.permute.xlu1 %2472  ;;  %v4923_v10 = vadd.f32 %v2518_v9, %v2508_v53 }
 0x2cf   :  { %v2501_v4 = vpop.permute.xlu0 %2500  ;;  %v2483_v43 = vadd.f32 %v2473_v59, %v2457_v31 }
 0x2d0   :  { %v2510_v48 = vadd.f32 %v2501_v4, %v2484_v39 }
 0x2d2   :  { %v2477_v61 = vpop.permute.xlu1 %2476  ;;  %v4926_v27 = vadd.f32 %v2520_v14, %v2510_v48 }
 0x2d3   :  { %v2303_v50 = vpop.permute.xlu0 %2302  ;;  %v2485_v63 = vadd.f32 %v2477_v61, %v2459_v20 }
 0x2d4   :  { %v2314_v23 = vadd.f32 %v2303_v50, %v2288_v5 }
 0x2d6   :  { %v2499_v41 = vpop.permute.xlu1 %2498 }
 0x2d7   :  { %v2509_v34 = vadd.f32 %v2499_v41, %v2483_v43  ;;  %v2307_v49 = vpop.permute.xlu0 %2306 }
 0x2d8   :  { %v2316_v52 = vadd.f32 %v2307_v49, %v2290_v18 }
 0x2d9   :  { %v4929_v28 = vadd.f32 %v2519_v42, %v2509_v34  ;;  %v4976_v42 = vstv %s2839_s0 }
 0x2da   :  { %v2503_v19 = vpop.permute.xlu1 %2502 }
 0x2db   :  { %v2511_v44 = vadd.f32 %v2503_v19, %v2485_v63  ;;  %v2329_v57 = vpop.permute.xlu0 %2328  ;;  %v4980_v19 = vstv %s2841_s15 }
 0x2dc   :  { %v2340_v31 = vadd.f32 %v2329_v57, %v2314_v23  ;;  %v4984_v23 = vstv %s2842_s17 }
 0x2dd   :  { %v4934_v25 = vadd.f32 %v2521_v37, %v2511_v44 }
 0x2de   :  { %v2305_v7 = vpop.permute.xlu1 %2304  ;;  %v2346_v21 = vmul.f32 %v4931_v54, %v2340_v31  ;;  %v2356_v20 = vmul.f32 %v2355_v17, %v2340_v31  ;;  %v2366_v8 = vmul.f32 %v2365_v12, %v2340_v31  ;;  %v2376_v60 = vmul.f32 %v2375_v3, %v2340_v31 }
 0x2df   :  { %v2333_v5 = vpop.permute.xlu0 %2332 }
 0x2e0   :  { %v2350_v2 = vadd.f32 %v2346_v21, %v4851_v26  ;;  %v2360_v33 = vadd.f32 %v2356_v20, %v4854_v56  ;;  %v2370_v11 = vadd.f32 %v2366_v8, %v4857_v58  ;;  %v4941_v1 = vadd.f32 %v2376_v60, %v4860_v35 }
 0x2e1   :  { %v2342_v24 = vadd.f32 %v2333_v5, %v2316_v52  ;;  %v2315_v26 = vadd.f32 %v2305_v7, %v4917_v47 }
 0x2e2   :  { %v2309_v13 = vpop.permute.xlu1 %2308 }
 0x2e3   :  { %v2348_v40 = vmul.f32 %v4931_v54, %v2342_v24  ;;  %v2358_v45 = vmul.f32 %v2355_v17, %v2342_v24  ;;  %v2368_v29 = vmul.f32 %v2365_v12, %v2342_v24  ;;  %v2537_v53 = vpop.permute.xlu0 %2536  ;;  %v2378_v18 = vmul.f32 %v2375_v3, %v2342_v24 }
 0x2e4   :  { %v2317_v61 = vadd.f32 %v2309_v13, %v4921_v62  ;;  %v2548_v50 = vadd.f32 %v2537_v53, %v4923_v10  ;;  %v4978_v10 = vstv %s2840_s1  ;;  %v5007_v13 = vstv %s4962_s19 }
 0x2e5   :  { %v4946_v56 = vadd.f32 %v2348_v40, %v4864_v16  ;;  %v4949_v58 = vadd.f32 %v2358_v45, %v4867_v30  ;;  %v4952_v35 = vadd.f32 %v2368_v29, %v4870_v51  ;;  %v4955_v59 = vadd.f32 %v2378_v18, %v4873_v36  ;;  %v2860_v29 = vld [vmem:[#allocation3] sm:$0xff]  ;;  %v2861_v18 = vld [vmem:[#allocation3 + $0x10] sm:$0xff] }
 0x2e6   :  { %v2331_v9 = vpop.permute.xlu1 %2330  ;;  %v4960_v51 = vstv %s2838_s14 }
 0x2e7   :  { %v2341_v39 = vadd.f32 %v2331_v9, %v2315_v26  ;;  %v2541_v4 = vpop.permute.xlu0 %2540  ;;  %v2862_v9 = vld [vmem:[#allocation3 + $0x20] sm:$0xff] }
 0x2e8   :  { %v2550_v31 = vadd.f32 %v2541_v4, %v4926_v27 }
 0x2e9   :  { %v2347_v48 = vmul.f32 %v4931_v54, %v2341_v39  ;;  %v2357_v47 = vmul.f32 %v2355_v17, %v2341_v39  ;;  %v2367_v14 = vmul.f32 %v2365_v12, %v2341_v39  ;;  %v2377_v16 = vmul.f32 %v2375_v3, %v2341_v39 }
 0x2ea   :  { %v2335_v30 = vpop.permute.xlu1 %2334 }
 0x2eb   :  { %v4965_v43 = vadd.f32 %v2347_v48, %v4877_v46  ;;  %v4968_v36 = vadd.f32 %v2357_v47, %v4880_v38  ;;  %v4971_v41 = vadd.f32 %v2367_v14, %v4883_v6  ;;  %v4974_v34 = vadd.f32 %v2377_v16, %v4886_v15  ;;  %v2563_v62 = vpop.permute.xlu0 %2562  ;;  %v2863_v16 = vld [vmem:[#allocation3 + $0x30] sm:$0xff] }
 0x2ec   :  { %v2343_v49 = vadd.f32 %v2335_v30, %v2317_v61  ;;  %v2574_v63 = vadd.f32 %v2563_v62, %v2548_v50  ;;  %v4982_v46 = vstv %s2618_s16  ;;  %v4986_v38 = vstv %s2843_s18 }
 0x2ee   :  { %v2349_v6 = vmul.f32 %v4931_v54, %v2343_v49  ;;  %v2359_v37 = vmul.f32 %v2355_v17, %v2343_v49  ;;  %v2369_v15 = vmul.f32 %v2365_v12, %v2343_v49  ;;  %v2379_v44 = vmul.f32 %v2375_v3, %v2343_v49  ;;  %v2539_v57 = vpop.permute.xlu1 %2538 }
 0x2ef   :  { %v2580_v7 = vmul.f32 %v4960_v51, %v2574_v63  ;;  %v2590_v21 = vmul.f32 %v4976_v42, %v2574_v63  ;;  %v2600_v20 = vmul.f32 %v4978_v10, %v2574_v63  ;;  %v2567_v8 = vpop.permute.xlu0 %2566  ;;  %v2610_v5 = vmul.f32 %v4980_v19, %v2574_v63 }
 0x2f0   :  { %v4994_v60 = vadd.f32 %v2349_v6, %v4891_v22  ;;  %v4997_v52 = vadd.f32 %v2359_v37, %v4894_v32  ;;  %v5000_v54 = vadd.f32 %v2369_v15, %v4897_v55  ;;  %v5003_v17 = vadd.f32 %v2379_v44, %v4900_v0  ;;  %v2864_v37 = vld [vmem:[#allocation3 + $0x40] sm:$0xff]  ;;  %v2865_v15 = vld [vmem:[#allocation3 + $0x50] sm:$0xff] }
 0x2f1   :  { %v2584_v27 = vadd.f32 %v2580_v7, %v2350_v2  ;;  %v2594_v12 = vadd.f32 %v2590_v21, %v2360_v33  ;;  %v2604_v3 = vadd.f32 %v2600_v20, %v2370_v11  ;;  %v2576_v22 = vadd.f32 %v2567_v8, %v2550_v31 }
 0x2f2   :  { %v2543_v24 = vpop.permute.xlu1 %2542  ;;  %v2549_v40 = vadd.f32 %v2539_v57, %v4929_v28  ;;  %v2614_v32 = vadd.f32 %v2610_v5, %v4941_v1  ;;  %v2866_v57 = vld [vmem:[#allocation3 + $0x60] sm:$0xff] }
 0x2f3   :  { %v2620_v55 = vadd.f32 %v4982_v46, %v2584_v27  ;;  %v2630_v45 = vadd.f32 %v4984_v23, %v2594_v12  ;;  %v2640_v0 = vadd.f32 %v4986_v38, %v2604_v3  ;;  %v2582_v2 = vmul.f32 %v4960_v51, %v2576_v22  ;;  %v2867_v3 = vld [vmem:[#allocation3 + $0x70] sm:$0xff] }
 0x2f4   :  { %v2592_v33 = vmul.f32 %v4976_v42, %v2576_v22  ;;  %v2602_v11 = vmul.f32 %v4978_v10, %v2576_v22  ;;  %v2650_v28 = vadd.f32 %v5007_v13, %v2614_v32  ;;  %v2612_v1 = vmul.f32 %v4980_v19, %v2576_v22 }
 0x2f5   :  { %v2624_v53 = vadd.f32 %v2860_v29, %v2620_v55  ;;  %v2634_v26 = vadd.f32 %v2861_v18, %v2630_v45  ;;  %v2644_v39 = vadd.f32 %v2862_v9, %v2640_v0  ;;  %v2586_v48 = vadd.f32 %v2582_v2, %v4946_v56  ;;  %v2868_v45 = vld [vmem:[#allocation3 + $0x8] sm:$0xff]  ;;  %v2869_v2 = vld [vmem:[#allocation3 + $0x18] sm:$0xff] }
 0x2f6   :  { %v2565_v4 = vpop.permute.xlu1 %2564  ;;  %v2596_v47 = vadd.f32 %v2592_v33, %v4949_v58  ;;  %v2606_v14 = vadd.f32 %v2602_v11, %v4952_v35  ;;  %v2654_v61 = vadd.f32 %v2863_v16, %v2650_v28  ;;  %v2616_v50 = vadd.f32 %v2612_v1, %v4955_v59  ;;  %v2870_v11 = vld [vmem:[#allocation3 + $0x28] sm:$0xff]  ;;  %v2873_v1 = vld [vmem:[#allocation3 + $0x58] sm:$0xff] }
 0x2f7   :  { %2659 = vst.msk [vmem:[#allocation17] sm:$0xff] %vm2658_vm3, %v2624_v53  ;;  %2661 = vst.msk [vmem:[#allocation17 + $0x10] sm:$0xff] %vm2658_vm3, %v2634_v26  ;;  %v2575_v30 = vadd.f32 %v2565_v4, %v2549_v40  ;;  %v2551_v62 = vadd.f32 %v2543_v24, %v4934_v25  ;;  %v2622_v49 = vadd.f32 %v4982_v46, %v2586_v48  ;;  %v2871_v53 = vld [vmem:[#allocation3 + $0x38] sm:$0xff] }
 0x2f8   :  { %2663 = vst.msk [vmem:[#allocation17 + $0x20] sm:$0xff] %vm2658_vm3, %v2644_v39  ;;  %v2632_v56 = vadd.f32 %v4984_v23, %v2596_v47  ;;  %v2642_v58 = vadd.f32 %v4986_v38, %v2606_v14  ;;  %2665 = vst.msk [vmem:[#allocation17 + $0x30] sm:$0xff] %vm2658_vm3, %v2654_v61  ;;  %v2652_v7 = vadd.f32 %v5007_v13, %v2616_v50  ;;  %v2874_v39 = vld [vmem:[#allocation3 + $0x68] sm:$0xff]  ;;  %v2875_v48 = vld [vmem:[#allocation3 + $0x78] sm:$0xff] }
 0x2f9   :  { %v2581_v35 = vmul.f32 %v4960_v51, %v2575_v30  ;;  %v2591_v63 = vmul.f32 %v4976_v42, %v2575_v30  ;;  %v2601_v6 = vmul.f32 %v4978_v10, %v2575_v30  ;;  %v2611_v59 = vmul.f32 %v4980_v19, %v2575_v30 }
 0x2fa   :  { %v2626_v25 = vadd.f32 %v2864_v37, %v2622_v49  ;;  %v2636_v44 = vadd.f32 %v2865_v15, %v2632_v56  ;;  %v2646_v31 = vadd.f32 %v2866_v57, %v2642_v58  ;;  %v2569_v21 = vpop.permute.xlu1 %2568  ;;  %v2656_v5 = vadd.f32 %v2867_v3, %v2652_v7 }
 0x2fb   :  { %v2585_v20 = vadd.f32 %v2581_v35, %v4965_v43  ;;  %v2595_v8 = vadd.f32 %v2591_v63, %v4968_v36  ;;  %v2605_v27 = vadd.f32 %v2601_v6, %v4971_v41  ;;  %v2615_v12 = vadd.f32 %v2611_v59, %v4974_v34 }
 0x2fc   :  { %2667 = vst.msk [vmem:[#allocation17 + $0x40] sm:$0xff] %vm2658_vm3, %v2626_v25  ;;  %2669 = vst.msk [vmem:[#allocation17 + $0x50] sm:$0xff] %vm2658_vm3, %v2636_v44  ;;  %v2577_v24 = vadd.f32 %v2569_v21, %v2551_v62 }
 0x2fd   :  { %2671 = vst.msk [vmem:[#allocation17 + $0x60] sm:$0xff] %vm2658_vm3, %v2646_v31  ;;  %v2621_v22 = vadd.f32 %v4982_v46, %v2585_v20  ;;  %v2631_v40 = vadd.f32 %v4984_v23, %v2595_v8  ;;  %v2641_v43 = vadd.f32 %v4986_v38, %v2605_v27  ;;  %v2651_v36 = vadd.f32 %v5007_v13, %v2615_v12 }
 0x2fe   :  { %2673 = vst.msk [vmem:[#allocation17 + $0x70] sm:$0xff] %vm2658_vm3, %v2656_v5  ;;  %v2583_v41 = vmul.f32 %v4960_v51, %v2577_v24  ;;  %v2593_v34 = vmul.f32 %v4976_v42, %v2577_v24  ;;  %v2603_v32 = vmul.f32 %v4978_v10, %v2577_v24  ;;  %v2613_v55 = vmul.f32 %v4980_v19, %v2577_v24 }
 0x2ff   :  { %v2625_v0 = vadd.f32 %v2868_v45, %v2621_v22  ;;  %v2635_v33 = vadd.f32 %v2869_v2, %v2631_v40  ;;  %v2645_v29 = vadd.f32 %v2870_v11, %v2641_v43  ;;  %v2655_v18 = vadd.f32 %v2871_v53, %v2651_v36 }
 0x300   :  { %v2587_v26 = vadd.f32 %v2583_v41, %v4994_v60  ;;  %v2597_v28 = vadd.f32 %v2593_v34, %v4997_v52  ;;  %v2607_v51 = vadd.f32 %v2603_v32, %v5000_v54  ;;  %v2617_v42 = vadd.f32 %v2613_v55, %v5003_v17  ;;  %v2872_v54 = vld [vmem:[#allocation3 + $0x48] sm:$0xff] }
 0x301   :  { %2660 = vst.msk [vmem:[#allocation17 + $0x8] sm:$0xff] %vm2658_vm3, %v2625_v0  ;;  %2662 = vst.msk [vmem:[#allocation17 + $0x18] sm:$0xff] %vm2658_vm3, %v2635_v33 }
 0x302   :  { %2664 = vst.msk [vmem:[#allocation17 + $0x28] sm:$0xff] %vm2658_vm3, %v2645_v29  ;;  %2666 = vst.msk [vmem:[#allocation17 + $0x38] sm:$0xff] %vm2658_vm3, %v2655_v18  ;;  %v2623_v10 = vadd.f32 %v4982_v46, %v2587_v26  ;;  %v2633_v19 = vadd.f32 %v4984_v23, %v2597_v28  ;;  %v2643_v60 = vadd.f32 %v4986_v38, %v2607_v51 }
 0x303   :  { %v2653_v52 = vadd.f32 %v5007_v13, %v2617_v42 }
 0x304   :  { %v2627_v17 = vadd.f32 %v2872_v54, %v2623_v10  ;;  %v2637_v9 = vadd.f32 %v2873_v1, %v2633_v19  ;;  %v2647_v4 = vadd.f32 %v2874_v39, %v2643_v60 }
 0x305   :  { %v2657_v47 = vadd.f32 %v2875_v48, %v2653_v52 }
 0x306   :  { %2668 = vst.msk [vmem:[#allocation17 + $0x48] sm:$0xff] %vm2658_vm3, %v2627_v17  ;;  %2670 = vst.msk [vmem:[#allocation17 + $0x58] sm:$0xff] %vm2658_vm3, %v2637_v9 }
 0x307   :  { %2672 = vst.msk [vmem:[#allocation17 + $0x68] sm:$0xff] %vm2658_vm3, %v2647_v4  ;;  %2674 = vst.msk [vmem:[#allocation17 + $0x78] sm:$0xff] %vm2658_vm3, %v2657_v47 }
 0x308   :  { %2993 = shalt.err (!%p2990_p5)
}
 0x309   :  { %s2994_s24 = scalar_lea.hbm %s5091_s8, 2048 }
 0x30a   :  { %p2995_p6 = scmp.ne.s32.totalorder %s5091_s8, %s2994_s24  ;;  %p2998_p7 = scmp.lt.u32.totalorder %s2994_s24, %s5091_s8 }
 0x30c   :  { %p3000_p8 = pnand %p2998_p7, %p2995_p6 }
 0x30e   :  { %3003 = shalt.err (!%p3000_p8)
}
 0x30f   :  { %2686 = dma.vmem_to_hbm [thread:$0]  %s2681_s22, 2048, %s5091_s8, [#allocation5], %s3020_s27, %s3020_s27, %s3021_s28  }
 0x310   :  { %3014 = dma.done.wait [#allocation5], 2048  }
 0x311   :  { %3015 = vsyncadd [#allocation5], 4294965248 }
 0x312   :  { %2690 = vsyncpa [#allocation4], 1 }
 0x313   :  { %2691 = vsyncpa [#allocation5], 1 }
 0x314   :  { %2692 = vsyncpa [#allocation6], 1 }
 0x315   :  { %2693 = vsyncpa [#allocation9], 1 }
 0x316   :  { %2694 = vsyncpa [#allocation12], 1 }
 0x317   :  { %2695 = vsyncpa [#allocation15], 1 }

</bundles_post_ra>
